<compile_context>
chip_gen: v7x
topology: tpu7x:2x2x1
jax: 0.10.0
libtpu: 0.0.40
codegen_flags: <defaults>
</compile_context>

<pallas_src>
import jax
import jax.numpy as jnp
from jax.experimental import pallas as pl
from jax.experimental.pallas import tpu as pltpu


def attention_kernel(x_ref, p_ref, out_ref):
    """One grid step: a tile of TB independent samples.

    x_ref:   (TB, P, N, E)   node embeddings for TB samples
    p_ref:   (2E+8, H)       packed params: rows [0:E)=w1, [E:2E)=wa1,
                             2E=b1, 2E+1=ba1, 2E+2=w2^T, 2E+3=wa2^T (rest pad)
    out_ref: (TB, E)         pooled user features
    """
    TB, P, N, E = x_ref.shape
    H = p_ref.shape[1]

    # Static slices of the packed parameter block (no runtime cost).
    w1 = p_ref[0:E, :]                        # (E, H)   path_net.net[0] weight
    wa1 = p_ref[E:2 * E, :]                   # (E, H)   attnet[0]      weight
    b1 = p_ref[2 * E:2 * E + 1, :]            # (1, H)   path_net.net[0] bias
    ba1 = p_ref[2 * E + 1:2 * E + 2, :]       # (1, H)   attnet[0]      bias
    w2t = p_ref[2 * E + 2:2 * E + 3, :]       # (1, H)   path_net.net[2] weight^T
    wa2t = p_ref[2 * E + 3:2 * E + 4, :]      # (1, H)   attnet[2]      weight^T
    # (path_net.net[2] / attnet[2] biases are inert under softmax -> dropped.)

    x4 = x_ref[...]                           # (TB, P, N, E)
    x3 = x4.reshape(TB * P, N, E)             # leading-dim merge (layout preserving)
    x2 = x4.reshape(TB * P * N, E)

    # ---- path_net layer 1: one tall MXU matmul over every node of every path ----
    h = jnp.maximum(
        jnp.dot(x2, w1, preferred_element_type=jnp.float32) + b1, 0.0)   # (TB*P*N, H)

    # ---- path_net layer 2 (out_features == 1): lane-reduce against (1, H) row ----
    h3 = h.reshape(TB * P, N, H)
    a3 = jnp.sum(h3 * w2t, axis=-1, keepdims=True)                       # (TB*P, N, 1)

    # ---- per-path softmax over nodes + weighted pooling ----
    a3 = a3 - jnp.max(a3, axis=1, keepdims=True)
    e = jnp.exp(a3)
    node_w = e / jnp.sum(e, axis=1, keepdims=True)                       # (TB*P, N, 1)
    path_fea = jnp.sum(node_w * x3, axis=1)                              # (TB*P, E)

    # ---- attnet, batched over all pooled path features ----
    h2 = jnp.maximum(
        jnp.dot(path_fea, wa1, preferred_element_type=jnp.float32) + ba1, 0.0)  # (TB*P, H)
    h23 = h2.reshape(TB, P, H)
    att = jnp.sum(h23 * wa2t, axis=-1, keepdims=True)                    # (TB, P, 1)

    # ---- per-sample softmax over paths + weighted sum -> user feature ----
    att = att - jnp.max(att, axis=1, keepdims=True)
    ea = jnp.exp(att)
    path_w = ea / jnp.sum(ea, axis=1, keepdims=True)                     # (TB, P, 1)
    pf3 = path_fea.reshape(TB, P, E)
    out_ref[...] = jnp.sum(path_w * pf3, axis=1)                         # (TB, E)


def attention_network_forward_batched(xb, packed_params, *, tile_b=8):
    """xb: (B, P, N, E) f32 -> (B, E) f32.  One pallas_call, batch grid axis."""
    B, P, N, E = xb.shape
    R, H = packed_params.shape
    tile_b = min(tile_b, B)
    assert B % tile_b == 0, "batch size must be divisible by tile_b"

    return pl.pallas_call(
        attention_kernel,
        out_shape=jax.ShapeDtypeStruct((B, E), jnp.float32),
        grid=(B // tile_b,),
        in_specs=[
            # x: step through the batch, one (tile_b, P, N, E) block per step.
            pl.BlockSpec((tile_b, P, N, E), lambda b: (b, 0, 0, 0)),
            # packed params: constant block index -> DMA'd once, stays resident.
            pl.BlockSpec((R, H), lambda b: (0, 0)),
        ],
        out_specs=pl.BlockSpec((tile_b, E), lambda b: (b, 0)),
        compiler_params=pltpu.CompilerParams(
            dimension_semantics=("parallel",)),
    )(xb, packed_params)


def attention_network_forward(x, packed_params):
    """x: (P, N, E) f32 -> user_fea: (E,) f32  (mirrors the PyTorch forward)."""
    return attention_network_forward_batched(x[None], packed_params, tile_b=1)[0]


def init_params(key, emb_dim, att_hidden_dim):
    """Deterministic PyTorch-Linear-style init (U(-1/sqrt(fan_in), 1/sqrt(fan_in)))."""
    ks = jax.random.split(key, 8)

    def lin(kw, kb, fan_in, fan_out):
        bound = 1.0 / float(fan_in) ** 0.5
        w = jax.random.uniform(kw, (fan_in, fan_out), jnp.float32, -bound, bound)
        b = jax.random.uniform(kb, (1, fan_out), jnp.float32, -bound, bound)
        return w, b

    w1, b1 = lin(ks[0], ks[1], emb_dim, att_hidden_dim)    # path_net.net[0]
    w2, b2 = lin(ks[2], ks[3], att_hidden_dim, 1)          # path_net.net[2]
    wa1, ba1 = lin(ks[4], ks[5], emb_dim, att_hidden_dim)  # attnet[0]
    wa2, ba2 = lin(ks[6], ks[7], att_hidden_dim, 1)        # attnet[2]
    return (w1, b1, w2, b2, wa1, ba1, wa2, ba2)


def pack_params(params):
    """Pack all live parameters into one (2E+8, H) f32 block (single DMA).

    Rows: [0:E) w1, [E:2E) wa1, 2E b1, 2E+1 ba1, 2E+2 w2^T, 2E+3 wa2^T.
    b2 / ba2 are intentionally dropped (inert under softmax).
    """
    w1, b1, w2, _b2, wa1, ba1, wa2, _ba2 = params
    E, H = w1.shape
    rows = 2 * E + 4
    rows_padded = ((rows + 7) // 8) * 8
    packed = jnp.zeros((rows_padded, H), jnp.float32)
    packed = packed.at[0:E, :].set(w1)
    packed = packed.at[E:2 * E, :].set(wa1)
    packed = packed.at[2 * E, :].set(b1.reshape(H))
    packed = packed.at[2 * E + 1, :].set(ba1.reshape(H))
    packed = packed.at[2 * E + 2, :].set(w2.reshape(H))
    packed = packed.at[2 * E + 3, :].set(wa2.reshape(H))
    return packed


def ref_forward(x, params):
    """Pure-JAX reference mirroring the PyTorch forward exactly (biases included)."""
    w1, b1, w2, b2, wa1, ba1, wa2, ba2 = params
    h = jnp.maximum(jnp.einsum('pne,eh->pnh', x, w1) + b1, 0.0)
    a = jnp.einsum('pnh,ho->pno', h, w2) + b2                # (P, N, 1)
    node_w = jax.nn.softmax(a, axis=1)                       # softmax over nodes (dim=0 per path)
    path_fea = jnp.sum(node_w * x, axis=1)                   # (P, E)
    h2 = jnp.maximum(path_fea @ wa1 + ba1, 0.0)              # (P, H)
    a2 = h2 @ wa2 + ba2                                      # (P, 1)
    path_w = jax.nn.softmax(a2, axis=0)                      # softmax over paths
    return jnp.sum(path_w * path_fea, axis=0)                # (E,)


if __name__ == "__main__":
    # path_num, nodes per path, emb_dim, att_hidden_dim; batch of users and batch tile.
    P, N, E, H = 8, 8, 32, 32
    B, TB = 16, 8

    key = jax.random.PRNGKey(0)
    k_x, k_p = jax.random.split(key)
    xb = jax.random.normal(k_x, (B, P, N, E), dtype=jnp.float32)
    params = init_params(k_p, E, H)
    packed = pack_params(params)

    # Batched forward (one pallas_call, grid over the batch).
    out = attention_network_forward_batched(xb, packed, tile_b=TB)
    out = jax.block_until_ready(out)
    ref = jax.vmap(lambda x: ref_forward(x, params))(xb)
    assert out.shape == (B, E)
    assert jnp.allclose(out, ref, atol=1e-5, rtol=1e-5), (out, ref)

    # Single-sample forward (matches the original module's forward signature).
    single = attention_network_forward(xb[0], packed)
    single = jax.block_until_ready(single)
    assert single.shape == (E,)
    assert jnp.allclose(single, ref[0], atol=1e-5, rtol=1e-5), (single, ref[0])

    print("KERNEL_OK")
</pallas_src>

<mosaic_0001>
module attributes {stable_mosaic.version = 11 : i64} {
  func.func @attention_kernel(%arg0: i32, %arg1: memref<8x8x8x32xf32, #tpu.memory_space<vmem>>, %arg2: memref<72x32xf32, #tpu.memory_space<vmem>>, %arg3: memref<8x32xf32, #tpu.memory_space<vmem>>) attributes {dimension_semantics = [#tpu.dimension_semantics<parallel>], iteration_bounds = array<i64: 2>, scalar_prefetch = 0 : i64, scratch_operands = 0 : i64, tpu.core_type = #tpu.core_type<tc>, window_params = [{transform_indices = @transform_0, window_bounds = array<i64: 8, 8, 8, 32>}, {pipeline_mode = #tpu.pipeline_mode<synchronous>, transform_indices = @transform_1, window_bounds = array<i64: 72, 32>}, {transform_indices = @transform_2, window_bounds = array<i64: 8, 32>}]} {
    %c0 = arith.constant 0 : index
    %c0_0 = arith.constant 0 : index
    %0 = vector.load %arg2[%c0, %c0_0] : memref<72x32xf32, #tpu.memory_space<vmem>>, vector<32x32xf32>
    %c32 = arith.constant 32 : index
    %c0_1 = arith.constant 0 : index
    %1 = vector.load %arg2[%c32, %c0_1] : memref<72x32xf32, #tpu.memory_space<vmem>>, vector<32x32xf32>
    %c64 = arith.constant 64 : index
    %c0_2 = arith.constant 0 : index
    %2 = vector.load %arg2[%c64, %c0_2] : memref<72x32xf32, #tpu.memory_space<vmem>>, vector<1x32xf32>
    %c65 = arith.constant 65 : index
    %c0_3 = arith.constant 0 : index
    %3 = vector.load %arg2[%c65, %c0_3] : memref<72x32xf32, #tpu.memory_space<vmem>>, vector<1x32xf32>
    %c66 = arith.constant 66 : index
    %c0_4 = arith.constant 0 : index
    %4 = vector.load %arg2[%c66, %c0_4] : memref<72x32xf32, #tpu.memory_space<vmem>>, vector<1x32xf32>
    %c67 = arith.constant 67 : index
    %c0_5 = arith.constant 0 : index
    %5 = vector.load %arg2[%c67, %c0_5] : memref<72x32xf32, #tpu.memory_space<vmem>>, vector<1x32xf32>
    %c0_6 = arith.constant 0 : index
    %c0_7 = arith.constant 0 : index
    %c0_8 = arith.constant 0 : index
    %c0_9 = arith.constant 0 : index
    %6 = vector.load %arg1[%c0_6, %c0_7, %c0_8, %c0_9] : memref<8x8x8x32xf32, #tpu.memory_space<vmem>>, vector<8x8x8x32xf32>
    %7 = vector.shape_cast %6 : vector<8x8x8x32xf32> to vector<64x8x32xf32>
    %8 = vector.shape_cast %6 : vector<8x8x8x32xf32> to vector<512x32xf32>
    %cst = arith.constant dense<0.000000e+00> : vector<512x32xf32>
    %9 = tpu.matmul %8, %0, %cst {dimension_numbers = #tpu.dot_dimension_numbers<[1], [0], [0], [1], [0, 0, 1, 1], [], []>} : vector<512x32xf32>, vector<32x32xf32>, vector<512x32xf32> -> vector<512x32xf32>
    %10 = vector.broadcast %2 : vector<1x32xf32> to vector<512x32xf32>
    %11 = arith.addf %9, %10 : vector<512x32xf32>
    %cst_10 = arith.constant 0.000000e+00 : f32
    %12 = vector.broadcast %cst_10 : f32 to vector<512x32xf32>
    %13 = arith.maximumf %11, %12 : vector<512x32xf32>
    %14 = vector.shape_cast %13 : vector<512x32xf32> to vector<64x8x32xf32>
    %15 = vector.shape_cast %4 : vector<1x32xf32> to vector<1x1x32xf32>
    %16 = vector.broadcast %15 : vector<1x1x32xf32> to vector<64x8x32xf32>
    %17 = arith.mulf %14, %16 : vector<64x8x32xf32>
    %cst_11 = arith.constant dense<0.000000e+00> : vector<64x8xf32>
    %18 = vector.multi_reduction <add>, %17, %cst_11 [2] : vector<64x8x32xf32> to vector<64x8xf32>
    %19 = vector.shape_cast %18 : vector<64x8xf32> to vector<64x8x1xf32>
    %cst_12 = arith.constant dense<0xFF800000> : vector<64x1xf32>
    %20 = vector.multi_reduction <maximumf>, %19, %cst_12 [1] : vector<64x8x1xf32> to vector<64x1xf32>
    %21 = vector.shape_cast %20 : vector<64x1xf32> to vector<64x1x1xf32>
    %22 = vector.broadcast %21 : vector<64x1x1xf32> to vector<64x8x1xf32>
    %23 = arith.subf %19, %22 : vector<64x8x1xf32>
    %24 = math.exp %23 : vector<64x8x1xf32>
    %cst_13 = arith.constant dense<0.000000e+00> : vector<64x1xf32>
    %25 = vector.multi_reduction <add>, %24, %cst_13 [1] : vector<64x8x1xf32> to vector<64x1xf32>
    %26 = vector.shape_cast %25 : vector<64x1xf32> to vector<64x1x1xf32>
    %27 = vector.broadcast %26 : vector<64x1x1xf32> to vector<64x8x1xf32>
    %28 = arith.divf %24, %27 : vector<64x8x1xf32>
    %29 = vector.broadcast %28 : vector<64x8x1xf32> to vector<64x8x32xf32>
    %30 = arith.mulf %29, %7 : vector<64x8x32xf32>
    %cst_14 = arith.constant dense<0.000000e+00> : vector<64x32xf32>
    %31 = vector.multi_reduction <add>, %30, %cst_14 [1] : vector<64x8x32xf32> to vector<64x32xf32>
    %cst_15 = arith.constant dense<0.000000e+00> : vector<64x32xf32>
    %32 = tpu.matmul %31, %1, %cst_15 {dimension_numbers = #tpu.dot_dimension_numbers<[1], [0], [0], [1], [0, 0, 1, 1], [], []>} : vector<64x32xf32>, vector<32x32xf32>, vector<64x32xf32> -> vector<64x32xf32>
    %33 = vector.broadcast %3 : vector<1x32xf32> to vector<64x32xf32>
    %34 = arith.addf %32, %33 : vector<64x32xf32>
    %cst_16 = arith.constant 0.000000e+00 : f32
    %35 = vector.broadcast %cst_16 : f32 to vector<64x32xf32>
    %36 = arith.maximumf %34, %35 : vector<64x32xf32>
    %37 = vector.shape_cast %36 : vector<64x32xf32> to vector<8x8x32xf32>
    %38 = vector.shape_cast %5 : vector<1x32xf32> to vector<1x1x32xf32>
    %39 = vector.broadcast %38 : vector<1x1x32xf32> to vector<8x8x32xf32>
    %40 = arith.mulf %37, %39 : vector<8x8x32xf32>
    %cst_17 = arith.constant dense<0.000000e+00> : vector<8x8xf32>
    %41 = vector.multi_reduction <add>, %40, %cst_17 [2] : vector<8x8x32xf32> to vector<8x8xf32>
    %42 = vector.shape_cast %41 : vector<8x8xf32> to vector<8x8x1xf32>
    %cst_18 = arith.constant dense<0xFF800000> : vector<8x1xf32>
    %43 = vector.multi_reduction <maximumf>, %42, %cst_18 [1] : vector<8x8x1xf32> to vector<8x1xf32>
    %44 = vector.shape_cast %43 : vector<8x1xf32> to vector<8x1x1xf32>
    %45 = vector.broadcast %44 : vector<8x1x1xf32> to vector<8x8x1xf32>
    %46 = arith.subf %42, %45 : vector<8x8x1xf32>
    %47 = math.exp %46 : vector<8x8x1xf32>
    %cst_19 = arith.constant dense<0.000000e+00> : vector<8x1xf32>
    %48 = vector.multi_reduction <add>, %47, %cst_19 [1] : vector<8x8x1xf32> to vector<8x1xf32>
    %49 = vector.shape_cast %48 : vector<8x1xf32> to vector<8x1x1xf32>
    %50 = vector.broadcast %49 : vector<8x1x1xf32> to vector<8x8x1xf32>
    %51 = arith.divf %47, %50 : vector<8x8x1xf32>
    %52 = vector.shape_cast %31 : vector<64x32xf32> to vector<8x8x32xf32>
    %53 = vector.broadcast %51 : vector<8x8x1xf32> to vector<8x8x32xf32>
    %54 = arith.mulf %53, %52 : vector<8x8x32xf32>
    %cst_20 = arith.constant dense<0.000000e+00> : vector<8x32xf32>
    %55 = vector.multi_reduction <add>, %54, %cst_20 [1] : vector<8x8x32xf32> to vector<8x32xf32>
    %c0_21 = arith.constant 0 : index
    %c0_22 = arith.constant 0 : index
    %56 = vector.load %arg3[%c0_21, %c0_22] : memref<8x32xf32, #tpu.memory_space<vmem>>, vector<8x32xf32>
    tpu.vector_store %arg3[%c0_21, %c0_22], %55 {strides = array<i32>} : memref<8x32xf32, #tpu.memory_space<vmem>>, vector<8x32xf32>,
    return
  }
  func.func @transform_0(%arg0: i32) -> (i32, i32, i32, i32) {
    %c0_i32 = arith.constant 0 : i32
    %c0_i32_0 = arith.constant 0 : i32
    %c0_i32_1 = arith.constant 0 : i32
    %c0_i32_2 = arith.constant 0 : i32
    return %arg0, %c0_i32, %c0_i32_0, %c0_i32_1 : i32, i32, i32, i32
  }
  func.func @transform_1(%arg0: i32) -> (i32, i32) {
    %c0_i32 = arith.constant 0 : i32
    %c0_i32_0 = arith.constant 0 : i32
    %c0_i32_1 = arith.constant 0 : i32
    return %c0_i32, %c0_i32_0 : i32, i32
  }
  func.func @transform_2(%arg0: i32) -> (i32, i32) {
    %c0_i32 = arith.constant 0 : i32
    %c0_i32_0 = arith.constant 0 : i32
    return %arg0, %c0_i32 : i32, i32
  }
}

</mosaic_0001>

<bundles_post_ra>
// kernel: tpu_custom_call.1
= control target key start
LH: loop header
LB: loop body
LE: loop exit
PB: predicated region body
PF: predicated region fallthrough
CT: control target
= control target key end

     0   :  { %7 = vsyncpa [#allocation3], 0  ;;  %s5976_s0 = inlined_call_operand.hbm [shape: f32[16,8,8,32], index: 0, kind: input, shape index: {}]   ;;  %s5977_s1 = inlined_call_operand.vmem [shape: f32[72,32], index: 1, kind: input, shape index: {}]   ;;  %s5978_s2 = inlined_call_operand.hbm [shape: f32[16,32], index: 2, kind: output, shape index: {}]  }
   0x1   :  { %9 = vsyncpa [#allocation3 + $0x1], 0 }
   0x2   :  { %10 = vsyncpa [#allocation4], 0 }
   0x3   :  { %12 = vsyncpa [#allocation4 + $0x1], 0  ;;  %s4184_s9 = smov 0   ;;  %s4186_s10 = smov 0  }
   0x4   :  { %s4188_s11 = smov 0   ;;  %s4190_s12 = smov 0  }
   0x5 LB: > { %s4205_s13 = sadd.s32 4294967295, %s4163_s12   ;;  %s3351_s14 = sadd.s32 4294967294, %s4163_s12   ;;  %s4163_s12 = sphi %s4190_s12, %s6139_s12   ;;  %s4159_s11 = sphi %s4188_s11, %s6138_s11   ;;  %s4155_s10 = sphi %s4186_s10, %s6137_s10   ;;  %s4151_s9 = sphi %s4184_s9, %s6136_s9  }
   0x6   : > { %s4209_s15 = sadd.s32 1, %s4163_s12   ;;  %s25_s16 = sadd.s32 1, %s4159_s11 }
   0x7   : > { %s22_s17 = ssub.s32 %s4163_s12, %s4209_s15  ;;  %p32_p0 = scmp.ne.s32.totalorder %s4159_s11, %s4155_s10 }
   0x8   : > { %p23_p1 = scmp.eq.s32.totalorder %s22_s17, 0  ;;  %p33_p2 = scmp.eq.s32.totalorder %s4163_s12, 0 }
   0x9   : > { %p38_p3 = scmp.ne.s32.totalorder %s4155_s10, %s4151_s9  ;;  %p39_p4 = scmp.eq.s32.totalorder %s4205_s13, 0 }
   0xa   : > { %s4221_s18 = scalar_select %p23_p1, %s4159_s11, %s25_s16  }
   0xb   : > { %p4223_p5 = por %p33_p2, %p32_p0  ;;  %p4227_p6 = por %p39_p4, %p38_p3 }
   0xc   : > { %p83_p7 = scmp.eq.s32.totalorder %s4205_s13, 1  ;;  %p89_p8 = scmp.eq.s32.totalorder %s3351_s14, 1 }
   0xd   : > { %p3679_p10 = scmp.lt.s32.totalorder %s4163_s12, 2  ;;  %s112_s23 = sand.u32 1, %s4159_s11  }
   0xe   : > { %p4234_p11 = por %p83_p7, %p32_p0  ;;  %p4238_p12 = por %p89_p8, %p38_p3 }
   0xf   : > { %s3442_s24 = sshll.u32 %s4163_s12, 13  ;;  %s3354_s25 = sshll.u32 %s112_s23, 9 }
  0x10   : > { %s6018_s21 = scalar_select %p4234_p11, 1, 0 }
  0x11   : > { %s6019_s22 = scalar_select %p4238_p12, 1, 0 }
  0x12   : > { %s4247_s28 = scalar_lea.hbm %s5976_s0, %s3442_s24  ;;  %s116_s29 = scalar_lea.vmem [#allocation2], %s3354_s25 }
  0x13   : > { %s124_s30 = sshll.u32 %s116_s29, 4  ;;  %p4251_p13 = pnand %p3679_p10, %p4223_p5  ;;  %s4255_s30 = int_to_ptr.vmem [resolvable:$true] %s124_s30 }
  0x14   : > { %s4257_s4 = scalar_lea.sflag [#allocation3], %s112_s23  ;;  %s4067_s5 = scalar_lea.hbm %s4247_s28, 8192 }
  0x15   : > { %p4068_p0 = scmp.ne.s32.totalorder %s4247_s28, %s4067_s5  ;;  %p4069_p1 = pneg %p4251_p13 }
  0x16   : > { %s4072_s8 = scalar_lea.hbm %s5976_s0, 16384  ;;  %p4073_p4 = scmp.lt.u32.totalorder %s4247_s28, %s5976_s0 }
  0x17   : > { %p4070_p2 = pnand %p4069_p1, %p4068_p0  ;;  %p4074_p5 = scmp.lt.u32.totalorder %s4072_s8, %s4067_s5 }
  0x18   : > { %p4076_p8 = scmp.lt.u32.totalorder %s4067_s5, %s4247_s28 }
  0x19   : > { %p4071_p3 = pneg %p4070_p2  ;;  %p4075_p7 = por %p4074_p5, %p4073_p4 }
  0x1b   : > { %p4077_p10 = por %p4076_p8, %p4075_p7 }
  0x1d   : > { %p4078_p9 = pnand %p4077_p10, %p4071_p3 }
  0x1f   : > { %4081 = shalt.err (!%p4078_p9)
}
  0x20   : > { %s4082_s17 = scalar_lea.vmem %s4255_s30, 8192  ;;  %s4165_s19 = smov [#allocation2]  }
  0x21   : > { %p4083_p0 = scmp.ne.s32.totalorder %s4255_s30, %s4082_s17  ;;  %s4087_s23 = sshll.u32 %s4165_s19, 4  ;;  %s4088_s23 = int_to_ptr.vmem [resolvable:$false] %s4087_s23 }
  0x22   : > { %s4089_s24 = scalar_lea.vmem %s4088_s23, 16384  ;;  %p4090_p11 = scmp.lt.s32.totalorder %s4255_s30, %s4088_s23 }
  0x23   : > { %p4085_p2 = pnand %p4083_p0, %p4069_p1  ;;  %p4091_p4 = scmp.lt.s32.totalorder %s4089_s24, %s4082_s17 }
  0x25   : > { %p4086_p12 = pneg %p4085_p2  ;;  %p4092_p5 = por %p4091_p4, %p4090_p11 }
  0x27   : > { %p4093_p7 = pnand %p4092_p5, %p4086_p12 }
  0x29   : > { %4096 = shalt.err (!%p4093_p7)
}
  0x2a   : > { %s4166_s25 = smov 128   ;;  %s4167_s26 = smov 8  }
  0x2b   : > { %3674 = dma.hbm_to_vmem [thread:$0]  (!%p4251_p13), %s4247_s28, 8192, %s4255_s30, %s4257_s4, %s4166_s25, %s4166_s25, %s4167_s26  }
  0x2c   : > { %p3358_p9 = scmp.ge.s32.totalorder %s4163_s12, 1  ;;  %p132_p1 = scmp.lt.s32.totalorder %s4163_s12, 3 }
  0x2e   : > { %p133_p3 = pnand %p3358_p9, %p132_p1 }
  0x30   : > { %136 = sbr.rel (%p133_p3) target bundleno = 1305 (0x519), region = 28 }
  0x37   : > { %s4288_s27 = sand.u32 1, %s4155_s10  }
  0x38   : > { %s3359_s29 = sshll.u32 %s4288_s27, 9  ;;  %s139_s5 = scalar_lea.sflag [#allocation3], %s4288_s27 }
  0x39   : > { %s4292_s6 = scalar_lea.vmem [#allocation2], %s3359_s29 }
  0x3a   : > { %4142 = dma.done.wait (%p4227_p6), %s139_s5, 8192  }
  0x3b   : > { %4144 = vsyncadd (%p4227_p6), %s139_s5, 4294959104  ;;  %vm244_vm0 = vcmask 261120   ;;  %v164_v0 = vld [vmem:[%s5977_s1] sm:$0xff]  ;;  %v165_v1 = vld [vmem:[%s5977_s1 + $0x8] sm:$0xff]  ;;  %vm2814_vm1 = vcmask 1041409   ;;  %vm2816_vm2 = vcmask 1042434  }
  0x3c   : > { %v166_v2 = vld [vmem:[%s5977_s1 + $0x10] sm:$0xff]  ;;  %v3647_v3 = vpack.c.bf16 %v165_v1, %v164_v0  ;;  %v167_v4 = vld [vmem:[%s5977_s1 + $0x18] sm:$0xff]  ;;  %v176_v5 = vld [vmem:[%s4292_s6] sm:$0xff]  ;;  %vm2818_vm3 = vcmask 1043459   ;;  %vm2820_vm4 = vcmask 1044484   ;;  %vm2822_vm5 = vcmask 1045509  }
  0x3d   : > { %v212_v6 = vld [vmem:[%s4292_s6 + $0x120] sm:$0xff]  ;;  %v3651_v7 = vpack.c.bf16 %v167_v4, %v166_v2  ;;  %3531 = vmatprep.mubr.msk.f32.mxu0 %vm244_vm0, %v176_v5  ;;  %v177_v8 = vld [vmem:[%s4292_s6 + $0x8] sm:$0xff]  ;;  %v214_v10 = vld [vmem:[%s4292_s6 + $0x130] sm:$0xff]  ;;  %vm2824_vm6 = vcmask 1046534   ;;  %vm2826_vm7 = vcmask 1047559   ;;  %s3360_s14 = sshll.u32 %s4288_s27, 3 }
  0x3e   : > { %3585 = vmatprep.mubr.msk.f32.mxu1 %vm244_vm0, %v212_v6  ;;  %3648 = vmatprep.subr.bf16.mxu0 %v3647_v3  ;;  %v213_v9 = vld [vmem:[%s4292_s6 + $0x128] sm:$0xff]  ;;  %v178_v11 = vld [vmem:[%s4292_s6 + $0x10] sm:$0xff]  ;;  %v215_v12 = vld [vmem:[%s4292_s6 + $0x138] sm:$0xff]  ;;  %s3438_s20 = sshll.u32 %s4205_s13, 7  ;;  %s162_s16 = scalar_lea.vmem [#allocation5], %s3360_s14 }
  0x3f   : > { %3663 = vmatprep.subr.bf16.mxu1 %v3647_v3  ;;  %3650 = vmatpush3.bf16.msra.mxu0 %v3647_v3  ;;  %v179_v13 = vld [vmem:[%s4292_s6 + $0x18] sm:$0xff]  ;;  %v216_v14 = vld [vmem:[%s4292_s6 + $0x140] sm:$0xff]  ;;  %v217_v16 = vld [vmem:[%s4292_s6 + $0x148] sm:$0xff]  ;;  %s3281_s17 = sshll.u32 %s162_s16, 4  ;;  %s5930_s24 = scalar_lea.hbm %s5978_s2, %s3438_s20  ;;  %s5932_s17 = int_to_ptr.vmem [resolvable:$true] %s3281_s17 }
  0x40   : > { %3665 = vmatpush3.bf16.msra.mxu1 %v3647_v3  ;;  %3652 = vmatprep.subr.bf16.mxu0 %v3651_v7  ;;  %v180_v15 = vld [vmem:[%s4292_s6 + $0x20] sm:$0xff]  ;;  %v181_v17 = vld [vmem:[%s4292_s6 + $0x28] sm:$0xff]  ;;  %v182_v18 = vld [vmem:[%s4292_s6 + $0x30] sm:$0xff]  ;;  %s3268_s13 = scalar_lea.sflag [#allocation4], %s4288_s27  ;;  %s4097_s25 = scalar_lea.vmem %s5932_s17, 128 }
  0x41   : > { %3664 = vmatprep.subr.bf16.mxu1 %v3651_v7  ;;  %v218_v19 = vld [vmem:[%s4292_s6 + $0x150] sm:$0xff]  ;;  %v183_v20 = vld [vmem:[%s4292_s6 + $0x38] sm:$0xff]  ;;  %v184_v22 = vld [vmem:[%s4292_s6 + $0x40] sm:$0xff]  ;;  %p4098_p6 = scmp.ne.s32.totalorder %s5932_s17, %s4097_s25  ;;  %p6133_p11 = scmp.ne.s32.totalorder %s6018_s21, 0 }
  0x42   : > { %v219_v21 = vld [vmem:[%s4292_s6 + $0x158] sm:$0xff]  ;;  %v220_v23 = vld [vmem:[%s4292_s6 + $0x160] sm:$0xff]  ;;  %v185_v24 = vld [vmem:[%s4292_s6 + $0x48] sm:$0xff]  ;;  %s4168_s26 = smov [#allocation5]  }
  0x43   : > { %3654 = vmatpush3.bf16.msra.mxu0 %v3651_v7  ;;  %v221_v25 = vld [vmem:[%s4292_s6 + $0x168] sm:$0xff]  ;;  %v186_v26 = vld [vmem:[%s4292_s6 + $0x50] sm:$0xff]  ;;  %v187_v28 = vld [vmem:[%s4292_s6 + $0x58] sm:$0xff]  ;;  %p4099_p12 = pnand %p4098_p6, %p6133_p11  ;;  %s4101_s29 = sshll.u32 %s4168_s26, 4  ;;  %s4102_s29 = int_to_ptr.vmem [resolvable:$false] %s4101_s29 }
  0x44   : > { %3666 = vmatpush3.bf16.msra.mxu1 %v3651_v7  ;;  %v222_v27 = vld [vmem:[%s4292_s6 + $0x170] sm:$0xff]  ;;  %v223_v29 = vld [vmem:[%s4292_s6 + $0x178] sm:$0xff]  ;;  %v188_v30 = vld [vmem:[%s4292_s6 + $0x60] sm:$0xff]  ;;  %s4103_s5 = scalar_lea.vmem %s4102_s29, 256  ;;  %p4104_p8 = scmp.lt.s32.totalorder %s5932_s17, %s4102_s29 }
  0x45   : > { %v224_v31 = vld [vmem:[%s4292_s6 + $0x180] sm:$0xff]  ;;  %v189_v32 = vld [vmem:[%s4292_s6 + $0x68] sm:$0xff]  ;;  %v190_v34 = vld [vmem:[%s4292_s6 + $0x70] sm:$0xff]  ;;  %p4100_p13 = pneg %p4099_p12  ;;  %p4105_p10 = scmp.lt.s32.totalorder %s4103_s5, %s4097_s25 }
  0x46   : > { %3532 = vmatmul.mubr.msk.f32.vlgmr.msra.gmra.mrb[0].mxu0 %vm244_vm0, %v177_v8  ;;  %v225_v33 = vld [vmem:[%s4292_s6 + $0x188] sm:$0xff]  ;;  %v226_v35 = vld [vmem:[%s4292_s6 + $0x190] sm:$0xff]  ;;  %v191_v36 = vld [vmem:[%s4292_s6 + $0x78] sm:$0xff] }
  0x47   : > { %3586 = vmatmul.mubr.msk.f32.vlgmr.msra.gmra.mrb[0].mxu1 %vm244_vm0, %v213_v9  ;;  %3534 = vmatprep.mubr.msk.f32.mxu0 %vm244_vm0, %v178_v11  ;;  %v227_v37 = vld [vmem:[%s4292_s6 + $0x198] sm:$0xff]  ;;  %v228_v38 = vld [vmem:[%s4292_s6 + $0x1a0] sm:$0xff]  ;;  %v229_v40 = vld [vmem:[%s4292_s6 + $0x1a8] sm:$0xff]  ;;  %p4106_p0 = por %p4105_p10, %p4104_p8 }
  0x48   : > { %3588 = vmatprep.mubr.msk.f32.mxu1 %vm244_vm0, %v214_v10  ;;  %v192_v39 = vld [vmem:[%s4292_s6 + $0x80] sm:$0xff]  ;;  %v193_v41 = vld [vmem:[%s4292_s6 + $0x88] sm:$0xff]  ;;  %v230_v42 = vld [vmem:[%s4292_s6 + $0x1b0] sm:$0xff] }
  0x49   : > { %v194_v43 = vld [vmem:[%s4292_s6 + $0x90] sm:$0xff]  ;;  %v231_v44 = vld [vmem:[%s4292_s6 + $0x1b8] sm:$0xff]  ;;  %v232_v46 = vld [vmem:[%s4292_s6 + $0x1c0] sm:$0xff]  ;;  %p4107_p2 = pnand %p4106_p0, %p4100_p13 }
  0x4a   : > { %3535 = vmatmul.mubr.msk.f32.gmra.mrb[2].mxu0 %vm244_vm0, %v179_v13  ;;  %v195_v45 = vld [vmem:[%s4292_s6 + $0x98] sm:$0xff]  ;;  %v196_v47 = vld [vmem:[%s4292_s6 + $0xa0] sm:$0xff]  ;;  %v233_v48 = vld [vmem:[%s4292_s6 + $0x1c8] sm:$0xff] }
  0x4b   : > { %3589 = vmatmul.mubr.msk.f32.gmra.mrb[2].mxu1 %vm244_vm0, %v215_v12  ;;  %3537 = vmatprep.mubr.msk.f32.mxu0 %vm244_vm0, %v180_v15  ;;  %v197_v49 = vld [vmem:[%s4292_s6 + $0xa8] sm:$0xff]  ;;  %v198_v50 = vld [vmem:[%s4292_s6 + $0xb0] sm:$0xff]  ;;  %v199_v52 = vld [vmem:[%s4292_s6 + $0xb8] sm:$0xff] }
  0x4c   : > { %3591 = vmatprep.mubr.msk.f32.mxu1 %vm244_vm0, %v216_v14  ;;  %v234_v51 = vld [vmem:[%s4292_s6 + $0x1d0] sm:$0xff]  ;;  %v235_v53 = vld [vmem:[%s4292_s6 + $0x1d8] sm:$0xff]  ;;  %v200_v54 = vld [vmem:[%s4292_s6 + $0xc0] sm:$0xff] }
  0x4d   : > { %v236_v55 = vld [vmem:[%s4292_s6 + $0x1e0] sm:$0xff]  ;;  %v201_v56 = vld [vmem:[%s4292_s6 + $0xc8] sm:$0xff]  ;;  %v202_v58 = vld [vmem:[%s4292_s6 + $0xd0] sm:$0xff] }
  0x4e   : > { %3538 = vmatmul.mubr.msk.f32.gmra.mrb[4].mxu0 %vm244_vm0, %v181_v17  ;;  %v237_v57 = vld [vmem:[%s4292_s6 + $0x1e8] sm:$0xff]  ;;  %v238_v59 = vld [vmem:[%s4292_s6 + $0x1f0] sm:$0xff]  ;;  %v203_v60 = vld [vmem:[%s4292_s6 + $0xd8] sm:$0xff] }
  0x4f   : > { %3592 = vmatmul.mubr.msk.f32.gmra.mrb[4].mxu1 %vm244_vm0, %v217_v16  ;;  %3540 = vmatprep.mubr.msk.f32.mxu0 %vm244_vm0, %v182_v18  ;;  %v239_v61 = vld [vmem:[%s4292_s6 + $0x1f8] sm:$0xff]  ;;  %v204_v62 = vld [vmem:[%s4292_s6 + $0xe0] sm:$0xff]  ;;  %v205_v63 = vld [vmem:[%s4292_s6 + $0xe8] sm:$0xff] }
  0x50   : > { %3594 = vmatprep.mubr.msk.f32.mxu1 %vm244_vm0, %v218_v19  ;;  %v206_v0 = vld [vmem:[%s4292_s6 + $0xf0] sm:$0xff]  ;;  %v207_v1 = vld [vmem:[%s4292_s6 + $0xf8] sm:$0xff]  ;;  %v208_v2 = vld [vmem:[%s4292_s6 + $0x100] sm:$0xff] }
  0x51   : > { %v209_v3 = vld [vmem:[%s4292_s6 + $0x108] sm:$0xff]  ;;  %v210_v4 = vld [vmem:[%s4292_s6 + $0x110] sm:$0xff]  ;;  %v211_v5 = vld [vmem:[%s4292_s6 + $0x118] sm:$0xff] }
  0x52   : > { %3541 = vmatmul.mubr.msk.f32.gmra.mrb[6].mxu0 %vm244_vm0, %v183_v20  ;;  %v4441_v6 = vld [vmem:[%s5977_s1 + $0x40] ss:$0 sm:$0xff]  ;;  %v4450_v15 = vld [vmem:[%s5977_s1 + $0x42] ss:$0 sm:$0xff] }
  0x53   : > { %3595 = vmatmul.mubr.msk.f32.gmra.mrb[6].mxu1 %vm244_vm0, %v219_v21  ;;  %3543 = vmatprep.mubr.msk.f32.mxu0 %vm244_vm0, %v184_v22 }
  0x54   : > { %3597 = vmatprep.mubr.msk.f32.mxu1 %vm244_vm0, %v220_v23 }
  0x56   : > { %3544 = vmatmul.mubr.msk.f32.gmra.mrb[8].mxu0 %vm244_vm0, %v185_v24 }
  0x57   : > { %3598 = vmatmul.mubr.msk.f32.gmra.mrb[8].mxu1 %vm244_vm0, %v221_v25  ;;  %3546 = vmatprep.mubr.msk.f32.mxu0 %vm244_vm0, %v186_v26 }
  0x58   : > { %3600 = vmatprep.mubr.msk.f32.mxu1 %vm244_vm0, %v222_v27 }
  0x5a   : > { %3547 = vmatmul.mubr.msk.f32.gmra.mrb[10].mxu0 %vm244_vm0, %v187_v28 }
  0x5b   : > { %3601 = vmatmul.mubr.msk.f32.gmra.mrb[10].mxu1 %vm244_vm0, %v223_v29  ;;  %3549 = vmatprep.mubr.msk.f32.mxu0 %vm244_vm0, %v188_v30 }
  0x5c   : > { %3603 = vmatprep.mubr.msk.f32.mxu1 %vm244_vm0, %v224_v31 }
  0x5e   : > { %3550 = vmatmul.mubr.msk.f32.gmra.mrb[12].mxu0 %vm244_vm0, %v189_v32 }
  0x5f   : > { %3604 = vmatmul.mubr.msk.f32.gmra.mrb[12].mxu1 %vm244_vm0, %v225_v33  ;;  %3552 = vmatprep.mubr.msk.f32.mxu0 %vm244_vm0, %v190_v34 }
  0x60   : > { %3606 = vmatprep.mubr.msk.f32.mxu1 %vm244_vm0, %v226_v35 }
  0x62   : > { %3553 = vmatmul.mubr.msk.f32.gmra.mrb[14].mxu0 %vm244_vm0, %v191_v36 }
  0x63   : > { %3607 = vmatmul.mubr.msk.f32.gmra.mrb[14].mxu1 %vm244_vm0, %v227_v37  ;;  %3555 = vmatprep.mubr.msk.f32.mxu0 %vm244_vm0, %v192_v39 }
  0x64   : > { %3609 = vmatprep.mubr.msk.f32.mxu1 %vm244_vm0, %v228_v38 }
  0x66   : > { %3556 = vmatmul.mubr.msk.f32.gmra.mrb[16].mxu0 %vm244_vm0, %v193_v41 }
  0x67   : > { %3610 = vmatmul.mubr.msk.f32.gmra.mrb[16].mxu1 %vm244_vm0, %v229_v40  ;;  %3558 = vmatprep.mubr.msk.f32.mxu0 %vm244_vm0, %v194_v43 }
  0x68   : > { %3612 = vmatprep.mubr.msk.f32.mxu1 %vm244_vm0, %v230_v42 }
  0x6a   : > { %3559 = vmatmul.mubr.msk.f32.gmra.mrb[18].mxu0 %vm244_vm0, %v195_v45 }
  0x6b   : > { %3613 = vmatmul.mubr.msk.f32.gmra.mrb[18].mxu1 %vm244_vm0, %v231_v44  ;;  %3561 = vmatprep.mubr.msk.f32.mxu0 %vm244_vm0, %v196_v47 }
  0x6c   : > { %3615 = vmatprep.mubr.msk.f32.mxu1 %vm244_vm0, %v232_v46 }
  0x6e   : > { %3562 = vmatmul.mubr.msk.f32.gmra.mrb[20].mxu0 %vm244_vm0, %v197_v49 }
  0x6f   : > { %3616 = vmatmul.mubr.msk.f32.gmra.mrb[20].mxu1 %vm244_vm0, %v233_v48  ;;  %3564 = vmatprep.mubr.msk.f32.mxu0 %vm244_vm0, %v198_v50 }
  0x70   : > { %3618 = vmatprep.mubr.msk.f32.mxu1 %vm244_vm0, %v234_v51 }
  0x72   : > { %3565 = vmatmul.mubr.msk.f32.gmra.mrb[22].mxu0 %vm244_vm0, %v199_v52 }
  0x73   : > { %3619 = vmatmul.mubr.msk.f32.gmra.mrb[22].mxu1 %vm244_vm0, %v235_v53  ;;  %3567 = vmatprep.mubr.msk.f32.mxu0 %vm244_vm0, %v200_v54 }
  0x74   : > { %3621 = vmatprep.mubr.msk.f32.mxu1 %vm244_vm0, %v236_v55 }
  0x76   : > { %3568 = vmatmul.mubr.msk.f32.gmra.mrb[24].mxu0 %vm244_vm0, %v201_v56 }
  0x77   : > { %3622 = vmatmul.mubr.msk.f32.gmra.mrb[24].mxu1 %vm244_vm0, %v237_v57  ;;  %3570 = vmatprep.mubr.msk.f32.mxu0 %vm244_vm0, %v202_v58 }
  0x78   : > { %3624 = vmatprep.mubr.msk.f32.mxu1 %vm244_vm0, %v238_v59 }
  0x7a   : > { %3571 = vmatmul.mubr.msk.f32.gmra.mrb[26].mxu0 %vm244_vm0, %v203_v60 }
  0x7b   : > { %3625 = vmatmul.mubr.msk.f32.gmra.mrb[26].mxu1 %vm244_vm0, %v239_v61  ;;  %3573 = vmatprep.mubr.msk.f32.mxu0 %vm244_vm0, %v204_v62 }
  0x7e   : > { %3574 = vmatmul.mubr.msk.f32.gmra.mrb[28].mxu0 %vm244_vm0, %v205_v63 }
  0x7f   : > { %3576 = vmatprep.mubr.msk.f32.mxu0 %vm244_vm0, %v206_v0 }
  0x82   : > { %3577 = vmatmul.mubr.msk.f32.gmra.mrb[30].mxu0 %vm244_vm0, %v207_v1 }
  0x83   : > { %3579 = vmatprep.mubr.msk.f32.mxu0 %vm244_vm0, %v208_v2 }
  0x86   : > { %3580 = vmatmul.mubr.msk.f32.gmra.mrb[32].mxu0 %vm244_vm0, %v209_v3 }
  0x87   : > { %3582 = vmatprep.mubr.msk.f32.mxu0 %vm244_vm0, %v210_v4 }
  0x8a   : > { %3583 = vmatmul.mubr.msk.f32.gmra.mrb[34].mxu0 %vm244_vm0, %v211_v5 }
 0x119   : > { %v3533_v7 = vpop.f32.mrb[0].mxu0 }
 0x11a   : > { %v3587_v8 = vpop.f32.mrb[0].mxu1  ;;  %v509_v9 = vadd.f32 %v3533_v7, %v4441_v6  ;;  %v503_v11 = vpop.f32.mrb[1].mxu0 }
 0x11b   : > { %v689_v10 = vadd.f32 %v3587_v8, %v4441_v6  ;;  %v683_v12 = vpop.f32.mrb[1].mxu1  ;;  %v504_v13 = vadd.f32 %v4441_v6, %v503_v11 }
 0x11c   : > { %v684_v14 = vadd.f32 %v4441_v6, %v683_v12  ;;  %v823_v16 = vmax.f32 %v509_v9, 0.0 }
 0x11d   : > { %v859_v17 = vmax.f32 %v689_v10, 0.0  ;;  %v822_v18 = vmax.f32 %v504_v13, 0.0  ;;  %v3536_v21 = vpop.f32.mrb[2].mxu0 }
 0x11e   : > { %v858_v19 = vmax.f32 %v684_v14, 0.0  ;;  %v3590_v20 = vpop.f32.mrb[2].mxu1  ;;  %v519_v23 = vadd.f32 %v3536_v21, %v4441_v6  ;;  %v891_v26 = vmul.f32 %v4450_v15, %v823_v16  ;;  %v513_v27 = vpop.f32.mrb[3].mxu0 }
 0x11f   : > { %v699_v22 = vadd.f32 %v3590_v20, %v4441_v6  ;;  %v693_v24 = vpop.f32.mrb[3].mxu1  ;;  %v927_v25 = vmul.f32 %v4450_v15, %v859_v17  ;;  %v514_v28 = vadd.f32 %v4441_v6, %v513_v27  ;;  %v890_v30 = vmul.f32 %v4450_v15, %v822_v18 }
 0x120   : > { %v926_v29 = vmul.f32 %v4450_v15, %v858_v19  ;;  %v825_v32 = vmax.f32 %v519_v23, 0.0  ;;  %v957_v34 = vsel %vm244_vm0, %v891_v26, 0.0  ;;  %v694_v42 = vadd.f32 %v4441_v6, %v693_v24 }
 0x121   : > { %v861_v31 = vmax.f32 %v699_v22, 0.0  ;;  %v1065_v33 = vsel %vm244_vm0, %v927_v25, 0.0  ;;  %958 = vadd.xlane.f32.xlu0 %v957_v34  ;;  %v3539_v36 = vpop.f32.mrb[4].mxu0  ;;  %v824_v43 = vmax.f32 %v514_v28, 0.0  ;;  %v954_v45 = vsel %vm244_vm0, %v890_v30, 0.0 }
 0x122   : > { %1066 = vadd.xlane.f32.xlu1 %v1065_v33  ;;  %v3593_v35 = vpop.f32.mrb[4].mxu1  ;;  %v523_v38 = vpop.f32.mrb[5].mxu0  ;;  %v893_v39 = vmul.f32 %v4450_v15, %v825_v32  ;;  %v1062_v44 = vsel %vm244_vm0, %v926_v29, 0.0  ;;  %v860_v56 = vmax.f32 %v694_v42, 0.0  ;;  %v529_v57 = vadd.f32 %v3539_v36, %v4441_v6 }
 0x123   : > { %v703_v37 = vpop.f32.mrb[5].mxu1  ;;  %v929_v40 = vmul.f32 %v4450_v15, %v861_v31  ;;  %v892_v59 = vmul.f32 %v4450_v15, %v824_v43  ;;  %v709_v4 = vadd.f32 %v3593_v35, %v4441_v6  ;;  %v524_v18 = vadd.f32 %v4441_v6, %v523_v38 }
 0x124   : > { %v704_v41 = vadd.f32 %v4441_v6, %v703_v37  ;;  %v963_v50 = vsel %vm244_vm0, %v893_v39, 0.0  ;;  %v827_v5 = vmax.f32 %v529_v57, 0.0  ;;  %v928_v8 = vmul.f32 %v4450_v15, %v860_v56 }
 0x125   : > { %955 = vadd.xlane.f32.xlu0 %v954_v45  ;;  %v3542_v47 = vpop.f32.mrb[6].mxu0  ;;  %v1071_v52 = vsel %vm244_vm0, %v929_v40, 0.0  ;;  %v960_v7 = vsel %vm244_vm0, %v892_v59, 0.0  ;;  %v863_v19 = vmax.f32 %v709_v4, 0.0  ;;  %v826_v29 = vmax.f32 %v524_v18, 0.0 }
 0x126   : > { %v862_v46 = vmax.f32 %v704_v41, 0.0  ;;  %1063 = vadd.xlane.f32.xlu1 %v1062_v44  ;;  %v3596_v48 = vpop.f32.mrb[6].mxu1  ;;  %v539_v49 = vadd.f32 %v3542_v47, %v4441_v6  ;;  %v533_v51 = vpop.f32.mrb[7].mxu0  ;;  %v1068_v20 = vsel %vm244_vm0, %v928_v8, 0.0  ;;  %v895_v21 = vmul.f32 %v4450_v15, %v827_v5 }
 0x127   : > { %v719_v53 = vadd.f32 %v3596_v48, %v4441_v6  ;;  %v713_v54 = vpop.f32.mrb[7].mxu1  ;;  %v534_v30 = vadd.f32 %v4441_v6, %v533_v51  ;;  %v931_v33 = vmul.f32 %v4450_v15, %v863_v19  ;;  %v894_v45 = vmul.f32 %v4450_v15, %v826_v29 }
 0x128   : > { %v930_v55 = vmul.f32 %v4450_v15, %v862_v46  ;;  %v829_v58 = vmax.f32 %v539_v49, 0.0  ;;  %v969_v32 = vsel %vm244_vm0, %v895_v21, 0.0  ;;  %v714_v41 = vadd.f32 %v4441_v6, %v713_v54 }
 0x129   : > { %1072 = vadd.xlane.f32.xlu0 %v1071_v52  ;;  %v3545_v60 = vpop.f32.mrb[8].mxu0  ;;  %v865_v62 = vmax.f32 %v719_v53, 0.0  ;;  %v828_v42 = vmax.f32 %v534_v30, 0.0  ;;  %v1077_v44 = vsel %vm244_vm0, %v931_v33, 0.0 }
 0x12a   : > { %964 = vadd.xlane.f32.xlu1 %v963_v50  ;;  %v3599_v61 = vpop.f32.mrb[8].mxu1  ;;  %v1074_v63 = vsel %vm244_vm0, %v930_v55, 0.0  ;;  %v549_v0 = vadd.f32 %v3545_v60, %v4441_v6  ;;  %v543_v1 = vpop.f32.mrb[9].mxu0  ;;  %v897_v2 = vmul.f32 %v4450_v15, %v829_v58  ;;  %v864_v53 = vmax.f32 %v714_v41, 0.0 }
 0x12b   : > { %v723_v3 = vpop.f32.mrb[9].mxu1  ;;  %v729_v13 = vadd.f32 %v3599_v61, %v4441_v6  ;;  %v933_v14 = vmul.f32 %v4450_v15, %v865_v62  ;;  %v544_v54 = vadd.f32 %v4441_v6, %v543_v1  ;;  %v966_v55 = vsel %vm244_vm0, %v894_v45, 0.0 }
 0x12c   : > { %v831_v11 = vmax.f32 %v549_v0, 0.0  ;;  %v975_v12 = vsel %vm244_vm0, %v897_v2, 0.0  ;;  %v724_v31 = vadd.f32 %v4441_v6, %v723_v3  ;;  %v896_v56 = vmul.f32 %v4450_v15, %v828_v42 }
 0x12d   : > { %1075 = vadd.xlane.f32.xlu0 %v1074_v63  ;;  %v3548_v9 = vpop.f32.mrb[10].mxu0  ;;  %v867_v24 = vmax.f32 %v729_v13, 0.0  ;;  %v1083_v25 = vsel %vm244_vm0, %v933_v14, 0.0  ;;  %v830_v0 = vmax.f32 %v544_v54, 0.0  ;;  %v932_v1 = vmul.f32 %v4450_v15, %v864_v53 }
 0x12e   : > { %961 = vadd.xlane.f32.xlu1 %v960_v7  ;;  %v3602_v10 = vpop.f32.mrb[10].mxu1  ;;  %v553_v16 = vpop.f32.mrb[11].mxu0  ;;  %v899_v26 = vmul.f32 %v4450_v15, %v831_v11  ;;  %v559_v37 = vadd.f32 %v3548_v9, %v4441_v6  ;;  %v866_v43 = vmax.f32 %v724_v31, 0.0  ;;  %v972_v4 = vsel %vm244_vm0, %v896_v56, 0.0 }
 0x12f   : > { %v733_v17 = vpop.f32.mrb[11].mxu1  ;;  %v935_v38 = vmul.f32 %v4450_v15, %v867_v24  ;;  %v739_v50 = vadd.f32 %v3602_v10, %v4441_v6  ;;  %v554_v2 = vadd.f32 %v4441_v6, %v553_v16  ;;  %v1080_v18 = vsel %vm244_vm0, %v932_v1, 0.0 }
 0x130   : > { %v981_v36 = vsel %vm244_vm0, %v899_v26, 0.0  ;;  %v833_v48 = vmax.f32 %v559_v37, 0.0  ;;  %v934_v57 = vmul.f32 %v4450_v15, %v866_v43  ;;  %v734_v3 = vadd.f32 %v4441_v6, %v733_v17 }
 0x131   : > { %976 = vadd.xlane.f32.xlu0 %v975_v12  ;;  %v3551_v22 = vpop.f32.mrb[12].mxu0  ;;  %v1089_v49 = vsel %vm244_vm0, %v935_v38, 0.0  ;;  %v869_v60 = vmax.f32 %v739_v50, 0.0  ;;  %v832_v16 = vmax.f32 %v554_v2, 0.0  ;;  %v898_v19 = vmul.f32 %v4450_v15, %v830_v0 }
 0x132   : > { %1069 = vadd.xlane.f32.xlu1 %v1068_v20  ;;  %v4486_v23 = vpop.f32.mrb[12].mxu1  ;;  %v4490_v27 = vpop.f32.mrb[13].mxu0  ;;  %v901_v61 = vmul.f32 %v4450_v15, %v833_v48  ;;  %v1086_v5 = vsel %vm244_vm0, %v934_v57, 0.0  ;;  %v569_v7 = vadd.f32 %v3551_v22, %v4441_v6  ;;  %v868_v17 = vmax.f32 %v734_v3, 0.0 }
 0x133   : > { %v743_v28 = vpop.f32.mrb[13].mxu1  ;;  %v937_v12 = vmul.f32 %v4450_v15, %v869_v60  ;;  %v749_v30 = vadd.f32 %v4486_v23, %v4441_v6  ;;  %v978_v31 = vsel %vm244_vm0, %v898_v19, 0.0  ;;  %v900_v33 = vmul.f32 %v4450_v15, %v832_v16 }
 0x134   : > { %v987_v10 = vsel %vm244_vm0, %v901_v61, 0.0  ;;  %v744_v11 = vadd.f32 %v4441_v6, %v743_v28  ;;  %v835_v20 = vmax.f32 %v569_v7, 0.0  ;;  %v564_v45 = vadd.f32 %v4441_v6, %v4490_v27 }
 0x135   : > { %1084 = vadd.xlane.f32.xlu0 %v1083_v25  ;;  %v4496_v34 = vpop.f32.mrb[14].mxu0  ;;  %v1095_v25 = vsel %vm244_vm0, %v937_v12, 0.0 }
 0x136   : > { %970 = vadd.xlane.f32.xlu1 %v969_v32  ;;  %v4498_v35 = vpop.f32.mrb[14].mxu1  ;;  %v573_v39 = vpop.f32.mrb[15].mxu0  ;;  %v870_v24 = vmax.f32 %v744_v11, 0.0  ;;  %v936_v32 = vmul.f32 %v4450_v15, %v868_v17  ;;  %v834_v61 = vmax.f32 %v564_v45, 0.0  ;;  %v579_v0 = vadd.f32 %v4496_v34, %v4441_v6 }
 0x137   : > { %v4503_v40 = vpop.f32.mrb[15].mxu1  ;;  %v574_v26 = vadd.f32 %v4441_v6, %v573_v39 }
 0x138   : > { %v754_v41 = vadd.f32 %v4441_v6, %v4503_v40  ;;  %v938_v23 = vmul.f32 %v4450_v15, %v870_v24  ;;  %v1092_v48 = vsel %vm244_vm0, %v936_v32, 0.0  ;;  %v837_v34 = vmax.f32 %v579_v0, 0.0 }
 0x139   : > { %982 = vadd.xlane.f32.xlu0 %v981_v36  ;;  %v4510_v47 = vpop.f32.mrb[16].mxu0  ;;  %v903_v36 = vmul.f32 %v4450_v15, %v835_v20  ;;  %v836_v39 = vmax.f32 %v574_v26, 0.0  ;;  %v902_v12 = vmul.f32 %v4450_v15, %v834_v61 }
 0x13a   : > { %1078 = vadd.xlane.f32.xlu1 %v1077_v44  ;;  %v4508_v46 = vpop.f32.mrb[16].mxu1  ;;  %v4516_v52 = vpop.f32.mrb[17].mxu0  ;;  %v871_v44 = vmax.f32 %v749_v30, 0.0  ;;  %v872_v54 = vmax.f32 %v754_v41, 0.0  ;;  %v589_v24 = vadd.f32 %v4510_v47, %v4441_v6  ;;  %v905_v26 = vmul.f32 %v4450_v15, %v837_v34 }
 0x13b   : > { %v4514_v51 = vpop.f32.mrb[17].mxu1  ;;  %v993_v50 = vsel %vm244_vm0, %v903_v36, 0.0  ;;  %v769_v56 = vadd.f32 %v4508_v46, %v4441_v6  ;;  %v904_v27 = vmul.f32 %v4450_v15, %v836_v39  ;;  %v584_v46 = vadd.f32 %v4441_v6, %v4516_v52 }
 0x13c   : > { %v939_v1 = vmul.f32 %v4450_v15, %v871_v44  ;;  %v839_v39 = vmax.f32 %v589_v24, 0.0  ;;  %v999_v41 = vsel %vm244_vm0, %v905_v26, 0.0 }
 0x13d   : > { %1090 = vadd.xlane.f32.xlu0 %v1089_v49  ;;  %v4524_v59 = vpop.f32.mrb[18].mxu0  ;;  %v984_v49 = vsel %vm244_vm0, %v900_v33, 0.0  ;;  %v875_v3 = vmax.f32 %v769_v56, 0.0  ;;  %v838_v17 = vmax.f32 %v584_v46, 0.0 }
 0x13e   : > { %967 = vadd.xlane.f32.xlu1 %v966_v55  ;;  %v4522_v58 = vpop.f32.mrb[18].mxu1  ;;  %v4529_v63 = vpop.f32.mrb[19].mxu0  ;;  %v1098_v55 = vsel %vm244_vm0, %v938_v23, 0.0  ;;  %v1101_v11 = vsel %vm244_vm0, %v939_v1, 0.0  ;;  %v599_v30 = vadd.f32 %v4524_v59, %v4441_v6  ;;  %v907_v56 = vmul.f32 %v4450_v15, %v839_v39 }
 0x13f   : > { %v4527_v62 = vpop.f32.mrb[19].mxu1  ;;  %v943_v52 = vmul.f32 %v4450_v15, %v875_v3  ;;  %v594_v33 = vadd.f32 %v4441_v6, %v4529_v63 }
 0x140   : > { %v841_v59 = vmax.f32 %v599_v30, 0.0 }
 0x141   : > { %1087 = vadd.xlane.f32.xlu0 %v1086_v5  ;;  %v4539_v9 = vpop.f32.mrb[20].mxu0  ;;  %v940_v5 = vmul.f32 %v4450_v15, %v872_v54  ;;  %v1113_v32 = vsel %vm244_vm0, %v943_v52, 0.0  ;;  %v840_v45 = vmax.f32 %v594_v33, 0.0 }
 0x142   : > { %973 = vadd.xlane.f32.xlu1 %v972_v4  ;;  %v4537_v8 = vpop.f32.mrb[20].mxu1  ;;  %v4546_v14 = vpop.f32.mrb[21].mxu0  ;;  %v996_v4 = vsel %vm244_vm0, %v904_v27, 0.0  ;;  %v609_v63 = vadd.f32 %v4539_v9, %v4441_v6  ;;  %v909_v27 = vmul.f32 %v4450_v15, %v841_v59 }
 0x143   : > { %v4544_v13 = vpop.f32.mrb[21].mxu1  ;;  %v908_v1 = vmul.f32 %v4450_v15, %v840_v45 }
 0x144   : > { %v843_v61 = vmax.f32 %v609_v63, 0.0  ;;  %v1011_v46 = vsel %vm244_vm0, %v909_v27, 0.0 }
 0x145   : > { %988 = vadd.xlane.f32.xlu0 %v987_v10  ;;  %v4550_v21 = vpop.f32.mrb[22].mxu0  ;;  %v759_v10 = vadd.f32 %v4498_v35, %v4441_v6  ;;  %v764_v35 = vadd.f32 %v4441_v6, %v4514_v51  ;;  %v906_v51 = vmul.f32 %v4450_v15, %v838_v17  ;;  %v1008_v34 = vsel %vm244_vm0, %v908_v1, 0.0 }
 0x146   : > { %1081 = vadd.xlane.f32.xlu1 %v1080_v18  ;;  %v4552_v22 = vpop.f32.mrb[22].mxu1  ;;  %v4556_v28 = vpop.f32.mrb[23].mxu0  ;;  %v1104_v18 = vsel %vm244_vm0, %v940_v5, 0.0  ;;  %v619_v9 = vadd.f32 %v4550_v21, %v4441_v6  ;;  %v911_v21 = vmul.f32 %v4450_v15, %v843_v61 }
 0x147   : > { %v4558_v29 = vpop.f32.mrb[23].mxu1  ;;  %v873_v20 = vmax.f32 %v759_v10, 0.0  ;;  %v874_v47 = vmax.f32 %v764_v35, 0.0  ;;  %v799_v5 = vadd.f32 %v4552_v22, %v4441_v6  ;;  %v614_v24 = vadd.f32 %v4441_v6, %v4556_v28 }
 0x148   : > { %v845_v10 = vmax.f32 %v619_v9, 0.0 }
 0x149   : > { %1096 = vadd.xlane.f32.xlu0 %v1095_v25  ;;  %v4566_v37 = vpop.f32.mrb[24].mxu0  ;;  %v990_v25 = vsel %vm244_vm0, %v902_v12, 0.0  ;;  %v941_v23 = vmul.f32 %v4450_v15, %v873_v20  ;;  %v881_v17 = vmax.f32 %v799_v5, 0.0  ;;  %v844_v33 = vmax.f32 %v614_v24, 0.0 }
 0x14a   : > { %979 = vadd.xlane.f32.xlu1 %v978_v31  ;;  %v4568_v38 = vpop.f32.mrb[24].mxu1  ;;  %v4573_v42 = vpop.f32.mrb[25].mxu0  ;;  %v913_v20 = vmul.f32 %v4450_v15, %v845_v10  ;;  %v629_v59 = vadd.f32 %v4566_v37, %v4441_v6 }
 0x14b   : > { %v4575_v43 = vpop.f32.mrb[25].mxu1  ;;  %v1107_v54 = vsel %vm244_vm0, %v941_v23, 0.0  ;;  %v624_v22 = vadd.f32 %v4441_v6, %v4573_v42  ;;  %v794_v42 = vadd.f32 %v4441_v6, %v4558_v29  ;;  %v912_v45 = vmul.f32 %v4450_v15, %v844_v33 }
 0x14c   : > { %v1023_v26 = vsel %vm244_vm0, %v913_v20, 0.0  ;;  %v804_v30 = vadd.f32 %v4441_v6, %v4575_v43 }
 0x14d   : > { %985 = vadd.xlane.f32.xlu0 %v984_v49  ;;  %v4582_v53 = vpop.f32.mrb[26].mxu0  ;;  %v784_v49 = vadd.f32 %v4441_v6, %v4544_v13  ;;  %v789_v13 = vadd.f32 %v4537_v8, %v4441_v6  ;;  %v604_v8 = vadd.f32 %v4441_v6, %v4546_v14  ;;  %v846_v14 = vmax.f32 %v624_v22, 0.0 }
 0x14e   : > { %1093 = vadd.xlane.f32.xlu1 %v1092_v48  ;;  %v4584_v40 = vpop.f32.mrb[26].mxu1  ;;  %v4590_v57 = vpop.f32.mrb[27].mxu0  ;;  %v1002_v48 = vsel %vm244_vm0, %v906_v51, 0.0  ;;  %v880_v23 = vmax.f32 %v794_v42, 0.0  ;;  %v1020_v37 = vsel %vm244_vm0, %v912_v45, 0.0 }
 0x14f   : > { %v4592_v60 = vpop.f32.mrb[27].mxu1  ;;  %v878_v0 = vmax.f32 %v784_v49, 0.0  ;;  %v879_v12 = vmax.f32 %v789_v13, 0.0  ;;  %v842_v35 = vmax.f32 %v604_v8, 0.0  ;;  %v914_v43 = vmul.f32 %v4450_v15, %v846_v14 }
 0x151   : > { %994 = vadd.xlane.f32.xlu0 %v993_v50  ;;  %v4597_v2 = vpop.f32.mrb[28].mxu0  ;;  %v910_v28 = vmul.f32 %v4450_v15, %v842_v35  ;;  %v1026_v63 = vsel %vm244_vm0, %v914_v43, 0.0 }
 0x152   : > { %1099 = vadd.xlane.f32.xlu1 %v1098_v55  ;;  %v4603_v7 = vpop.f32.mrb[29].mxu0  ;;  %v942_v55 = vmul.f32 %v4450_v15, %v874_v47  ;;  %v882_v47 = vmax.f32 %v804_v30, 0.0  ;;  %v649_v49 = vadd.f32 %v4597_v2, %v4441_v6  ;;  %v779_v30 = vadd.f32 %v4522_v58, %v4441_v6 }
 0x153   : > { %v1014_v29 = vsel %vm244_vm0, %v910_v28, 0.0  ;;  %v644_v1 = vadd.f32 %v4441_v6, %v4603_v7  ;;  %v819_v28 = vadd.f32 %v4584_v40, %v4441_v6 }
 0x154   : > { %v1110_v3 = vsel %vm244_vm0, %v942_v55, 0.0  ;;  %v634_v55 = vadd.f32 %v4441_v6, %v4590_v57  ;;  %v851_v27 = vmax.f32 %v649_v49, 0.0  ;;  %v877_v58 = vmax.f32 %v779_v30, 0.0 }
 0x155   : > { %1102 = vadd.xlane.f32.xlu0 %v1101_v11  ;;  %v4609_v16 = vpop.f32.mrb[30].mxu0  ;;  %v946_v11 = vmul.f32 %v4450_v15, %v878_v0  ;;  %v850_v5 = vmax.f32 %v644_v1, 0.0 }
 0x156   : > { %997 = vadd.xlane.f32.xlu1 %v996_v4  ;;  %v4613_v19 = vpop.f32.mrb[31].mxu0  ;;  %v1005_v4 = vsel %vm244_vm0, %v907_v56, 0.0  ;;  %v948_v56 = vmul.f32 %v4450_v15, %v880_v23  ;;  %v848_v9 = vmax.f32 %v634_v55, 0.0  ;;  %v659_v10 = vadd.f32 %v4609_v16, %v4441_v6 }
 0x157   : > { %v1122_v52 = vsel %vm244_vm0, %v946_v11, 0.0  ;;  %v654_v0 = vadd.f32 %v4441_v6, %v4613_v19  ;;  %v919_v19 = vmul.f32 %v4450_v15, %v851_v27  ;;  %v885_v23 = vmax.f32 %v819_v28, 0.0 }
 0x158   : > { %v1128_v57 = vsel %vm244_vm0, %v948_v56, 0.0  ;;  %v853_v8 = vmax.f32 %v659_v10, 0.0  ;;  %v945_v40 = vmul.f32 %v4450_v15, %v877_v58 }
 0x159   : > { %991 = vadd.xlane.f32.xlu0 %v990_v25  ;;  %v4623_v31 = vpop.f32.mrb[32].mxu0  ;;  %v947_v25 = vmul.f32 %v4450_v15, %v879_v12  ;;  %v1041_v11 = vsel %vm244_vm0, %v919_v19, 0.0 }
 0x15a   : > { %1105 = vadd.xlane.f32.xlu1 %v1104_v18  ;;  %v4629_v36 = vpop.f32.mrb[33].mxu0  ;;  %v1017_v18 = vsel %vm244_vm0, %v911_v21, 0.0 }
 0x15b   : > { %v1125_v51 = vsel %vm244_vm0, %v947_v25, 0.0  ;;  %v921_v25 = vmul.f32 %v4450_v15, %v853_v8 }
 0x15d   : > { %1000 = vadd.xlane.f32.xlu0 %v999_v41  ;;  %v4633_v44 = vpop.f32.mrb[34].mxu0  ;;  %v639_v41 = vadd.f32 %v4582_v53, %v4441_v6  ;;  %v950_v53 = vmul.f32 %v4450_v15, %v882_v47  ;;  %v814_v47 = vadd.f32 %v4441_v6, %v4592_v60  ;;  %v953_v60 = vmul.f32 %v4450_v15, %v885_v23 }
 0x15e   : > { %1114 = vadd.xlane.f32.xlu1 %v1113_v32  ;;  %v4640_v50 = vpop.f32.mrb[35].mxu0  ;;  %v949_v32 = vmul.f32 %v4450_v15, %v881_v17  ;;  %v669_v17 = vadd.f32 %v4623_v31, %v4441_v6  ;;  %v679_v24 = vadd.f32 %v4633_v44, %v4441_v6  ;;  %v1047_v44 = vsel %vm244_vm0, %v921_v25, 0.0 }
 0x15f   : > { %v1134_v61 = vsel %vm244_vm0, %v950_v53, 0.0  ;;  %v674_v12 = vadd.f32 %v4441_v6, %v4640_v50  ;;  %v774_v50 = vadd.f32 %v4441_v6, %v4527_v62  ;;  %v809_v62 = vadd.f32 %v4568_v38, %v4441_v6 }
 0x160   : > { %v1131_v39 = vsel %vm244_vm0, %v949_v32, 0.0  ;;  %v855_v35 = vmax.f32 %v669_v17, 0.0  ;;  %v857_v33 = vmax.f32 %v679_v24, 0.0  ;;  %v1143_v53 = vsel %vm244_vm0, %v953_v60, 0.0 }
 0x161   : > { %1108 = vadd.xlane.f32.xlu0 %v1107_v54  ;;  %v847_v54 = vmax.f32 %v629_v59, 0.0  ;;  %v876_v32 = vmax.f32 %v774_v50, 0.0  ;;  %v884_v59 = vmax.f32 %v814_v47, 0.0 }
 0x162   : > { %1003 = vadd.xlane.f32.xlu1 %v1002_v48  ;;  %v849_v48 = vmax.f32 %v639_v41, 0.0  ;;  %v923_v42 = vmul.f32 %v4450_v15, %v855_v35  ;;  %v925_v43 = vmul.f32 %v4450_v15, %v857_v33 }
 0x163   : > { %v915_v13 = vmul.f32 %v4450_v15, %v847_v54  ;;  %v944_v38 = vmul.f32 %v4450_v15, %v876_v32 }
 0x164   : > { %v917_v2 = vmul.f32 %v4450_v15, %v849_v48  ;;  %v1053_v41 = vsel %vm244_vm0, %v923_v42, 0.0  ;;  %v1059_v45 = vsel %vm244_vm0, %v925_v43, 0.0  ;;  %v952_v48 = vmul.f32 %v4450_v15, %v884_v59 }
 0x165   : > { %1006 = vadd.xlane.f32.xlu0 %v1005_v4  ;;  %v1029_v7 = vsel %vm244_vm0, %v915_v13, 0.0 }
 0x166   : > { %1111 = vadd.xlane.f32.xlu1 %v1110_v3  ;;  %v852_v3 = vmax.f32 %v654_v0, 0.0  ;;  %v1035_v4 = vsel %vm244_vm0, %v917_v2, 0.0  ;;  %v1140_v54 = vsel %vm244_vm0, %v952_v48, 0.0 }
 0x169   : > { %1012 = vadd.xlane.f32.xlu0 %v1011_v46  ;;  %v664_v46 = vadd.f32 %v4441_v6, %v4629_v36  ;;  %v920_v36 = vmul.f32 %v4450_v15, %v852_v3 }
 0x16a   : > { %1009 = vadd.xlane.f32.xlu1 %v1008_v34  ;;  %v916_v34 = vmul.f32 %v4450_v15, %v848_v9 }
 0x16b   : > { %v854_v21 = vmax.f32 %v664_v46, 0.0  ;;  %v1044_v22 = vsel %vm244_vm0, %v920_v36, 0.0 }
 0x16c   : > { %v1032_v16 = vsel %vm244_vm0, %v916_v34, 0.0 }
 0x16d   : > { %1123 = vadd.xlane.f32.xlu0 %v1122_v52  ;;  %v856_v52 = vmax.f32 %v674_v12, 0.0  ;;  %v922_v20 = vmul.f32 %v4450_v15, %v854_v21 }
 0x16e   : > { %1018 = vadd.xlane.f32.xlu1 %v1017_v18  ;;  %v918_v18 = vmul.f32 %v4450_v15, %v850_v5 }
 0x16f   : > { %v1050_v14 = vsel %vm244_vm0, %v922_v20, 0.0 }
 0x170   : > { %v1038_v31 = vsel %vm244_vm0, %v918_v18, 0.0 }
 0x171   : > { %1024 = vadd.xlane.f32.xlu0 %v1023_v26  ;;  %v924_v26 = vmul.f32 %v4450_v15, %v856_v52 }
 0x172   : > { %1126 = vadd.xlane.f32.xlu1 %v1125_v51 }
 0x173   : > { %v1056_v51 = vsel %vm244_vm0, %v924_v26, 0.0 }
 0x175   : > { %1132 = vadd.xlane.f32.xlu0 %v1131_v39  ;;  %v883_v39 = vmax.f32 %v809_v62, 0.0 }
 0x176   : > { %1015 = vadd.xlane.f32.xlu1 %v1014_v29  ;;  %v1116_v29 = vsel %vm244_vm0, %v944_v38, 0.0 }
 0x177   : > { %v951_v6 = vmul.f32 %v4450_v15, %v883_v39 }
 0x179   : > { %1027 = vadd.xlane.f32.xlu0 %v1026_v63  ;;  %v1119_v63 = vsel %vm244_vm0, %v945_v40, 0.0  ;;  %v1137_v49 = vsel %vm244_vm0, %v951_v6, 0.0 }
 0x17a   : > { %1021 = vadd.xlane.f32.xlu1 %v1020_v37 }
 0x17d   : > { %1135 = vadd.xlane.f32.xlu0 %v1134_v61 }
 0x17e   : > { %1129 = vadd.xlane.f32.xlu1 %v1128_v57 }
 0x181   : > { %1036 = vadd.xlane.f32.xlu0 %v1035_v4 }
 0x182   : > { %1030 = vadd.xlane.f32.xlu1 %v1029_v7 }
 0x185   : > { %1042 = vadd.xlane.f32.xlu0 %v1041_v11 }
 0x186   : > { %1033 = vadd.xlane.f32.xlu1 %v1032_v16 }
 0x189   : > { %1039 = vadd.xlane.f32.xlu0 %v1038_v31 }
 0x18a   : > { %1045 = vadd.xlane.f32.xlu1 %v1044_v22 }
 0x18d   : > { %1048 = vadd.xlane.f32.xlu0 %v1047_v44 }
 0x18e   : > { %1051 = vadd.xlane.f32.xlu1 %v1050_v14 }
 0x191   : > { %1054 = vadd.xlane.f32.xlu0 %v1053_v41 }
 0x192   : > { %1057 = vadd.xlane.f32.xlu1 %v1056_v51 }
 0x195   : > { %1060 = vadd.xlane.f32.xlu0 %v1059_v45 }
 0x196   : > { %1117 = vadd.xlane.f32.xlu1 %v1116_v29 }
 0x199   : > { %1138 = vadd.xlane.f32.xlu0 %v1137_v49 }
 0x19a   : > { %1120 = vadd.xlane.f32.xlu1 %v1119_v63 }
 0x19d   : > { %1141 = vadd.xlane.f32.xlu0 %v1140_v54 }
 0x19e   : > { %1144 = vadd.xlane.f32.xlu1 %v1143_v53 }
 0x1ae   : > { %v959_v37 = vpop.xlane.xlu0 %958 }
 0x1af   : > { %v1067_v55 = vpop.xlane.xlu1 %1066  ;;  %v1152_v27 = vrot.slane %v959_v37, 4 }
 0x1b0   : > { %v1368_v56 = vrot.slane %v1067_v55, 4 }
 0x1b1   : > { %v1153_v0 = vmax.f32 %v959_v37, %v1152_v27 }
 0x1b2   : > { %v1369_v61 = vmax.f32 %v1067_v55, %v1368_v56  ;;  %v956_v15 = vpop.xlane.xlu0 %955 }
 0x1b3   : > { %v1064_v2 = vpop.xlane.xlu1 %1063  ;;  %v1154_v1 = vrot.slane %v1153_v0, 2  ;;  %v1146_v13 = vrot.slane %v956_v15, 4 }
 0x1b4   : > { %v1370_v9 = vrot.slane %v1369_v61, 2  ;;  %v1362_v57 = vrot.slane %v1064_v2, 4 }
 0x1b5   : > { %v1155_v4 = vmax.f32 %v1153_v0, %v1154_v1  ;;  %v1147_v19 = vmax.f32 %v956_v15, %v1146_v13 }
 0x1b6   : > { %v1371_v3 = vmax.f32 %v1369_v61, %v1370_v9  ;;  %v1363_v46 = vmax.f32 %v1064_v2, %v1362_v57  ;;  %v4753_v10 = vpop.xlane.xlu0 %1072 }
 0x1b7   : > { %v4751_v5 = vpop.xlane.xlu1 %964  ;;  %v1156_v34 = vrot.slane %v1155_v4, 1  ;;  %v1148_v11 = vrot.slane %v1147_v19, 2  ;;  %v1380_v36 = vrot.slane %v4753_v10, 4 }
 0x1b8   : > { %v1372_v7 = vrot.slane %v1371_v3, 1  ;;  %v1364_v21 = vrot.slane %v1363_v46, 2  ;;  %v1164_v12 = vrot.slane %v4751_v5, 4 }
 0x1b9   : > { %v1157_v17 = vmax.f32 %v1155_v4, %v1156_v34  ;;  %v1149_v18 = vmax.f32 %v1147_v19, %v1148_v11  ;;  %v1381_v22 = vmax.f32 %v4753_v10, %v1380_v36 }
 0x1ba   : > { %v1373_v8 = vmax.f32 %v1371_v3, %v1372_v7  ;;  %v1365_v16 = vmax.f32 %v1363_v46, %v1364_v21  ;;  %v1165_v52 = vmax.f32 %v4751_v5, %v1164_v12  ;;  %v4761_v50 = vpop.xlane.xlu0 %1075 }
 0x1bb   : > { %v4759_v20 = vpop.xlane.xlu1 %961  ;;  %v1531_v24 = vsub.f32 %v959_v37, %v1157_v17  ;;  %v1150_v25 = vrot.slane %v1149_v18, 1  ;;  %v1382_v26 = vrot.slane %v1381_v22, 2  ;;  %v1386_v32 = vrot.slane %v4761_v50, 4 }
 0x1bc   : > { %v1567_v35 = vsub.f32 %v1067_v55, %v1373_v8  ;;  %v1366_v31 = vrot.slane %v1365_v16, 1  ;;  %v1166_v14 = vrot.slane %v1165_v52, 2  ;;  %v1158_v30 = vrot.slane %v4759_v20, 4 }
 0x1bd   : > { %v1596_v33 = vmul.f32 1.442695, %v1531_v24  ;;  %v1151_v42 = vmax.f32 %v1149_v18, %v1150_v25  ;;  %v1383_v28 = vmax.f32 %v1381_v22, %v1382_v26  ;;  %v1387_v58 = vmax.f32 %v4761_v50, %v1386_v32 }
 0x1be   : > { %v1668_v62 = vmul.f32 1.442695, %v1567_v35  ;;  %v1367_v44 = vmax.f32 %v1365_v16, %v1366_v31  ;;  %v1167_v51 = vmax.f32 %v1165_v52, %v1166_v14  ;;  %v1159_v47 = vmax.f32 %v4759_v20, %v1158_v30  ;;  %v4769_v41 = vpop.xlane.xlu0 %976 }
 0x1bf   : > { %v4767_v39 = vpop.xlane.xlu1 %1069  ;;  %v1530_v43 = vsub.f32 %v956_v15, %v1151_v42  ;;  %v1384_v29 = vrot.slane %v1383_v28, 1  ;;  %v1388_v60 = vrot.slane %v1387_v58, 2  ;;  %v1188_v54 = vrot.slane %v4769_v41, 4 }
 0x1c0   : > { %3715 = vpow2.f32 %v1668_v62  ;;  %v1566_v38 = vsub.f32 %v1064_v2, %v1367_v44  ;;  %v1374_v23 = vrot.slane %v4767_v39, 4  ;;  %v1168_v59 = vrot.slane %v1167_v51, 1 }
 0x1c1   : > { %3717 = vpow2.f32 %v1596_v33  ;;  %v1160_v45 = vrot.slane %v1159_v47, 2  ;;  %v1594_v6 = vmul.f32 1.442695, %v1530_v43  ;;  %v1385_v49 = vmax.f32 %v1383_v28, %v1384_v29 }
 0x1c2   : > { %v1666_v40 = vmul.f32 1.442695, %v1566_v38  ;;  %v1375_v48 = vmax.f32 %v4767_v39, %v1374_v23  ;;  %v1169_v63 = vmax.f32 %v1167_v51, %v1168_v59  ;;  %v1389_v37 = vmax.f32 %v1387_v58, %v1388_v60  ;;  %v4777_v61 = vpop.xlane.xlu0 %1084 }
 0x1c3   : > { %v1161_v53 = vmax.f32 %v1159_v47, %v1160_v45  ;;  %v4774_v55 = vpop.xlane.xlu1 %970  ;;  %v1569_v2 = vsub.f32 %v4753_v10, %v1385_v49  ;;  %v1189_v57 = vmax.f32 %v4769_v41, %v1188_v54  ;;  %v1404_v19 = vrot.slane %v4777_v61, 4 }
 0x1c4   : > { %3719 = vpow2.f32 %v1666_v40  ;;  %v1376_v56 = vrot.slane %v1375_v48, 2  ;;  %v1176_v27 = vrot.slane %v4774_v55, 4  ;;  %v1533_v0 = vsub.f32 %v4751_v5, %v1169_v63 }
 0x1c5   : > { %3721 = vpow2.f32 %v1594_v6  ;;  %v1162_v15 = vrot.slane %v1161_v53, 1  ;;  %v1390_v9 = vrot.slane %v1389_v37, 1  ;;  %v1672_v4 = vmul.f32 1.442695, %v1569_v2 }
 0x1c6   : > { %v1377_v1 = vmax.f32 %v1375_v48, %v1376_v56  ;;  %v1177_v13 = vmax.f32 %v4774_v55, %v1176_v27  ;;  %v1600_v3 = vmul.f32 1.442695, %v1533_v0  ;;  %v1190_v11 = vrot.slane %v1189_v57, 2 }
 0x1c7   : > { %v1163_v46 = vmax.f32 %v1161_v53, %v1162_v15  ;;  %v4784_v7 = vpop.xlane.xlu1 %1078  ;;  %v1391_v34 = vmax.f32 %v1389_v37, %v1390_v9  ;;  %v1405_v12 = vmax.f32 %v4777_v61, %v1404_v19 }
 0x1c8   : > { %v1378_v21 = vrot.slane %v1377_v1, 1  ;;  %v1178_v5 = vrot.slane %v1177_v13, 2  ;;  %3723 = vpow2.f32 %v1600_v3  ;;  %v1392_v36 = vrot.slane %v4784_v7, 4 }
 0x1c9   : > { %v1532_v10 = vsub.f32 %v4759_v20, %v1163_v46  ;;  %3725 = vpow2.f32 %v1672_v4  ;;  %v1570_v17 = vsub.f32 %v4761_v50, %v1391_v34  ;;  %v1191_v18 = vmax.f32 %v1189_v57, %v1190_v11 }
 0x1ca   : > { %v4789_v8 = vpop.eup %3715  ;;  %v1379_v16 = vmax.f32 %v1377_v1, %v1378_v21  ;;  %v1179_v24 = vmax.f32 %v1177_v13, %v1178_v5  ;;  %v1406_v31 = vrot.slane %v1405_v12, 2  ;;  %v1393_v48 = vmax.f32 %v4784_v7, %v1392_v36 }
 0x1cb   : > { %6021 = vst [vmem:[#allocation8_spill] sm:$0xff] %v4789_v8  ;;  %v4792_v52 = vpop.eup %3717  ;;  %v1944_v22 = vrot.slane %v4789_v8, 4  ;;  %v1598_v35 = vmul.f32 1.442695, %v1532_v10  ;;  %v1674_v25 = vmul.f32 1.442695, %v1570_v17  ;;  %v4820_v9 = vpop.xlane.xlu1 %967 }
 0x1cc   : > { %v1728_v20 = vrot.slane %v4792_v52, 4  ;;  %v1568_v14 = vsub.f32 %v4767_v39, %v1379_v16  ;;  %v1192_v26 = vrot.slane %v1191_v18, 1  ;;  %v1180_v32 = vrot.slane %v1179_v24, 1 }
 0x1cd   : > { %v1945_v30 = vadd.f32 %v4789_v8, %v1944_v22  ;;  %3727 = vpow2.f32 %v1598_v35  ;;  %v1407_v50 = vmax.f32 %v1405_v12, %v1406_v31  ;;  %v1394_v13 = vrot.slane %v1393_v48, 2 }
 0x1ce   : > { %v4798_v62 = vpop.eup %3719  ;;  %v1729_v33 = vadd.f32 %v4792_v52, %v1728_v20  ;;  %3729 = vpow2.f32 %v1674_v25  ;;  %v1670_v44 = vmul.f32 1.442695, %v1568_v14  ;;  %v1193_v42 = vmax.f32 %v1191_v18, %v1192_v26 }
 0x1cf   : > { %6022 = vst [vmem:[#allocation9_spill] sm:$0xff] %v4798_v62  ;;  %v4801_v51 = vpop.eup %3721  ;;  %v1938_v28 = vrot.slane %v4798_v62, 4  ;;  %v1181_v47 = vmax.f32 %v1179_v24, %v1180_v32  ;;  %v1408_v58 = vrot.slane %v1407_v50, 1  ;;  %v1946_v23 = vrot.slane %v1945_v30, 2 }
 0x1d0   : > { %v1730_v39 = vrot.slane %v1729_v33, 2  ;;  %v1722_v38 = vrot.slane %v4801_v51, 4  ;;  %3731 = vpow2.f32 %v1670_v44  ;;  %v1537_v43 = vsub.f32 %v4769_v41, %v1193_v42 }
 0x1d1   : > { %v1939_v59 = vadd.f32 %v4798_v62, %v1938_v28  ;;  %v1535_v29 = vsub.f32 %v4774_v55, %v1181_v47  ;;  %v1409_v45 = vmax.f32 %v1407_v50, %v1408_v58  ;;  %v4816_v55 = vpop.xlane.xlu0 %982  ;;  %v4818_v0 = vadd.f32 %v1946_v23, %v1945_v30  ;;  %v4843_v30 = vpop.xlane.xlu1 %973 }
 0x1d2   : > { %v1731_v40 = vadd.f32 %v1730_v39, %v1729_v33  ;;  %v1723_v6 = vadd.f32 %v4801_v51, %v1722_v38  ;;  %v1608_v60 = vmul.f32 1.442695, %v1537_v43  ;;  %v4810_v63 = vpop.eup %3723  ;;  %v1200_v19 = vrot.slane %v4816_v55, 4 }
 0x1d3   : > { %v1940_v49 = vrot.slane %v1939_v59, 2  ;;  %v1604_v53 = vmul.f32 1.442695, %v1535_v29  ;;  %v1573_v54 = vsub.f32 %v4777_v61, %v1409_v45  ;;  %v4813_v37 = vpop.eup %3725  ;;  %v1740_v27 = vrot.slane %v4810_v63, 4  ;;  %6024 = vst [vmem:[#allocation11_spill] sm:$0xff] %v4818_v0 }
 0x1d4   : > { %6023 = vst [vmem:[#allocation10_spill] sm:$0xff] %v4813_v37  ;;  %v1732_v41 = vrot.slane %v1731_v40, 1  ;;  %v1724_v56 = vrot.slane %v1723_v6, 2  ;;  %3733 = vpow2.f32 %v1608_v60  ;;  %v1956_v46 = vrot.slane %v4813_v37, 4 }
 0x1d5   : > { %v1941_v2 = vadd.f32 %v1940_v49, %v1939_v59  ;;  %3735 = vpow2.f32 %v1604_v53  ;;  %v1680_v15 = vmul.f32 1.442695, %v1573_v54  ;;  %v1741_v61 = vadd.f32 %v4810_v63, %v1740_v27  ;;  %v4841_v26 = vpop.xlane.xlu0 %1090 }
 0x1d6   : > { %v1733_v1 = vadd.f32 %v1732_v41, %v1731_v40  ;;  %v1725_v57 = vadd.f32 %v1724_v56, %v1723_v6  ;;  %v1395_v17 = vmax.f32 %v1393_v48, %v1394_v13  ;;  %v1201_v24 = vmax.f32 %v4816_v55, %v1200_v19 }
 0x1d7   : > { %v4823_v3 = vpop.eup %3727  ;;  %v1942_v4 = vrot.slane %v1941_v2, 1  ;;  %3737 = vpow2.f32 %v1680_v15  ;;  %v1742_v11 = vrot.slane %v1741_v61, 2  ;;  %v4837_v31 = vadd.f32 %v4813_v37, %v1956_v46 }
 0x1d8   : > { %v4827_v34 = vpop.eup %3729  ;;  %3739 = vrcp.f32 %v1733_v1  ;;  %v1726_v21 = vrot.slane %v1725_v57, 1  ;;  %v1734_v5 = vrot.slane %v4823_v3, 4  ;;  %v1396_v14 = vrot.slane %v1395_v17, 1 }
 0x1d9   : > { %v1943_v12 = vadd.f32 %v1942_v4, %v1941_v2  ;;  %v1962_v36 = vrot.slane %v4827_v34, 4  ;;  %v1743_v22 = vadd.f32 %v1742_v11, %v1741_v61  ;;  %6026 = vst [vmem:[#allocation13_spill] sm:$0xff] %v4837_v31  ;;  %v1202_v33 = vrot.slane %v1201_v24, 2  ;;  %v4860_v27 = vpop.xlane.xlu0 %1087  ;;  %v4862_v2 = vpop.xlane.xlu1 %1081 }
 0x1da   : > { %v4832_v16 = vpop.eup %3731  ;;  %v1727_v18 = vadd.f32 %v1726_v21, %v1725_v57  ;;  %v1735_v35 = vadd.f32 %v4823_v3, %v1734_v5  ;;  %v1397_v28 = vmax.f32 %v1395_v17, %v1396_v14  ;;  %v1170_v43 = vrot.slane %v4820_v9, 4 }
 0x1db   : > { %6025 = vst [vmem:[#allocation12_spill] sm:$0xff] %v4832_v16  ;;  %v1963_v20 = vadd.f32 %v4827_v34, %v1962_v36  ;;  %v1950_v25 = vrot.slane %v4832_v16, 4  ;;  %3741 = vrcp.f32 %v1943_v12  ;;  %v1744_v32 = vrot.slane %v1743_v22, 1 }
 0x1dc   : > { %v1736_v50 = vrot.slane %v1735_v35, 2  ;;  %3743 = vrcp.f32 %v1727_v18  ;;  %v1203_v38 = vmax.f32 %v1201_v24, %v1202_v33  ;;  %v1571_v40 = vsub.f32 %v4784_v7, %v1397_v28 }
 0x1dd   : > { %v1964_v44 = vrot.slane %v1963_v20, 2  ;;  %v1951_v42 = vadd.f32 %v4832_v16, %v1950_v25  ;;  %v1745_v58 = vadd.f32 %v1744_v32, %v1743_v22  ;;  %v1416_v49 = vrot.slane %v4841_v26, 4  ;;  %v4882_v32 = vpop.xlane.xlu0 %988 }
 0x1de   : > { %v4846_v47 = vpop.eup %3733  ;;  %v1737_v39 = vadd.f32 %v1736_v50, %v1735_v35  ;;  %v1204_v48 = vrot.slane %v1203_v38, 1  ;;  %v1676_v56 = vmul.f32 1.442695, %v1571_v40  ;;  %v1171_v36 = vmax.f32 %v4820_v9, %v1170_v43  ;;  %v4884_v50 = vpop.xlane.xlu1 %979 }
 0x1df   : > { %v4849_v23 = vpop.eup %3735  ;;  %v1965_v59 = vadd.f32 %v1964_v44, %v1963_v20  ;;  %v1952_v29 = vrot.slane %v1951_v42, 2  ;;  %v1764_v45 = vrot.slane %v4846_v47, 4  ;;  %3745 = vrcp.f32 %v1745_v58 }
 0x1e0   : > { %v1738_v6 = vrot.slane %v1737_v39, 1  ;;  %v1752_v60 = vrot.slane %v4849_v23, 4  ;;  %v1205_v61 = vmax.f32 %v1203_v38, %v1204_v48  ;;  %3747 = vpow2.f32 %v1676_v56 }
 0x1e1   : > { %v4855_v53 = vpop.eup %3737  ;;  %v1966_v54 = vrot.slane %v1965_v59, 1  ;;  %v4858_v41 = vadd.f32 %v4846_v47, %v1764_v45  ;;  %v4867_v46 = vadd.f32 %v1952_v29, %v1951_v42  ;;  %v1417_v17 = vmax.f32 %v4841_v26, %v1416_v49 }
 0x1e2   : > { %6027 = vst [vmem:[#allocation14_spill] sm:$0xff] %v4855_v53  ;;  %v3740_v15 = vpop.eup %3739  ;;  %v1739_v7 = vadd.f32 %v1738_v6, %v1737_v39  ;;  %v1753_v1 = vadd.f32 %v4849_v23, %v1752_v60  ;;  %v1980_v57 = vrot.slane %v4855_v53, 4  ;;  %v1539_v5 = vsub.f32 %v4816_v55, %v1205_v61 }
 0x1e3   : > { %v1967_v4 = vadd.f32 %v1966_v54, %v1965_v59  ;;  %6028 = vst [vmem:[#allocation15_spill] sm:$0xff] %v4867_v46  ;;  %v4870_v19 = vmul.f32 %v3740_v15, %v4792_v52  ;;  %v1182_v18 = vrot.slane %v4843_v30, 4  ;;  %v1410_v52 = vrot.slane %v4860_v27, 4 }
 0x1e4   : > { %v1754_v21 = vrot.slane %v1753_v1, 2  ;;  %v1981_v11 = vadd.f32 %v4855_v53, %v1980_v57  ;;  %3749 = vrcp.f32 %v1739_v7  ;;  %v1612_v24 = vmul.f32 1.442695, %v1539_v5 }
 0x1e5   : > { %v4878_v22 = vpop.eup %3741  ;;  %3751 = vrcp.f32 %v1967_v4  ;;  %v1172_v25 = vrot.slane %v1171_v36, 2  ;;  %v1418_v14 = vrot.slane %v1417_v17, 2  ;;  %v1183_v55 = vmax.f32 %v4843_v30, %v1182_v18 }
 0x1e6   : > { %6029 = vst [vmem:[#allocation16_spill] sm:$0xff] %v4878_v22  ;;  %v1982_v35 = vrot.slane %v1981_v11, 2  ;;  %v3744_v20 = vpop.eup %3743  ;;  %v4886_v33 = vadd.f32 %v1754_v21, %v1753_v1  ;;  %3753 = vpow2.f32 %v1612_v24  ;;  %v1411_v42 = vmax.f32 %v4860_v27, %v1410_v52  ;;  %v4906_v52 = vpop.xlane.xlu0 %1096 }
 0x1e7   : > { %v1173_v28 = vmax.f32 %v1171_v36, %v1172_v25  ;;  %v1419_v58 = vmax.f32 %v1417_v17, %v1418_v14  ;;  %v1184_v39 = vrot.slane %v1183_v55, 2  ;;  %v1398_v38 = vrot.slane %v4862_v2, 4 }
 0x1e8   : > { %v1983_v44 = vadd.f32 %v1982_v35, %v1981_v11  ;;  %v4891_v43 = vmul.f32 %v3744_v20, %v4801_v51  ;;  %v1412_v59 = vrot.slane %v1411_v42, 2  ;;  %v1212_v29 = vrot.slane %v4882_v32, 4 }
 0x1e9   : > { %v1194_v45 = vrot.slane %v4884_v50, 4  ;;  %v4895_v40 = vpop.eup %3745  ;;  %v1174_v6 = vrot.slane %v1173_v28, 1  ;;  %v1420_v60 = vrot.slane %v1419_v58, 1  ;;  %v1185_v48 = vmax.f32 %v1183_v55, %v1184_v39 }
 0x1ea   : > { %v1399_v49 = vmax.f32 %v4862_v2, %v1398_v38  ;;  %v1984_v56 = vrot.slane %v1983_v44, 1  ;;  %v1413_v15 = vmax.f32 %v1411_v42, %v1412_v59  ;;  %v1213_v7 = vmax.f32 %v4882_v32, %v1212_v29  ;;  %v4900_v51 = vpop.eup %3747 }
 0x1eb   : > { %v1175_v1 = vmax.f32 %v1173_v28, %v1174_v6  ;;  %v1421_v57 = vmax.f32 %v1419_v58, %v1420_v60  ;;  %v1186_v61 = vrot.slane %v1185_v48, 1  ;;  %v1968_v21 = vrot.slane %v4900_v51, 4 }
 0x1ec   : > { %v1400_v4 = vrot.slane %v1399_v49, 2  ;;  %v1414_v11 = vrot.slane %v1413_v15, 1  ;;  %v1214_v5 = vrot.slane %v1213_v7, 2  ;;  %v1195_v36 = vmax.f32 %v4884_v50, %v1194_v45 }
 0x1ed   : > { %v1534_v17 = vsub.f32 %v4820_v9, %v1175_v1  ;;  %v1575_v18 = vsub.f32 %v4841_v26, %v1421_v57  ;;  %v1187_v35 = vmax.f32 %v1185_v48, %v1186_v61  ;;  %v1985_v25 = vadd.f32 %v1984_v56, %v1983_v44  ;;  %v4912_v9 = vpop.xlane.xlu1 %1093  ;;  %v4920_v61 = vpop.xlane.xlu0 %985 }
 0x1ee   : > { %v1401_v24 = vmax.f32 %v1399_v49, %v1400_v4  ;;  %v4908_v20 = vpop.eup %3749  ;;  %v1969_v14 = vadd.f32 %v4900_v51, %v1968_v21  ;;  %v1415_v55 = vmax.f32 %v1413_v15, %v1414_v11  ;;  %v1215_v42 = vmax.f32 %v1213_v7, %v1214_v5 }
 0x1ef   : > { %v3752_v28 = vpop.eup %3751  ;;  %v1602_v58 = vmul.f32 1.442695, %v1534_v17  ;;  %v1684_v39 = vmul.f32 1.442695, %v1575_v18  ;;  %v1536_v38 = vsub.f32 %v4843_v30, %v1187_v35  ;;  %v1196_v60 = vrot.slane %v1195_v36, 2 }
 0x1f0   : > { %v1402_v59 = vrot.slane %v1401_v24, 1  ;;  %v4914_v26 = vpop.eup %3753  ;;  %v1970_v29 = vrot.slane %v1969_v14, 2  ;;  %v1574_v45 = vsub.f32 %v4860_v27, %v1415_v55  ;;  %v1216_v6 = vrot.slane %v1215_v42, 1 }
 0x1f1   : > { %v1776_v44 = vrot.slane %v4914_v26, 4  ;;  %3755 = vpow2.f32 %v1602_v58  ;;  %v1606_v48 = vmul.f32 1.442695, %v1536_v38  ;;  %v1197_v57 = vmax.f32 %v1195_v36, %v1196_v60  ;;  %v4925_v35 = vpop.xlane.xlu1 %1099 }
 0x1f2   : > { %v1403_v49 = vmax.f32 %v1401_v24, %v1402_v59  ;;  %v1971_v56 = vadd.f32 %v1970_v29, %v1969_v14  ;;  %3757 = vpow2.f32 %v1684_v39  ;;  %v1682_v15 = vmul.f32 1.442695, %v1574_v45 }
 0x1f3   : > { %v1217_v7 = vmax.f32 %v1215_v42, %v1216_v6  ;;  %v1777_v30 = vadd.f32 %v4914_v26, %v1776_v44  ;;  %3759 = vpow2.f32 %v1606_v48  ;;  %v1428_v21 = vrot.slane %v4906_v52, 4  ;;  %v4933_v6 = vpop.xlane.xlu0 %994 }
 0x1f4   : > { %v1572_v1 = vsub.f32 %v4862_v2, %v1403_v49  ;;  %v1972_v27 = vrot.slane %v1971_v56, 1  ;;  %3761 = vpow2.f32 %v1682_v15  ;;  %v1198_v17 = vrot.slane %v1197_v57, 1 }
 0x1f5   : > { %v1541_v4 = vsub.f32 %v4882_v32, %v1217_v7  ;;  %v1778_v11 = vrot.slane %v1777_v30, 2  ;;  %v1422_v18 = vrot.slane %v4912_v9, 4  ;;  %v1429_v2 = vmax.f32 %v4906_v52, %v1428_v21 }
 0x1f6   : > { %v1678_v5 = vmul.f32 1.442695, %v1572_v1  ;;  %v1973_v24 = vadd.f32 %v1972_v27, %v1971_v56  ;;  %v1206_v36 = vrot.slane %v4920_v61, 4  ;;  %v1199_v42 = vmax.f32 %v1197_v57, %v1198_v17 }
 0x1f7   : > { %v1616_v14 = vmul.f32 1.442695, %v1541_v4  ;;  %v1779_v55 = vadd.f32 %v1778_v11, %v1777_v30  ;;  %v1423_v32 = vmax.f32 %v4912_v9, %v1422_v18  ;;  %v1430_v58 = vrot.slane %v1429_v2, 2 }
 0x1f8   : > { %3763 = vpow2.f32 %v1678_v5  ;;  %v1207_v39 = vmax.f32 %v4920_v61, %v1206_v36  ;;  %v1434_v38 = vrot.slane %v4925_v35, 4  ;;  %v1538_v29 = vsub.f32 %v4884_v50, %v1199_v42 }
 0x1f9   : > { %3765 = vrcp.f32 %v1973_v24  ;;  %v1780_v59 = vrot.slane %v1779_v55, 1  ;;  %v1424_v45 = vrot.slane %v1423_v32, 2  ;;  %v1431_v60 = vmax.f32 %v1429_v2, %v1430_v58 }
 0x1fa   : > { %3767 = vpow2.f32 %v1616_v14  ;;  %v1208_v44 = vrot.slane %v1207_v39, 2  ;;  %v1435_v48 = vmax.f32 %v4925_v35, %v1434_v38  ;;  %v4939_v56 = vmul.f32 %v3752_v28, %v4827_v34  ;;  %v4948_v34 = vpop.xlane.xlu1 %997 }
 0x1fb   : > { %3769 = vrcp.f32 %v1985_v25  ;;  %v4936_v49 = vpop.eup %3755  ;;  %v1781_v15 = vadd.f32 %v1780_v59, %v1779_v55  ;;  %v1610_v7 = vmul.f32 1.442695, %v1538_v29  ;;  %v1425_v30 = vmax.f32 %v1423_v32, %v1424_v45 }
 0x1fc   : > { %6030 = vst [vmem:[#allocation17_spill] sm:$0xff] %v4939_v56  ;;  %v4941_v1 = vpop.eup %3757  ;;  %v1746_v50 = vrot.slane %v4936_v49, 4  ;;  %v1432_v57 = vrot.slane %v1431_v60, 1  ;;  %v1209_v27 = vmax.f32 %v1207_v39, %v1208_v44  ;;  %v1224_v25 = vrot.slane %v4933_v6, 4 }
 0x1fd   : > { %6031 = vst [vmem:[#allocation18_spill] sm:$0xff] %v4941_v1  ;;  %v4945_v4 = vpop.eup %3759  ;;  %3771 = vrcp.f32 %v1781_v15  ;;  %v1992_v21 = vrot.slane %v4941_v1, 4  ;;  %v1426_v11 = vrot.slane %v1425_v30, 1  ;;  %v1436_v5 = vrot.slane %v1435_v48, 2 }
 0x1fe   : > { %v4950_v28 = vpop.eup %3761  ;;  %v1747_v17 = vadd.f32 %v4936_v49, %v1746_v50  ;;  %v1758_v18 = vrot.slane %v4945_v4, 4  ;;  %3773 = vpow2.f32 %v1610_v7  ;;  %v1433_v24 = vmax.f32 %v1431_v60, %v1432_v57 }
 0x1ff   : > { %6032 = vst [vmem:[#allocation19_spill] sm:$0xff] %v4950_v28  ;;  %v1993_v14 = vadd.f32 %v4941_v1, %v1992_v21  ;;  %v1986_v2 = vrot.slane %v4950_v28, 4  ;;  %v1427_v36 = vmax.f32 %v1425_v30, %v1426_v11  ;;  %v1210_v55 = vrot.slane %v1209_v27, 1 }
 0x200   : > { %v1748_v42 = vrot.slane %v1747_v17, 2  ;;  %v1759_v32 = vadd.f32 %v4945_v4, %v1758_v18  ;;  %v1577_v58 = vsub.f32 %v4906_v52, %v1433_v24  ;;  %v1230_v39 = vrot.slane %v4948_v34, 4 }
 0x201   : > { %v1994_v59 = vrot.slane %v1993_v14, 2  ;;  %v1987_v29 = vadd.f32 %v4950_v28, %v1986_v2  ;;  %v1576_v45 = vsub.f32 %v4912_v9, %v1427_v36  ;;  %v1211_v60 = vmax.f32 %v1209_v27, %v1210_v55 }
 0x202   : > { %v4959_v38 = vpop.eup %3763  ;;  %v1749_v15 = vadd.f32 %v1748_v42, %v1747_v17  ;;  %v1688_v30 = vmul.f32 1.442695, %v1577_v58  ;;  %v1225_v50 = vmax.f32 %v4933_v6, %v1224_v25  ;;  %v1760_v52 = vrot.slane %v1759_v32, 2 }
 0x203   : > { %6033 = vst [vmem:[#allocation20_spill] sm:$0xff] %v4959_v38  ;;  %v3766_v44 = vpop.eup %3765  ;;  %v1974_v7 = vrot.slane %v4959_v38, 4  ;;  %v1988_v21 = vrot.slane %v1987_v29, 2  ;;  %v1686_v11 = vmul.f32 1.442695, %v1576_v45  ;;  %v1437_v18 = vmax.f32 %v1435_v48, %v1436_v5 }
 0x204   : > { %v4965_v57 = vpop.eup %3767  ;;  %v1750_v13 = vrot.slane %v1749_v15, 1  ;;  %v4969_v2 = vadd.f32 %v1994_v59, %v1993_v14  ;;  %v4974_v17 = vmul.f32 %v3766_v44, %v4900_v51  ;;  %3775 = vpow2.f32 %v1688_v30  ;;  %v4983_v30 = vpop.xlane.xlu0 %1102 }
 0x205   : > { %v4967_v24 = vpop.eup %3769  ;;  %v1975_v9 = vadd.f32 %v4959_v38, %v1974_v7  ;;  %v1788_v27 = vrot.slane %v4965_v57, 4  ;;  %v1989_v36 = vadd.f32 %v1988_v21, %v1987_v29  ;;  %v1540_v25 = vsub.f32 %v4920_v61, %v1211_v60 }
 0x206   : > { %6034 = vst [vmem:[#allocation21_spill] sm:$0xff] %v4967_v24  ;;  %6035 = vst [vmem:[#allocation22_spill] sm:$0xff] %v4969_v2  ;;  %v1751_v55 = vadd.f32 %v1750_v13, %v1749_v15  ;;  %3777 = vpow2.f32 %v1686_v11  ;;  %v1438_v59 = vrot.slane %v1437_v18, 1  ;;  %v1226_v45 = vrot.slane %v1225_v50, 2 }
 0x207   : > { %6036 = vst [vmem:[#allocation23_spill] sm:$0xff] %v4974_v17  ;;  %v1976_v42 = vrot.slane %v1975_v9, 2  ;;  %v1789_v48 = vadd.f32 %v4965_v57, %v1788_v27  ;;  %v3772_v5 = vpop.eup %3771  ;;  %v1990_v58 = vrot.slane %v1989_v36, 1  ;;  %v1614_v14 = vmul.f32 1.442695, %v1540_v25  ;;  %v4987_v25 = vpop.xlane.xlu1 %1105 }
 0x208   : > { %v4978_v7 = vpop.eup %3773  ;;  %v4981_v51 = vadd.f32 %v1760_v52, %v1759_v32  ;;  %v2125_v13 = vmul.f32 %v3772_v5, %v4914_v26  ;;  %v1439_v60 = vmax.f32 %v1437_v18, %v1438_v59  ;;  %v1227_v27 = vmax.f32 %v1225_v50, %v1226_v45  ;;  %v4995_v59 = vpop.xlane.xlu0 %991 }
 0x209   : > { %v1977_v29 = vadd.f32 %v1976_v42, %v1975_v9  ;;  %v1790_v44 = vrot.slane %v1789_v48, 2  ;;  %v1770_v61 = vrot.slane %v4978_v7, 4  ;;  %3779 = vpow2.f32 %v1614_v14 }
 0x20a   : > { %v1991_v15 = vadd.f32 %v1990_v58, %v1989_v36  ;;  %3781 = vrcp.f32 %v1751_v55  ;;  %v1578_v52 = vsub.f32 %v4925_v35, %v1439_v60  ;;  %v1231_v9 = vmax.f32 %v4948_v34, %v1230_v39 }
 0x20b   : > { %v1978_v21 = vrot.slane %v1977_v29, 1  ;;  %v1791_v11 = vadd.f32 %v1790_v44, %v1789_v48  ;;  %v1771_v32 = vadd.f32 %v4978_v7, %v1770_v61  ;;  %v1228_v26 = vrot.slane %v1227_v27, 1 }
 0x20c   : > { %v1440_v5 = vrot.slane %v4983_v30, 4  ;;  %v1690_v18 = vmul.f32 1.442695, %v1578_v52  ;;  %v1232_v36 = vrot.slane %v1231_v9, 2  ;;  %v1446_v48 = vrot.slane %v4987_v25, 4  ;;  %v5017_v54 = vpop.xlane.xlu0 %1000 }
 0x20d   : > { %v1979_v42 = vadd.f32 %v1978_v21, %v1977_v29  ;;  %v1792_v10 = vrot.slane %v1791_v11, 1  ;;  %v1772_v14 = vrot.slane %v1771_v32, 2  ;;  %3783 = vrcp.f32 %v1991_v15  ;;  %v5004_v15 = vpop.xlane.xlu1 %1114 }
 0x20e   : > { %v1229_v58 = vmax.f32 %v1227_v27, %v1228_v26  ;;  %v1441_v55 = vmax.f32 %v4983_v30, %v1440_v5  ;;  %v4997_v35 = vpop.eup %3775  ;;  %3785 = vpow2.f32 %v1690_v18  ;;  %v1233_v45 = vmax.f32 %v1231_v9, %v1232_v36  ;;  %v4003_v36 = vld [vmem:[%s4292_s6 + $0x48] sm:$0xff] }
 0x20f   : > { %v1793_v50 = vadd.f32 %v1792_v10, %v1791_v11  ;;  %6037 = vst [vmem:[#allocation24_spill] sm:$0xff] %v4997_v35  ;;  %v1773_v39 = vadd.f32 %v1772_v14, %v1771_v32  ;;  %v1447_v29 = vmax.f32 %v4987_v25, %v1446_v48  ;;  %3787 = vrcp.f32 %v1979_v42 }
 0x210   : > { %v5000_v44 = vpop.eup %3777  ;;  %v2004_v61 = vrot.slane %v4997_v35, 4  ;;  %v1543_v60 = vsub.f32 %v4933_v6, %v1229_v58  ;;  %v1442_v10 = vrot.slane %v1441_v55, 2  ;;  %v1234_v27 = vrot.slane %v1233_v45, 1  ;;  %v5042_v1 = vpop.xlane.xlu0 %1108 }
 0x211   : > { %6038 = vst [vmem:[#allocation25_spill] sm:$0xff] %v5000_v44  ;;  %v1774_v21 = vrot.slane %v1773_v39, 1  ;;  %v1998_v11 = vrot.slane %v5000_v44, 4  ;;  %v1448_v32 = vrot.slane %v1447_v29, 2  ;;  %v1218_v42 = vrot.slane %v4995_v59, 4 }
 0x212   : > { %v5008_v52 = vadd.f32 %v4997_v35, %v2004_v61  ;;  %v1620_v9 = vmul.f32 1.442695, %v1543_v60  ;;  %v1443_v26 = vmax.f32 %v1441_v55, %v1442_v10  ;;  %3789 = vrcp.f32 %v1793_v50 }
 0x213   : > { %v5011_v5 = vpop.eup %3779  ;;  %v1775_v6 = vadd.f32 %v1774_v21, %v1773_v39  ;;  %v1235_v14 = vmax.f32 %v1233_v45, %v1234_v27  ;;  %v1449_v18 = vmax.f32 %v1447_v29, %v1448_v32  ;;  %v5014_v48 = vmul.f32 %v4003_v36, %v2125_v13  ;;  %v5027_v21 = vpop.xlane.xlu1 %1003 }
 0x214   : > { %6039 = vst [vmem:[#allocation26_spill] sm:$0xff] %v5008_v52  ;;  %v1782_v58 = vrot.slane %v5011_v5, 4  ;;  %3791 = vpow2.f32 %v1620_v9  ;;  %v1444_v12 = vrot.slane %v1443_v26, 1  ;;  %v5019_v61 = vpop.eup %3781  ;;  %v1999_v60 = vadd.f32 %v5000_v44, %v1998_v11 }
 0x215   : > { %v1544_v50 = vsub.f32 %v4948_v34, %v1235_v14  ;;  %v1450_v39 = vrot.slane %v1449_v18, 1  ;;  %v1219_v13 = vmax.f32 %v4995_v59, %v1218_v42  ;;  %v1464_v10 = vrot.slane %v5004_v15, 4 }
 0x216   : > { %v1783_v45 = vadd.f32 %v5011_v5, %v1782_v58  ;;  %v1445_v29 = vmax.f32 %v1443_v26, %v1444_v12  ;;  %3793 = vrcp.f32 %v1775_v6  ;;  %v1236_v9 = vrot.slane %v5017_v54, 4 }
 0x217   : > { %v1622_v27 = vmul.f32 1.442695, %v1544_v50  ;;  %v1451_v32 = vmax.f32 %v1449_v18, %v1450_v39  ;;  %v5030_v36 = vpop.eup %3783  ;;  %v1220_v14 = vrot.slane %v1219_v13, 2  ;;  %v1465_v58 = vmax.f32 %v5004_v15, %v1464_v10 }
 0x218   : > { %6040 = vst [vmem:[#allocation27_spill] sm:$0xff] %v5030_v36  ;;  %v1784_v11 = vrot.slane %v1783_v45, 2  ;;  %v1579_v34 = vsub.f32 %v4983_v30, %v1445_v29  ;;  %v5034_v12 = vpop.eup %3785  ;;  %v1237_v42 = vmax.f32 %v5017_v54, %v1236_v9  ;;  %v1242_v6 = vrot.slane %v5027_v21, 4 }
 0x219   : > { %3795 = vpow2.f32 %v1622_v27  ;;  %v1580_v26 = vsub.f32 %v4987_v25, %v1451_v32  ;;  %v5039_v18 = vpop.eup %3787  ;;  %v2010_v39 = vrot.slane %v5034_v12, 4  ;;  %v1221_v35 = vmax.f32 %v1219_v13, %v1220_v14 }
 0x21a   : > { %6041 = vst [vmem:[#allocation28_spill] sm:$0xff] %v5039_v18  ;;  %v1785_v50 = vadd.f32 %v1784_v11, %v1783_v45  ;;  %v1692_v55 = vmul.f32 1.442695, %v1579_v34  ;;  %v2000_v30 = vrot.slane %v1999_v60, 2  ;;  %v1466_v44 = vrot.slane %v1465_v58, 2 }
 0x21b   : > { %v1694_v29 = vmul.f32 1.442695, %v1580_v26  ;;  %v1238_v10 = vrot.slane %v1237_v42, 2  ;;  %v2011_v25 = vadd.f32 %v5034_v12, %v2010_v39  ;;  %v1222_v32 = vrot.slane %v1221_v35, 1 }
 0x21c   : > { %v1786_v27 = vrot.slane %v1785_v50, 1  ;;  %3797 = vpow2.f32 %v1692_v55  ;;  %v3790_v9 = vpop.eup %3789  ;;  %v1467_v17 = vmax.f32 %v1465_v58, %v1466_v44  ;;  %v1243_v45 = vmax.f32 %v5027_v21, %v1242_v6 }
 0x21d   : > { %3799 = vpow2.f32 %v1694_v29  ;;  %v1239_v56 = vmax.f32 %v1237_v42, %v1238_v10  ;;  %v2012_v34 = vrot.slane %v2011_v25, 2  ;;  %v1223_v14 = vmax.f32 %v1221_v35, %v1222_v32 }
 0x21e   : > { %v5046_v11 = vpop.eup %3791  ;;  %v1787_v13 = vadd.f32 %v1786_v27, %v1785_v50  ;;  %v1452_v26 = vrot.slane %v5042_v1, 4  ;;  %v1468_v28 = vrot.slane %v1467_v17, 1  ;;  %v1244_v39 = vrot.slane %v1243_v45, 2 }
 0x21f   : > { %v1800_v36 = vrot.slane %v5046_v11, 4  ;;  %v1240_v24 = vrot.slane %v1239_v56, 1  ;;  %v5051_v55 = vmul.f32 %v3790_v9, %v4965_v57  ;;  %v5053_v29 = vadd.f32 %v2000_v30, %v1999_v60 }
 0x220   : > { %v2013_v44 = vadd.f32 %v2012_v34, %v2011_v25  ;;  %v1542_v58 = vsub.f32 %v4995_v59, %v1223_v14  ;;  %v3794_v42 = vpop.eup %3793  ;;  %v1469_v50 = vmax.f32 %v1467_v17, %v1468_v28  ;;  %v1245_v10 = vmax.f32 %v1243_v45, %v1244_v39  ;;  %v5062_v59 = vpop.xlane.xlu1 %1111 }
 0x221   : > { %6042 = vst [vmem:[#allocation29_spill] sm:$0xff] %v5053_v29  ;;  %v1801_v6 = vadd.f32 %v5046_v11, %v1800_v36  ;;  %v1241_v35 = vmax.f32 %v1239_v56, %v1240_v24  ;;  %3801 = vrcp.f32 %v1787_v13  ;;  %v1453_v53 = vmax.f32 %v5042_v1, %v1452_v26  ;;  %v5065_v13 = vpop.xlane.xlu0 %1006 }
 0x222   : > { %v2014_v27 = vrot.slane %v2013_v44, 1  ;;  %v1618_v32 = vmul.f32 1.442695, %v1542_v58  ;;  %v1583_v60 = vsub.f32 %v5004_v15, %v1469_v50  ;;  %v1246_v25 = vrot.slane %v1245_v10, 1 }
 0x223   : > { %v5058_v37 = vpop.eup %3795  ;;  %v1802_v57 = vrot.slane %v1801_v6, 2  ;;  %v1545_v30 = vsub.f32 %v5017_v54, %v1241_v35  ;;  %v1454_v56 = vrot.slane %v1453_v53, 2  ;;  %v1458_v14 = vrot.slane %v5062_v59, 4 }
 0x224   : > { %v2015_v9 = vadd.f32 %v2014_v27, %v2013_v44  ;;  %v1806_v28 = vrot.slane %v5058_v37, 4  ;;  %3803 = vpow2.f32 %v1618_v32  ;;  %v1700_v17 = vmul.f32 1.442695, %v1583_v60 }
 0x225   : > { %v1803_v24 = vadd.f32 %v1802_v57, %v1801_v6  ;;  %v1624_v36 = vmul.f32 1.442695, %v1545_v30  ;;  %v1247_v45 = vmax.f32 %v1245_v10, %v1246_v25  ;;  %v1455_v54 = vmax.f32 %v1453_v53, %v1454_v56 }
 0x226   : > { %v5067_v34 = vpop.eup %3797  ;;  %3805 = vrcp.f32 %v2015_v9  ;;  %v1807_v15 = vadd.f32 %v5058_v37, %v1806_v28  ;;  %v1459_v53 = vmax.f32 %v5062_v59, %v1458_v14  ;;  %v1248_v25 = vrot.slane %v5065_v13, 4  ;;  %v5080_v9 = vpop.xlane.xlu1 %1009 }
 0x227   : > { %v5071_v26 = vpop.eup %3799  ;;  %v1804_v39 = vrot.slane %v1803_v24, 1  ;;  %v2016_v44 = vrot.slane %v5067_v34, 4  ;;  %3807 = vpow2.f32 %v1700_v17  ;;  %v1546_v58 = vsub.f32 %v5027_v21, %v1247_v45  ;;  %v5083_v17 = vpop.xlane.xlu0 %1012 }
 0x228   : > { %6043 = vst [vmem:[#allocation30_spill] sm:$0xff] %v5071_v26  ;;  %v1808_v6 = vrot.slane %v1807_v15, 2  ;;  %v2022_v50 = vrot.slane %v5071_v26, 4  ;;  %3809 = vpow2.f32 %v1624_v36  ;;  %v1456_v35 = vrot.slane %v1455_v54, 1 }
 0x229   : > { %v1805_v10 = vadd.f32 %v1804_v39, %v1803_v24  ;;  %v2017_v27 = vadd.f32 %v5067_v34, %v2016_v44  ;;  %v1626_v32 = vmul.f32 1.442695, %v1546_v58  ;;  %v2123_v21 = vmul.f32 %v3794_v42, %v4978_v7 }
 0x22a   : > { %v1809_v57 = vadd.f32 %v1808_v6, %v1807_v15  ;;  %v2023_v60 = vadd.f32 %v5071_v26, %v2022_v50  ;;  %v1457_v30 = vmax.f32 %v1455_v54, %v1456_v35  ;;  %v1460_v56 = vrot.slane %v1459_v53, 2 }
 0x22b   : > { %3811 = vrcp.f32 %v1805_v10  ;;  %v2018_v28 = vrot.slane %v2017_v27, 2  ;;  %v3802_v24 = vpop.eup %3801  ;;  %v1249_v39 = vmax.f32 %v5065_v13, %v1248_v25  ;;  %v1254_v44 = vrot.slane %v5080_v9, 4 }
 0x22c   : > { %v1810_v36 = vrot.slane %v1809_v57, 1  ;;  %v2024_v45 = vrot.slane %v2023_v60, 2  ;;  %3813 = vpow2.f32 %v1626_v32  ;;  %v1581_v15 = vsub.f32 %v5042_v1, %v1457_v30  ;;  %v4004_v1 = vld [vmem:[%s4292_s6 + $0x40] sm:$0xff] }
 0x22d   : > { %v2019_v14 = vadd.f32 %v2018_v28, %v2017_v27  ;;  %v1461_v54 = vmax.f32 %v1459_v53, %v1460_v56  ;;  %v1260_v50 = vrot.slane %v5083_v17, 4  ;;  %v1250_v26 = vrot.slane %v1249_v39, 2 }
 0x22e   : > { %v5088_v58 = vpop.eup %3803  ;;  %v1811_v7 = vadd.f32 %v1810_v36, %v1809_v57  ;;  %v2025_v42 = vadd.f32 %v2024_v45, %v2023_v60  ;;  %v1696_v6 = vmul.f32 1.442695, %v1581_v15  ;;  %v5093_v27 = vmul.f32 %v4004_v1, %v2123_v21 }
 0x22f   : > { %v2020_v35 = vrot.slane %v2019_v14, 1  ;;  %v1794_v10 = vrot.slane %v5088_v58, 4  ;;  %v1462_v32 = vrot.slane %v1461_v54, 1  ;;  %v1255_v30 = vmax.f32 %v5080_v9, %v1254_v44  ;;  %v5109_v44 = vpop.xlane.xlu1 %1018 }
 0x230   : > { %v3806_v16 = vpop.eup %3805  ;;  %3815 = vrcp.f32 %v1811_v7  ;;  %v2026_v53 = vrot.slane %v2025_v42, 1  ;;  %v5099_v57 = vmul.f32 %v3802_v24, %v5011_v5  ;;  %v1261_v28 = vmax.f32 %v5083_v17, %v1260_v50 }
 0x231   : > { %v5096_v25 = vpop.eup %3807  ;;  %v1795_v60 = vadd.f32 %v5088_v58, %v1794_v10  ;;  %3817 = vpow2.f32 %v1696_v6  ;;  %v5106_v36 = vmul.f32 %v3806_v16, %v5034_v12  ;;  %v1463_v45 = vmax.f32 %v1461_v54, %v1462_v32 }
 0x232   : > { %6044 = vst [vmem:[#allocation31_spill] sm:$0xff] %v5096_v25  ;;  %v5103_v56 = vpop.eup %3809  ;;  %v2040_v21 = vrot.slane %v5096_v25, 4  ;;  %v1251_v15 = vmax.f32 %v1249_v39, %v1250_v26  ;;  %v2021_v7 = vadd.f32 %v2020_v35, %v2019_v14  ;;  %v1256_v24 = vrot.slane %v1255_v30, 2 }
 0x233   : > { %6045 = vst [vmem:[#allocation32_spill] sm:$0xff] %v5106_v36  ;;  %v1796_v1 = vrot.slane %v1795_v60, 2  ;;  %v1812_v5 = vrot.slane %v5103_v56, 4  ;;  %v2027_v10 = vadd.f32 %v2026_v53, %v2025_v42  ;;  %v1582_v50 = vsub.f32 %v5062_v59, %v1463_v45  ;;  %v5120_v42 = vpop.xlane.xlu0 %1123 }
 0x234   : > { %v2041_v6 = vadd.f32 %v5096_v25, %v2040_v21  ;;  %v1252_v8 = vrot.slane %v1251_v15, 1  ;;  %v1257_v54 = vmax.f32 %v1255_v30, %v1256_v24  ;;  %v1262_v26 = vrot.slane %v1261_v28, 2 }
 0x235   : > { %v5114_v18 = vpop.eup %3811  ;;  %v1797_v16 = vadd.f32 %v1796_v1, %v1795_v60  ;;  %v1813_v12 = vadd.f32 %v5103_v56, %v1812_v5  ;;  %v1698_v35 = vmul.f32 1.442695, %v1582_v50  ;;  %v1272_v36 = vrot.slane %v5109_v44, 4  ;;  %v5126_v1 = vpop.xlane.xlu1 %1126 }
 0x236   : > { %v5117_v39 = vpop.eup %3813  ;;  %v2042_v14 = vrot.slane %v2041_v6, 2  ;;  %v1253_v32 = vmax.f32 %v1251_v15, %v1252_v8  ;;  %v1258_v45 = vrot.slane %v1257_v54, 1  ;;  %v1263_v60 = vmax.f32 %v1261_v28, %v1262_v26 }
 0x237   : > { %v1798_v53 = vrot.slane %v1797_v16, 1  ;;  %v1814_v21 = vrot.slane %v1813_v12, 2  ;;  %v1818_v59 = vrot.slane %v5117_v39, 4  ;;  %3819 = vpow2.f32 %v1698_v35 }
 0x238   : > { %v5123_v25 = vadd.f32 %v2042_v14, %v2041_v6  ;;  %v1547_v30 = vsub.f32 %v5065_v13, %v1253_v32  ;;  %3821 = vrcp.f32 %v2021_v7  ;;  %v1259_v15 = vmax.f32 %v1257_v54, %v1258_v45  ;;  %v5137_v14 = vpop.xlane.xlu0 %1024 }
 0x239   : > { %v1799_v5 = vadd.f32 %v1798_v53, %v1797_v16  ;;  %v1819_v8 = vadd.f32 %v5117_v39, %v1818_v59  ;;  %v1815_v50 = vadd.f32 %v1814_v21, %v1813_v12  ;;  %v1264_v52 = vrot.slane %v1263_v60, 1  ;;  %v5142_v59 = vpop.xlane.xlu1 %1015 }
 0x23a   : > { %6046 = vst [vmem:[#allocation33_spill] sm:$0xff] %v5123_v25  ;;  %v5129_v24 = vpop.eup %3815  ;;  %v1628_v38 = vmul.f32 1.442695, %v1547_v30  ;;  %v1273_v29 = vmax.f32 %v5109_v44, %v1272_v36  ;;  %3823 = vrcp.f32 %v2027_v10  ;;  %v1548_v26 = vsub.f32 %v5080_v9, %v1259_v15 }
 0x23b   : > { %v5132_v6 = vpop.eup %3817  ;;  %v1820_v28 = vrot.slane %v1819_v8, 2  ;;  %v1265_v16 = vmax.f32 %v1263_v60, %v1264_v52  ;;  %v1482_v36 = vrot.slane %v5120_v42, 4  ;;  %v1816_v32 = vrot.slane %v1815_v50, 1 }
 0x23c   : > { %6047 = vst [vmem:[#allocation34_spill] sm:$0xff] %v5132_v6  ;;  %v2028_v7 = vrot.slane %v5132_v6, 4  ;;  %3825 = vpow2.f32 %v1628_v38  ;;  %v1274_v54 = vrot.slane %v1273_v29, 2  ;;  %v1630_v35 = vmul.f32 1.442695, %v1548_v26 }
 0x23d   : > { %3827 = vrcp.f32 %v1799_v5  ;;  %v1821_v12 = vadd.f32 %v1820_v28, %v1819_v8  ;;  %v1549_v53 = vsub.f32 %v5083_v17, %v1265_v16  ;;  %v1483_v38 = vmax.f32 %v5120_v42, %v1482_v36 }
 0x23e   : > { %v2029_v10 = vadd.f32 %v5132_v6, %v2028_v7  ;;  %v1275_v21 = vmax.f32 %v1273_v29, %v1274_v54  ;;  %3829 = vpow2.f32 %v1630_v35  ;;  %v1488_v52 = vrot.slane %v5126_v1, 4  ;;  %v5152_v54 = vpop.xlane.xlu0 %1132 }
 0x23f   : > { %v1822_v9 = vrot.slane %v1821_v12, 1  ;;  %v1632_v30 = vmul.f32 1.442695, %v1549_v53  ;;  %v1284_v5 = vrot.slane %v5137_v14, 4  ;;  %v1484_v15 = vrot.slane %v1483_v38, 2 }
 0x240   : > { %v2030_v45 = vrot.slane %v2029_v10, 2  ;;  %v1276_v60 = vrot.slane %v1275_v21, 1  ;;  %v1489_v28 = vmax.f32 %v5126_v1, %v1488_v52  ;;  %v1266_v17 = vrot.slane %v5142_v59, 4 }
 0x241   : > { %v1823_v8 = vadd.f32 %v1822_v9, %v1821_v12  ;;  %v5149_v29 = vpop.eup %3819  ;;  %3831 = vpow2.f32 %v1632_v30  ;;  %v1285_v16 = vmax.f32 %v5137_v14, %v1284_v5  ;;  %v5156_v36 = vadd.f32 %v1816_v32, %v1815_v50 }
 0x242   : > { %6048 = vst [vmem:[#allocation35_spill] sm:$0xff] %v5149_v29  ;;  %v2031_v26 = vadd.f32 %v2030_v45, %v2029_v10  ;;  %v1277_v7 = vmax.f32 %v1275_v21, %v1276_v60  ;;  %v5154_v35 = vpop.eup %3821  ;;  %v2034_v12 = vrot.slane %v5149_v29, 4  ;;  %v1485_v53 = vmax.f32 %v1483_v38, %v1484_v15 }
 0x243   : > { %v1490_v9 = vrot.slane %v1489_v28, 2  ;;  %v1286_v6 = vrot.slane %v1285_v16, 2  ;;  %v1267_v10 = vmax.f32 %v5142_v59, %v1266_v17  ;;  %v1500_v5 = vrot.slane %v5152_v54, 4 }
 0x244   : > { %v2032_v52 = vrot.slane %v2031_v26, 1  ;;  %v1551_v13 = vsub.f32 %v5109_v44, %v1277_v7  ;;  %v5161_v45 = vpop.eup %3823  ;;  %v2035_v21 = vadd.f32 %v5149_v29, %v2034_v12  ;;  %v1486_v30 = vrot.slane %v1485_v53, 1 }
 0x245   : > { %6049 = vst [vmem:[#allocation36_spill] sm:$0xff] %v5161_v45  ;;  %v1491_v60 = vmax.f32 %v1489_v28, %v1490_v9  ;;  %3833 = vrcp.f32 %v1823_v8  ;;  %v1287_v38 = vmax.f32 %v1285_v16, %v1286_v6  ;;  %v1268_v15 = vrot.slane %v1267_v10, 2 }
 0x246   : > { %v5165_v50 = vpop.eup %3825  ;;  %v1636_v32 = vmul.f32 1.442695, %v1551_v13  ;;  %v2036_v44 = vrot.slane %v2035_v21, 2  ;;  %v1487_v17 = vmax.f32 %v1485_v53, %v1486_v30  ;;  %v2033_v45 = vadd.f32 %v2032_v52, %v2031_v26  ;;  %v5176_v53 = vpop.xlane.xlu1 %1021 }
 0x247   : > { %v5167_v25 = vpop.eup %3827  ;;  %v1824_v7 = vrot.slane %v5165_v50, 4  ;;  %v1492_v2 = vrot.slane %v1491_v60, 1  ;;  %v1288_v22 = vrot.slane %v1287_v38, 1  ;;  %v1269_v12 = vmax.f32 %v1267_v10, %v1268_v15  ;;  %v5178_v26 = vpop.xlane.xlu0 %1027 }
 0x248   : > { %v1501_v28 = vmax.f32 %v5152_v54, %v1500_v5  ;;  %v5171_v9 = vpop.eup %3829  ;;  %v2037_v29 = vadd.f32 %v2036_v44, %v2035_v21  ;;  %3835 = vpow2.f32 %v1636_v32  ;;  %v1586_v6 = vsub.f32 %v5120_v42, %v1487_v17 }
 0x249   : > { %v1825_v8 = vadd.f32 %v5165_v50, %v1824_v7  ;;  %v1830_v13 = vrot.slane %v5171_v9, 4  ;;  %v1493_v16 = vmax.f32 %v1491_v60, %v1492_v2  ;;  %v1289_v62 = vmax.f32 %v1287_v38, %v1288_v22 }
 0x24a   : > { %v1270_v31 = vrot.slane %v1269_v12, 1  ;;  %v2038_v52 = vrot.slane %v2037_v29, 1  ;;  %v1706_v30 = vmul.f32 1.442695, %v1586_v6  ;;  %v1502_v5 = vrot.slane %v1501_v28, 2 }
 0x24b   : > { %v1826_v10 = vrot.slane %v1825_v8, 2  ;;  %v5180_v15 = vpop.eup %3831  ;;  %v1831_v21 = vadd.f32 %v5171_v9, %v1830_v13  ;;  %v1587_v32 = vsub.f32 %v5126_v1, %v1493_v16  ;;  %v1553_v42 = vsub.f32 %v5137_v14, %v1289_v62  ;;  %v5189_v14 = vpop.xlane.xlu1 %1129 }
 0x24c   : > { %6050 = vst [vmem:[#allocation37_spill] sm:$0xff] %v5180_v15  ;;  %v1271_v44 = vmax.f32 %v1269_v12, %v1270_v31  ;;  %v2039_v2 = vadd.f32 %v2038_v52, %v2037_v29  ;;  %v1836_v60 = vrot.slane %v5180_v15, 4  ;;  %3837 = vpow2.f32 %v1706_v30  ;;  %v5191_v29 = vpop.xlane.xlu0 %1135 }
 0x24d   : > { %v1827_v22 = vadd.f32 %v1826_v10, %v1825_v8  ;;  %3839 = vrcp.f32 %v2033_v45  ;;  %v1832_v38 = vrot.slane %v1831_v21, 2  ;;  %v1708_v7 = vmul.f32 1.442695, %v1587_v32 }
 0x24e   : > { %v1640_v17 = vmul.f32 1.442695, %v1553_v42  ;;  %3841 = vrcp.f32 %v2039_v2  ;;  %v1837_v46 = vadd.f32 %v5180_v15, %v1836_v60  ;;  %v1550_v13 = vsub.f32 %v5142_v59, %v1271_v44 }
 0x24f   : > { %v1828_v6 = vrot.slane %v1827_v22, 1  ;;  %v3834_v0 = vpop.eup %3833  ;;  %v1833_v1 = vadd.f32 %v1832_v38, %v1831_v21  ;;  %3843 = vpow2.f32 %v1708_v7  ;;  %v1503_v62 = vmax.f32 %v1501_v28, %v1502_v5 }
 0x250   : > { %v1278_v31 = vrot.slane %v5176_v53, 4  ;;  %v5195_v45 = vmul.f32 %v5154_v35, %v5067_v34  ;;  %v1838_v12 = vrot.slane %v1837_v46, 2  ;;  %3845 = vpow2.f32 %v1640_v17 }
 0x251   : > { %v1634_v8 = vmul.f32 1.442695, %v1550_v13  ;;  %v1829_v16 = vadd.f32 %v1828_v6, %v1827_v22  ;;  %v1504_v52 = vrot.slane %v1503_v62, 1  ;;  %v1290_v10 = vrot.slane %v5178_v26, 4 }
 0x252   : > { %6051 = vst [vmem:[#allocation38_spill] sm:$0xff] %v5195_v45  ;;  %v1279_v59 = vmax.f32 %v5176_v53, %v1278_v31  ;;  %v5199_v28 = vpop.eup %3835  ;;  %v1834_v30 = vrot.slane %v1833_v1, 1  ;;  %v1839_v5 = vadd.f32 %v1838_v12, %v1837_v46  ;;  %v1494_v21 = vrot.slane %v5189_v14, 4 }
 0x253   : > { %6052 = vst [vmem:[#allocation39_spill] sm:$0xff] %v5199_v28  ;;  %v1506_v32 = vrot.slane %v5191_v29, 4  ;;  %v5204_v34 = vmul.f32 %v3834_v0, %v5117_v39  ;;  %v1848_v35 = vrot.slane %v5199_v28, 4  ;;  %3847 = vpow2.f32 %v1634_v8 }
 0x254   : > { %v1505_v42 = vmax.f32 %v1503_v62, %v1504_v52  ;;  %v1840_v44 = vrot.slane %v1839_v5, 1  ;;  %v1280_v2 = vrot.slane %v1279_v59, 2  ;;  %v1291_v22 = vmax.f32 %v5178_v26, %v1290_v10 }
 0x255   : > { %6053 = vst [vmem:[#allocation40_spill] sm:$0xff] %v5204_v34  ;;  %v1495_v60 = vmax.f32 %v5189_v14, %v1494_v21  ;;  %3849 = vrcp.f32 %v1829_v16  ;;  %v1849_v46 = vadd.f32 %v5199_v28, %v1848_v35  ;;  %v1507_v7 = vmax.f32 %v5191_v29, %v1506_v32 }
 0x256   : > { %v1589_v38 = vsub.f32 %v5152_v54, %v1505_v42  ;;  %v5212_v17 = vpop.eup %3837  ;;  %v1835_v0 = vadd.f32 %v1834_v30, %v1833_v1  ;;  %v1281_v39 = vmax.f32 %v1279_v59, %v1280_v2  ;;  %v1292_v6 = vrot.slane %v1291_v22, 2 }
 0x257   : > { %v1496_v13 = vrot.slane %v1495_v60, 2  ;;  %v5214_v62 = vpop.eup %3839  ;;  %v1850_v31 = vrot.slane %v1849_v46, 2  ;;  %v2058_v12 = vrot.slane %v5212_v17, 4  ;;  %v1508_v52 = vrot.slane %v1507_v7, 2 }
 0x258   : > { %6054 = vst [vmem:[#allocation41_spill] sm:$0xff] %v5214_v62  ;;  %v1712_v8 = vmul.f32 1.442695, %v1589_v38  ;;  %v5217_v16 = vpop.eup %3841  ;;  %v1841_v10 = vadd.f32 %v1840_v44, %v1839_v5  ;;  %v1282_v21 = vrot.slane %v1281_v39, 1  ;;  %v1293_v54 = vmax.f32 %v1291_v22, %v1292_v6  ;;  %v5229_v5 = vpop.xlane.xlu0 %1036 }
 0x259   : > { %6055 = vst [vmem:[#allocation42_spill] sm:$0xff] %v5217_v16  ;;  %v1497_v35 = vmax.f32 %v1495_v60, %v1496_v13  ;;  %v5219_v32 = vpop.eup %3843  ;;  %v5221_v42 = vadd.f32 %v1850_v31, %v1849_v46  ;;  %v2059_v1 = vadd.f32 %v5212_v17, %v2058_v12  ;;  %v1509_v59 = vmax.f32 %v1507_v7, %v1508_v52  ;;  %v5227_v16 = vpop.xlane.xlu1 %1030 }
 0x25a   : > { %3851 = vpow2.f32 %v1712_v8  ;;  %v5224_v30 = vpop.eup %3845  ;;  %v2064_v2 = vrot.slane %v5219_v32, 4  ;;  %v1283_v38 = vmax.f32 %v1281_v39, %v1282_v21  ;;  %v1294_v45 = vrot.slane %v1293_v54, 1 }
 0x25b   : > { %6056 = vst [vmem:[#allocation43_spill] sm:$0xff] %v5224_v30  ;;  %v1498_v62 = vrot.slane %v1497_v35, 1  ;;  %3853 = vrcp.f32 %v1835_v0  ;;  %v2060_v44 = vrot.slane %v2059_v1, 2  ;;  %v1860_v22 = vrot.slane %v5224_v30, 4 }
 0x25c   : > { %v1510_v60 = vrot.slane %v1509_v59, 1  ;;  %v2065_v46 = vadd.f32 %v5219_v32, %v2064_v2  ;;  %v1552_v7 = vsub.f32 %v5176_v53, %v1283_v38  ;;  %v1295_v6 = vmax.f32 %v1293_v54, %v1294_v45 }
 0x25d   : > { %v1499_v13 = vmax.f32 %v1497_v35, %v1498_v62  ;;  %v5234_v31 = vpop.eup %3847  ;;  %3855 = vrcp.f32 %v1841_v10  ;;  %v2061_v12 = vadd.f32 %v2060_v44, %v2059_v1  ;;  %v5240_v2 = vadd.f32 %v5224_v30, %v1860_v22  ;;  %v5245_v35 = vpop.xlane.xlu1 %1033 }
 0x25e   : > { %v1511_v8 = vmax.f32 %v1509_v59, %v1510_v60  ;;  %v2066_v52 = vrot.slane %v2065_v46, 2  ;;  %v1842_v0 = vrot.slane %v5234_v31, 4  ;;  %v1638_v21 = vmul.f32 1.442695, %v1552_v7  ;;  %v5247_v1 = vpop.xlane.xlu0 %1042 }
 0x25f   : > { %v1554_v28 = vsub.f32 %v5178_v26, %v1295_v6  ;;  %v3850_v34 = vpop.eup %3849  ;;  %v2062_v15 = vrot.slane %v2061_v12, 1  ;;  %v1588_v53 = vsub.f32 %v5189_v14, %v1499_v13  ;;  %v1296_v44 = vrot.slane %v5227_v16, 4 }
 0x260   : > { %v1590_v45 = vsub.f32 %v5191_v29, %v1511_v8  ;;  %v2067_v62 = vadd.f32 %v2066_v52, %v2065_v46  ;;  %v1843_v10 = vadd.f32 %v5234_v31, %v1842_v0  ;;  %3857 = vpow2.f32 %v1638_v21 }
 0x261   : > { %v1642_v54 = vmul.f32 1.442695, %v1554_v28  ;;  %v2063_v59 = vadd.f32 %v2062_v15, %v2061_v12  ;;  %v1710_v26 = vmul.f32 1.442695, %v1588_v53  ;;  %v1308_v14 = vrot.slane %v5229_v5, 4 }
 0x262   : > { %v1714_v38 = vmul.f32 1.442695, %v1590_v45  ;;  %v2068_v22 = vrot.slane %v2067_v62, 1  ;;  %v1844_v60 = vrot.slane %v1843_v10, 2  ;;  %v1297_v46 = vmax.f32 %v5227_v16, %v1296_v44 }
 0x263   : > { %3859 = vpow2.f32 %v1642_v54  ;;  %v1302_v28 = vrot.slane %v5245_v35, 4  ;;  %v1320_v7 = vrot.slane %v5247_v1, 4  ;;  %v1309_v52 = vmax.f32 %v5229_v5, %v1308_v14 }
 0x264   : > { %v5251_v29 = vpop.eup %3851  ;;  %3861 = vrcp.f32 %v2063_v59  ;;  %v2069_v6 = vadd.f32 %v2068_v22, %v2067_v62  ;;  %v1845_v15 = vadd.f32 %v1844_v60, %v1843_v10  ;;  %v1298_v8 = vrot.slane %v1297_v46, 2 }
 0x265   : > { %6057 = vst [vmem:[#allocation44_spill] sm:$0xff] %v5251_v29  ;;  %v2076_v13 = vrot.slane %v5251_v29, 4  ;;  %3863 = vpow2.f32 %v1710_v26  ;;  %v5257_v12 = vpop.eup %3853  ;;  %v1303_v0 = vmax.f32 %v5245_v35, %v1302_v28  ;;  %v5262_v21 = vmul.f32 %v3850_v34, %v5165_v50 }
 0x266   : > { %3865 = vpow2.f32 %v1714_v38  ;;  %v1846_v53 = vrot.slane %v1845_v15, 1  ;;  %v1321_v62 = vmax.f32 %v5247_v1, %v1320_v7  ;;  %v1299_v59 = vmax.f32 %v1297_v46, %v1298_v8 }
 0x267   : > { %6058 = vst [vmem:[#allocation45_spill] sm:$0xff] %v5262_v21  ;;  %v2077_v45 = vadd.f32 %v5251_v29, %v2076_v13  ;;  %v5266_v10 = vpop.eup %3855  ;;  %v1310_v26 = vrot.slane %v1309_v52, 2  ;;  %v1304_v38 = vrot.slane %v1303_v0, 2  ;;  %v1762_v14 = vrot.slane %v4981_v51, 1 }
 0x268   : > { %v1847_v44 = vadd.f32 %v1846_v53, %v1845_v15  ;;  %v1322_v60 = vrot.slane %v1321_v62, 2  ;;  %3867 = vrcp.f32 %v2069_v6  ;;  %v1300_v50 = vrot.slane %v1299_v59, 1 }
 0x269   : > { %v2078_v22 = vrot.slane %v2077_v45, 2  ;;  %v1311_v34 = vmax.f32 %v1309_v52, %v1310_v26  ;;  %v1305_v28 = vmax.f32 %v1303_v0, %v1304_v38  ;;  %v6060_v29 = vrot.slane %v4886_v33, 1 }
 0x26a   : > { %v5270_v39 = vpop.eup %3857  ;;  %v1323_v7 = vmax.f32 %v1321_v62, %v1322_v60  ;;  %v6061_v46 = vrot.slane %v4858_v41, 2  ;;  %v1301_v53 = vmax.f32 %v1299_v59, %v1300_v50  ;;  %3869 = vrcp.f32 %v1847_v44 }
 0x26b   : > { %6059 = vst [vmem:[#allocation46_spill] sm:$0xff] %v5270_v39  ;;  %v2079_v13 = vadd.f32 %v2078_v22, %v2077_v45  ;;  %v1757_v54 = vadd.f32 %v6060_v29, %v4886_v33  ;;  %v1854_v8 = vrot.slane %v5270_v39, 4  ;;  %v1312_v30 = vrot.slane %v1311_v34, 1 }
 0x26c   : > { %v1767_v15 = vadd.f32 %v6061_v46, %v4858_v41  ;;  %v1306_v6 = vrot.slane %v1305_v28, 1  ;;  %v1324_v0 = vrot.slane %v1323_v7, 1  ;;  %v1763_v45 = vadd.f32 %v1762_v14, %v4981_v51 }
 0x26d   : > { %v5279_v21 = vpop.eup %3859  ;;  %v2080_v52 = vrot.slane %v2079_v13, 1  ;;  %v5283_v26 = vadd.f32 %v5270_v39, %v1854_v8  ;;  %v1555_v41 = vsub.f32 %v5227_v16, %v1301_v53  ;;  %v1313_v29 = vmax.f32 %v1311_v34, %v1312_v30 }
 0x26e   : > { %v3862_v62 = vpop.eup %3861  ;;  %v1866_v33 = vrot.slane %v5279_v21, 4  ;;  %v1307_v22 = vmax.f32 %v1305_v28, %v1306_v6  ;;  %v1768_v60 = vrot.slane %v1767_v15, 1  ;;  %v2111_v44 = vmul.f32 %v4908_v20, %v4823_v3 }
 0x26f   : > { %v5287_v38 = vpop.eup %3863  ;;  %v2081_v59 = vadd.f32 %v2080_v52, %v2079_v13  ;;  %v1644_v46 = vmul.f32 1.442695, %v1555_v41  ;;  %v1325_v8 = vmax.f32 %v1323_v7, %v1324_v0  ;;  %v5296_v39 = vmul.f32 %v3862_v62, %v5212_v17 }
 0x270   : > { %6062 = vst [vmem:[#allocation47_spill] sm:$0xff] %v5287_v38  ;;  %v5291_v50 = vpop.eup %3865  ;;  %v1867_v51 = vadd.f32 %v5279_v21, %v1866_v33  ;;  %v2070_v14 = vrot.slane %v5287_v38, 4  ;;  %v1557_v30 = vsub.f32 %v5229_v5, %v1313_v29  ;;  %v1556_v34 = vsub.f32 %v5245_v35, %v1307_v22 }
 0x271   : > { %6063 = vst [vmem:[#allocation48_spill] sm:$0xff] %v5291_v50  ;;  %6064 = vst [vmem:[#allocation49_spill] sm:$0xff] %v5296_v39  ;;  %v2082_v16 = vrot.slane %v5291_v50, 4  ;;  %3871 = vrcp.f32 %v2081_v59  ;;  %v1856_v3 = vrot.slane %v5283_v26, 2  ;;  %v1559_v5 = vsub.f32 %v5247_v1, %v1325_v8  ;;  %v4005_v1 = vld [vmem:[%s4292_s6] sm:$0xff]  ;;  %v4008_v8 = vld [vmem:[%s4292_s6 + $0x18] sm:$0xff] }
 0x272   : > { %v1868_v20 = vrot.slane %v1867_v51, 2  ;;  %v2071_v28 = vadd.f32 %v5287_v38, %v2070_v14  ;;  %3873 = vpow2.f32 %v1644_v46  ;;  %v1648_v53 = vmul.f32 1.442695, %v1557_v30  ;;  %v3868_v6 = vpop.eup %3867  ;;  %v4009_v30 = vld [vmem:[%s4292_s6 + $0x20] sm:$0xff]  ;;  %v4012_v39 = vld [vmem:[%s4292_s6 + $0x38] sm:$0xff] }
 0x273   : > { %v2083_v13 = vadd.f32 %v5291_v50, %v2082_v16  ;;  %v1646_v7 = vmul.f32 1.442695, %v1556_v34  ;;  %v1769_v0 = vadd.f32 %v1768_v60, %v1767_v15  ;;  %v2113_v62 = vmul.f32 %v4895_v40, %v4810_v63  ;;  %v4006_v60 = vld [vmem:[%s4292_s6 + $0x8] sm:$0xff] }
 0x274   : > { %v1869_v17 = vadd.f32 %v1868_v20, %v1867_v51  ;;  %v2072_v52 = vrot.slane %v2071_v28, 2  ;;  %3875 = vpow2.f32 %v1648_v53  ;;  %v2115_v33 = vmul.f32 %v5019_v61, %v4936_v49  ;;  %v5309_v22 = vpop.eup %3869  ;;  %v4007_v49 = vld [vmem:[%s4292_s6 + $0x10] sm:$0xff] }
 0x275   : > { %v2084_v35 = vrot.slane %v2083_v13, 2  ;;  %3877 = vpow2.f32 %v1646_v7  ;;  %v1652_v59 = vmul.f32 1.442695, %v1559_v5  ;;  %v2234_v15 = vmul.f32 %v4005_v1, %v4891_v43 }
 0x276   : > { %v1870_v41 = vrot.slane %v1869_v17, 1  ;;  %v2073_v29 = vadd.f32 %v2072_v52, %v2071_v28  ;;  %3879 = vrcp.f32 %v1757_v54  ;;  %v2235_v63 = vmul.f32 %v4006_v60, %v4870_v19 }
 0x277   : > { %v2085_v51 = vadd.f32 %v2084_v35, %v2083_v13  ;;  %3881 = vpow2.f32 %v1652_v59  ;;  %v2236_v61 = vmul.f32 %v4007_v49, %v2111_v44  ;;  %v2237_v16 = vmul.f32 %v4008_v8, %v2113_v62 }
 0x278   : > { %v1871_v40 = vadd.f32 %v1870_v41, %v1869_v17  ;;  %v2074_v14 = vrot.slane %v2073_v29, 1  ;;  %3883 = vrcp.f32 %v1763_v45  ;;  %v2238_v34 = vmul.f32 %v4009_v30, %v2115_v33 }
 0x279   : > { %v2086_v46 = vrot.slane %v2085_v51, 1  ;;  %v2298_v54 = vsel %vm244_vm0, %v2234_v15, 0.0  ;;  %v2305_v43 = vsel %vm244_vm0, %v2235_v63, 0.0  ;;  %v5323_v44 = vmul.f32 %v3868_v6, %v5219_v32 }
 0x27a   : > { %3885 = vrcp.f32 %v1871_v40  ;;  %v2075_v20 = vadd.f32 %v2074_v14, %v2073_v29  ;;  %v2299_v19 = vrot.slane %v2298_v54, 4  ;;  %v2306_v13 = vrot.slane %v2305_v43, 4 }
 0x27b   : > { %v2087_v28 = vadd.f32 %v2086_v46, %v2085_v51  ;;  %3887 = vrcp.f32 %v1769_v0  ;;  %v5320_v53 = vpop.eup %3871  ;;  %6066 = vst [vmem:[#allocation51_spill] sm:$0xff] %v5323_v44  ;;  %v2312_v45 = vsel %vm244_vm0, %v2236_v61, 0.0  ;;  %v2319_v7 = vsel %vm244_vm0, %v2237_v16, 0.0 }
 0x27c   : > { %6065 = vst [vmem:[#allocation50_spill] sm:$0xff] %v5320_v53  ;;  %v2326_v17 = vsel %vm244_vm0, %v2238_v34, 0.0  ;;  %v5328_v52 = vpop.eup %3873  ;;  %v5331_v5 = vadd.f32 %v1856_v3, %v5283_v26  ;;  %v2300_v35 = vadd.f32 %v2299_v19, %v2298_v54  ;;  %v2307_v0 = vadd.f32 %v2306_v13, %v2305_v43 }
 0x27d   : > { %v2313_v62 = vrot.slane %v2312_v45, 4  ;;  %3889 = vrcp.f32 %v2075_v20  ;;  %v1872_v33 = vrot.slane %v5328_v52, 4  ;;  %v2320_v41 = vrot.slane %v2319_v7, 4 }
 0x27e   : > { %v2327_v32 = vrot.slane %v2326_v17, 4  ;;  %v5334_v6 = vpop.eup %3875  ;;  %3891 = vrcp.f32 %v2087_v28  ;;  %v2301_v29 = vrot.slane %v2300_v35, 2  ;;  %v2308_v59 = vrot.slane %v2307_v0, 2 }
 0x27f   : > { %v2314_v51 = vadd.f32 %v2313_v62, %v2312_v45  ;;  %v5336_v1 = vpop.eup %3877  ;;  %v1873_v15 = vadd.f32 %v5328_v52, %v1872_v33  ;;  %v1884_v26 = vrot.slane %v5334_v6, 4  ;;  %v2321_v3 = vadd.f32 %v2320_v41, %v2319_v7  ;;  %v5349_v62 = vpop.xlane.xlu1 %1045 }
 0x280   : > { %v2328_v60 = vadd.f32 %v2327_v32, %v2326_v17  ;;  %v3880_v63 = vpop.eup %3879  ;;  %v1878_v40 = vrot.slane %v5336_v1, 4  ;;  %v2302_v14 = vadd.f32 %v2301_v29, %v2300_v35  ;;  %v2309_v49 = vadd.f32 %v2308_v59, %v2307_v0  ;;  %v4010_v35 = vld [vmem:[%s4292_s6 + $0x28] sm:$0xff] }
 0x281   : > { %v2315_v61 = vrot.slane %v2314_v51, 2  ;;  %v5341_v46 = vpop.eup %3881  ;;  %v1874_v8 = vrot.slane %v1873_v15, 2  ;;  %v1885_v16 = vadd.f32 %v5334_v6, %v1884_v26  ;;  %v2117_v30 = vmul.f32 %v3880_v63, %v4849_v23  ;;  %v4011_v63 = vld [vmem:[%s4292_s6 + $0x30] sm:$0xff] }
 0x282   : > { %v2322_v34 = vrot.slane %v2321_v3, 2  ;;  %v3884_v20 = vpop.eup %3883  ;;  %v1879_v54 = vadd.f32 %v5336_v1, %v1878_v40  ;;  %v1896_v43 = vrot.slane %v5341_v46, 4  ;;  %v2303_v28 = vrot.slane %v2302_v14, 1  ;;  %v5357_v40 = vpop.xlane.xlu0 %1039 }
 0x283   : > { %v2310_v19 = vrot.slane %v2309_v49, 1  ;;  %v1875_v45 = vadd.f32 %v1874_v8, %v1873_v15  ;;  %v1886_v7 = vrot.slane %v1885_v16, 2  ;;  %v2119_v17 = vmul.f32 %v3884_v20, %v4945_v4 }
 0x284   : > { %v3886_v13 = vpop.eup %3885  ;;  %v2239_v0 = vmul.f32 %v4010_v35, %v2117_v30  ;;  %v1880_v41 = vrot.slane %v1879_v54, 2  ;;  %v1897_v32 = vadd.f32 %v5341_v46, %v1896_v43  ;;  %v2304_v29 = vadd.f32 %v2303_v28, %v2302_v14 }
 0x285   : > { %v3888_v23 = vpop.eup %3887  ;;  %v5352_v33 = vmul.f32 %v3886_v13, %v5279_v21  ;;  %v1876_v59 = vrot.slane %v1875_v45, 1  ;;  %v1887_v26 = vadd.f32 %v1886_v7, %v1885_v16  ;;  %v2240_v4 = vmul.f32 %v4011_v63, %v2119_v17 }
 0x286   : > { %v2121_v15 = vmul.f32 %v3888_v23, %v4846_v47  ;;  %v1881_v8 = vadd.f32 %v1880_v41, %v1879_v54  ;;  %v1898_v30 = vrot.slane %v1897_v32, 2  ;;  %v2311_v20 = vadd.f32 %v2310_v19, %v2309_v49  ;;  %v5371_v41 = vpop.xlane.xlu0 %1048 }
 0x287   : > { %v2316_v35 = vadd.f32 %v2315_v61, %v2314_v51  ;;  %v5359_v44 = vpop.eup %3889  ;;  %v1877_v21 = vadd.f32 %v1876_v59, %v1875_v45  ;;  %v1888_v13 = vrot.slane %v1887_v26, 1  ;;  %v2323_v43 = vadd.f32 %v2322_v34, %v2321_v3  ;;  %v5367_v51 = vpop.xlane.xlu1 %1051 }
 0x288   : > { %6067 = vst [vmem:[#allocation52_spill] sm:$0xff] %v5359_v44  ;;  %v2241_v50 = vmul.f32 %v4012_v39, %v2121_v15  ;;  %v5362_v14 = vpop.eup %3891  ;;  %v1882_v16 = vrot.slane %v1881_v8, 1  ;;  %v5364_v28 = vadd.f32 %v1898_v30, %v1897_v32  ;;  %v2329_v7 = vrot.slane %v2328_v60, 2 }
 0x289   : > { %6068 = vst [vmem:[#allocation53_spill] sm:$0xff] %v5362_v14  ;;  %v2317_v47 = vrot.slane %v2316_v35, 1  ;;  %3893 = vrcp.f32 %v1877_v21  ;;  %v1889_v17 = vadd.f32 %v1888_v13, %v1887_v26  ;;  %v2324_v54 = vrot.slane %v2323_v43, 1 }
 0x28a   : > { %v2333_v49 = vsel %vm244_vm0, %v2239_v0, 0.0  ;;  %v1883_v61 = vadd.f32 %v1882_v16, %v1881_v8  ;;  %v2330_v39 = vadd.f32 %v2329_v7, %v2328_v60  ;;  %v2340_v23 = vsel %vm244_vm0, %v2240_v4, 0.0  ;;  %v5382_v7 = vpop.xlane.xlu0 %1054 }
 0x28b   : > { %v2318_v45 = vadd.f32 %v2317_v47, %v2316_v35  ;;  %3895 = vrcp.f32 %v1889_v17  ;;  %v2325_v3 = vadd.f32 %v2324_v54, %v2323_v43  ;;  %v2334_v34 = vrot.slane %v2333_v49, 4  ;;  %v5377_v13 = vpop.xlane.xlu1 %1057 }
 0x28c   : > { %3897 = vrcp.f32 %v1883_v61  ;;  %v2331_v32 = vrot.slane %v2330_v39, 1  ;;  %v2341_v59 = vrot.slane %v2340_v23, 4  ;;  %v2347_v26 = vsel %vm244_vm0, %v2241_v50, 0.0 }
 0x28d   : > { %v2335_v0 = vadd.f32 %v2334_v34, %v2333_v49  ;;  %v2348_v15 = vrot.slane %v2347_v26, 4  ;;  %v2815_v63 = vsel %vm2814_vm1, %v2311_v20, %v2304_v29  ;;  %v1326_v20 = vrot.slane %v5349_v62, 4 }
 0x28e   : > { %v2332_v8 = vadd.f32 %v2331_v32, %v2330_v39  ;;  %v2342_v30 = vadd.f32 %v2341_v59, %v2340_v23  ;;  %v2817_v60 = vsel %vm2816_vm2, %v2318_v45, %v2815_v63  ;;  %v1314_v47 = vrot.slane %v5357_v40, 4 }
 0x28f   : > { %v2336_v35 = vrot.slane %v2335_v0, 2  ;;  %v2349_v21 = vadd.f32 %v2348_v15, %v2347_v26  ;;  %v2819_v4 = vsel %vm2818_vm3, %v2325_v3, %v2817_v60  ;;  %v1338_v54 = vrot.slane %v5367_v51, 4 }
 0x290   : > { %v2343_v43 = vrot.slane %v2342_v30, 2  ;;  %v2821_v50 = vsel %vm2820_vm4, %v2332_v8, %v2819_v4  ;;  %v1332_v49 = vrot.slane %v5371_v41, 4  ;;  %v1350_v61 = vrot.slane %v5377_v13, 4 }
 0x291   : > { %v2337_v16 = vadd.f32 %v2336_v35, %v2335_v0  ;;  %v2350_v29 = vrot.slane %v2349_v21, 2  ;;  %v1327_v34 = vmax.f32 %v5349_v62, %v1326_v20  ;;  %v1315_v23 = vmax.f32 %v5357_v40, %v1314_v47 }
 0x292   : > { %v2344_v17 = vadd.f32 %v2343_v43, %v2342_v30  ;;  %v1339_v26 = vmax.f32 %v5367_v51, %v1338_v54  ;;  %v1333_v0 = vmax.f32 %v5371_v41, %v1332_v49  ;;  %v5402_v49 = vpop.xlane.xlu0 %1060 }
 0x293   : > { %v3894_v45 = vpop.eup %3893  ;;  %v2338_v39 = vrot.slane %v2337_v16, 1  ;;  %v2351_v3 = vadd.f32 %v2350_v29, %v2349_v21  ;;  %v1328_v30 = vrot.slane %v1327_v34, 2  ;;  %v1316_v60 = vrot.slane %v1315_v23, 2 }
 0x294   : > { %v5390_v32 = vmul.f32 %v3894_v45, %v5328_v52  ;;  %v2345_v59 = vrot.slane %v2344_v17, 1  ;;  %v1340_v4 = vrot.slane %v1339_v26, 2  ;;  %v1334_v43 = vrot.slane %v1333_v0, 2  ;;  %v5400_v45 = vpop.xlane.xlu1 %1117 }
 0x295   : > { %v5394_v15 = vpop.eup %3895  ;;  %v2339_v63 = vadd.f32 %v2338_v39, %v2337_v16  ;;  %v2352_v8 = vrot.slane %v2351_v3, 1  ;;  %v1351_v29 = vmax.f32 %v5377_v13, %v1350_v61  ;;  %v1329_v47 = vmax.f32 %v1327_v34, %v1328_v30 }
 0x296   : > { %v5396_v35 = vpop.eup %3897  ;;  %v2346_v21 = vadd.f32 %v2345_v59, %v2344_v17  ;;  %v1317_v54 = vmax.f32 %v1315_v23, %v1316_v60  ;;  %v1341_v39 = vmax.f32 %v1339_v26, %v1340_v4  ;;  %v1335_v19 = vmax.f32 %v1333_v0, %v1334_v43 }
 0x297   : > { %v2353_v52 = vadd.f32 %v2352_v8, %v2351_v3  ;;  %v2823_v20 = vsel %vm2822_vm5, %v2339_v63, %v2821_v50  ;;  %v1352_v14 = vrot.slane %v1351_v29, 2  ;;  %v1330_v59 = vrot.slane %v1329_v47, 1 }
 0x298   : > { %v2825_v16 = vsel %vm2824_vm6, %v2346_v21, %v2823_v20  ;;  %v1318_v53 = vrot.slane %v1317_v54, 1  ;;  %v1344_v61 = vrot.slane %v5382_v7, 4  ;;  %v1342_v50 = vrot.slane %v1341_v39, 1 }
 0x299   : > { %v5406_v17 = vsel %vm2826_vm7, %v2353_v52, %v2825_v16  ;;  %v1336_v3 = vrot.slane %v1335_v19, 1  ;;  %v1353_v34 = vmax.f32 %v1351_v29, %v1352_v14  ;;  %v1470_v23 = vrot.slane %v5400_v45, 4  ;;  %v5418_v29 = vpop.xlane.xlu1 %1120 }
 0x29a   : > { %6069 = vst [vmem:[#allocation54_spill] sm:$0xff] %v5406_v17  ;;  %3635 = vmatprep.mubr.msk.f32.mxu1 %vm244_vm0, %v5406_v17  ;;  %v1331_v63 = vmax.f32 %v1329_v47, %v1330_v59  ;;  %v1319_v8 = vmax.f32 %v1317_v54, %v1318_v53  ;;  %v1345_v26 = vmax.f32 %v5382_v7, %v1344_v61  ;;  %v1356_v0 = vrot.slane %v5402_v49, 4  ;;  %v5420_v47 = vpop.xlane.xlu0 %1138 }
 0x29b   : > { %v1343_v30 = vmax.f32 %v1341_v39, %v1342_v50  ;;  %v1337_v60 = vmax.f32 %v1335_v19, %v1336_v3  ;;  %v1354_v21 = vrot.slane %v1353_v34, 1  ;;  %v1471_v4 = vmax.f32 %v5400_v45, %v1470_v23 }
 0x29c   : > { %v1560_v43 = vsub.f32 %v5349_v62, %v1331_v63  ;;  %v1558_v52 = vsub.f32 %v5357_v40, %v1319_v8  ;;  %v1346_v20 = vrot.slane %v1345_v26, 2  ;;  %v1357_v14 = vmax.f32 %v5402_v49, %v1356_v0 }
 0x29d   : > { %v1562_v53 = vsub.f32 %v5367_v51, %v1343_v30  ;;  %v1561_v54 = vsub.f32 %v5371_v41, %v1337_v60  ;;  %v1355_v16 = vmax.f32 %v1353_v34, %v1354_v21  ;;  %v1472_v19 = vrot.slane %v1471_v4, 2  ;;  %v168_v51 = vld [vmem:[%s5977_s1 + $0x20] sm:$0xff]  ;;  %v169_v41 = vld [vmem:[%s5977_s1 + $0x28] sm:$0xff] }
 0x29e   : > { %v1654_v39 = vmul.f32 1.442695, %v1560_v43  ;;  %v1650_v59 = vmul.f32 1.442695, %v1558_v52  ;;  %v1347_v61 = vmax.f32 %v1345_v26, %v1346_v20  ;;  %v1358_v50 = vrot.slane %v1357_v14, 2  ;;  %v5436_v43 = vpop.xlane.xlu0 %1141 }
 0x29f   : > { %v1658_v62 = vmul.f32 1.442695, %v1562_v53  ;;  %v1656_v3 = vmul.f32 1.442695, %v1561_v54  ;;  %v1564_v40 = vsub.f32 %v5377_v13, %v1355_v16  ;;  %v1473_v23 = vmax.f32 %v1471_v4, %v1472_v19  ;;  %v5434_v4 = vpop.xlane.xlu1 %1144  ;;  %v170_v53 = vld [vmem:[%s5977_s1 + $0x30] sm:$0xff]  ;;  %v171_v54 = vld [vmem:[%s5977_s1 + $0x38] sm:$0xff] }
 0x2a0   : > { %3899 = vpow2.f32 %v1654_v39  ;;  %v1348_v63 = vrot.slane %v1347_v61, 1  ;;  %v1359_v8 = vmax.f32 %v1357_v14, %v1358_v50  ;;  %v1476_v0 = vrot.slane %v5418_v29, 4 }
 0x2a1   : > { %3901 = vpow2.f32 %v1650_v59  ;;  %v1662_v34 = vmul.f32 1.442695, %v1564_v40  ;;  %v1474_v26 = vrot.slane %v1473_v23, 1  ;;  %v1512_v30 = vrot.slane %v5420_v47, 4 }
 0x2a2   : > { %3903 = vpow2.f32 %v1658_v62  ;;  %v1349_v13 = vmax.f32 %v1347_v61, %v1348_v63  ;;  %v1360_v60 = vrot.slane %v1359_v8, 1  ;;  %v1477_v21 = vmax.f32 %v5418_v29, %v1476_v0 }
 0x2a3   : > { %3905 = vpow2.f32 %v1656_v3  ;;  %v1475_v52 = vmax.f32 %v1473_v23, %v1474_v26  ;;  %v1513_v20 = vmax.f32 %v5420_v47, %v1512_v30  ;;  %v3655_v14 = vpack.c.bf16 %v169_v41, %v168_v51 }
 0x2a4   : > { %3907 = vpow2.f32 %v1662_v34  ;;  %v1563_v16 = vsub.f32 %v5382_v7, %v1349_v13  ;;  %v1361_v19 = vmax.f32 %v1359_v8, %v1360_v60  ;;  %v1478_v39 = vrot.slane %v1477_v21, 2 }
 0x2a5   : > { %v1584_v59 = vsub.f32 %v5400_v45, %v1475_v52  ;;  %v1514_v61 = vrot.slane %v1513_v20, 2  ;;  %3656 = vmatprep.subr.bf16.mxu1 %v3655_v14  ;;  %v1524_v50 = vrot.slane %v5434_v4, 4  ;;  %v1518_v62 = vrot.slane %v5436_v43, 4 }
 0x2a6   : > { %v1660_v3 = vmul.f32 1.442695, %v1563_v16  ;;  %v1565_v40 = vsub.f32 %v5402_v49, %v1361_v19  ;;  %v1479_v23 = vmax.f32 %v1477_v21, %v1478_v39  ;;  %3658 = vmatpush3.bf16.msra.mxu1 %v3655_v14  ;;  %v3659_v63 = vpack.c.bf16 %v171_v54, %v170_v53 }
 0x2a7   : > { %v1702_v0 = vmul.f32 1.442695, %v1584_v59  ;;  %v1515_v51 = vmax.f32 %v1513_v20, %v1514_v61  ;;  %v1525_v7 = vmax.f32 %v5434_v4, %v1524_v50  ;;  %v1519_v8 = vmax.f32 %v5436_v43, %v1518_v62 }
 0x2a8   : > { %3909 = vpow2.f32 %v1660_v3  ;;  %v1664_v45 = vmul.f32 1.442695, %v1565_v40  ;;  %v1480_v41 = vrot.slane %v1479_v23, 1  ;;  %3660 = vmatprep.subr.bf16.mxu1 %v3659_v63  ;;  %v5454_v34 = vmul.f32 %v5167_v25, %v5088_v58 }
 0x2a9   : > { %3911 = vpow2.f32 %v1702_v0  ;;  %v1516_v26 = vrot.slane %v1515_v51, 1  ;;  %v1526_v49 = vrot.slane %v1525_v7, 2  ;;  %v1520_v30 = vrot.slane %v1519_v8, 2 }
 0x2aa   : > { %v5456_v13 = vpop.eup %3899  ;;  %3913 = vpow2.f32 %v1664_v45  ;;  %v1481_v60 = vmax.f32 %v1479_v23, %v1480_v41  ;;  %3662 = vmatpush3.bf16.msra.mxu1 %v3659_v63  ;;  %v5460_v21 = vmul.f32 %v5114_v18, %v5046_v11  ;;  %v5464_v52 = vmul.f32 %v5129_v24, %v5058_v37  ;;  %v4013_v18 = vld [vmem:[%s4292_s6 + $0x50] sm:$0xff] }
 0x2ab   : > { %v5466_v58 = vpop.eup %3901  ;;  %v1902_v25 = vrot.slane %v5456_v13, 4  ;;  %v1517_v20 = vmax.f32 %v1515_v51, %v1516_v26  ;;  %v1527_v14 = vmax.f32 %v1525_v7, %v1526_v49  ;;  %v1521_v53 = vmax.f32 %v1519_v8, %v1520_v30 }
 0x2ac   : > { %v5469_v54 = vpop.eup %3903  ;;  %v1890_v16 = vrot.slane %v5466_v58, 4  ;;  %v1585_v19 = vsub.f32 %v5418_v29, %v1481_v60  ;;  %3915 = vrcp.f32 %v5156_v36  ;;  %v5476_v11 = vmul.f32 %v4013_v18, %v5099_v57 }
 0x2ad   : > { %v5478_v37 = vpop.eup %3905  ;;  %v1903_v24 = vadd.f32 %v5456_v13, %v1902_v25  ;;  %v1914_v39 = vrot.slane %v5469_v54, 4  ;;  %v1591_v59 = vsub.f32 %v5420_v47, %v1517_v20  ;;  %v1528_v61 = vrot.slane %v1527_v14, 1 }
 0x2ae   : > { %v5483_v50 = vpop.eup %3907  ;;  %v1891_v62 = vadd.f32 %v5466_v58, %v1890_v16  ;;  %v1908_v29 = vrot.slane %v5478_v37, 4  ;;  %v1704_v36 = vmul.f32 1.442695, %v1585_v19  ;;  %v1522_v3 = vrot.slane %v1521_v53, 1  ;;  %v4014_v19 = vld [vmem:[%s4292_s6 + $0x58] sm:$0xff] }
 0x2af   : > { %v1904_v40 = vrot.slane %v1903_v24, 2  ;;  %v1915_v57 = vadd.f32 %v5469_v54, %v1914_v39  ;;  %v1926_v23 = vrot.slane %v5483_v50, 4  ;;  %v1716_v63 = vmul.f32 1.442695, %v1591_v59 }
 0x2b0   : > { %v1892_v0 = vrot.slane %v1891_v62, 2  ;;  %v5490_v51 = vadd.f32 %v5478_v37, %v1908_v29  ;;  %3917 = vpow2.f32 %v1704_v36  ;;  %v1529_v47 = vmax.f32 %v1527_v14, %v1528_v61 }
 0x2b1   : > { %v5492_v7 = vadd.f32 %v1904_v40, %v1903_v24  ;;  %v1916_v8 = vrot.slane %v1915_v57, 2  ;;  %v1927_v45 = vadd.f32 %v5483_v50, %v1926_v23  ;;  %3919 = vpow2.f32 %v1716_v63 }
 0x2b2   : > { %v5495_v41 = vpop.eup %3909  ;;  %v1893_v26 = vadd.f32 %v1892_v0, %v1891_v62  ;;  %v1593_v30 = vsub.f32 %v5434_v4, %v1529_v47  ;;  %v1523_v60 = vmax.f32 %v1521_v53, %v1522_v3  ;;  %v2245_v18 = vmul.f32 %v4014_v19, %v5051_v55  ;;  %v4016_v19 = vld [vmem:[%s4292_s6 + $0x68] sm:$0xff] }
 0x2b3   : > { %v5499_v25 = vpop.eup %3911  ;;  %v1917_v20 = vadd.f32 %v1916_v8, %v1915_v57  ;;  %v1928_v16 = vrot.slane %v1927_v45, 2  ;;  %v1920_v14 = vrot.slane %v5495_v41, 4 }
 0x2b4   : > { %v5504_v24 = vpop.eup %3913  ;;  %v1894_v39 = vrot.slane %v1893_v26, 1  ;;  %v2046_v59 = vrot.slane %v5499_v25, 4  ;;  %v1720_v61 = vmul.f32 1.442695, %v1593_v30  ;;  %v1592_v62 = vsub.f32 %v5436_v43, %v1523_v60 }
 0x2b5   : > { %v1918_v29 = vrot.slane %v1917_v20, 1  ;;  %v1929_v4 = vadd.f32 %v1928_v16, %v1927_v45  ;;  %v1921_v53 = vadd.f32 %v5495_v41, %v1920_v14  ;;  %v1932_v36 = vrot.slane %v5504_v24, 4  ;;  %v4015_v45 = vld [vmem:[%s4292_s6 + $0x60] sm:$0xff] }
 0x2b6   : > { %v3916_v3 = vpop.eup %3915  ;;  %v1895_v40 = vadd.f32 %v1894_v39, %v1893_v26  ;;  %v2047_v57 = vadd.f32 %v5499_v25, %v2046_v59  ;;  %3921 = vpow2.f32 %v1720_v61  ;;  %v1718_v55 = vmul.f32 1.442695, %v1592_v62  ;;  %v4017_v59 = vld [vmem:[%s4292_s6 + $0x70] sm:$0xff] }
 0x2b7   : > { %v1919_v23 = vadd.f32 %v1918_v29, %v1917_v20  ;;  %v1930_v63 = vrot.slane %v1929_v4, 1  ;;  %v1922_v0 = vrot.slane %v1921_v53, 2  ;;  %v1933_v43 = vadd.f32 %v5504_v24, %v1932_v36 }
 0x2b8   : > { %3923 = vrcp.f32 %v1895_v40  ;;  %v2048_v47 = vrot.slane %v2047_v57, 2  ;;  %v2137_v8 = vmul.f32 %v3916_v3, %v5103_v56  ;;  %v2246_v30 = vmul.f32 %v4015_v45, %v5454_v34 }
 0x2b9   : > { %3925 = vrcp.f32 %v1919_v23  ;;  %v1931_v26 = vadd.f32 %v1930_v63, %v1929_v4  ;;  %v1923_v60 = vadd.f32 %v1922_v0, %v1921_v53  ;;  %v1934_v16 = vrot.slane %v1933_v43, 2  ;;  %v4018_v53 = vld [vmem:[%s4292_s6 + $0x78] sm:$0xff] }
 0x2ba   : > { %v5515_v14 = vpop.eup %3917  ;;  %v5517_v20 = vadd.f32 %v2048_v47, %v2047_v57  ;;  %3927 = vpow2.f32 %v1718_v55  ;;  %v2247_v39 = vmul.f32 %v4016_v19, %v5460_v21  ;;  %v2248_v61 = vmul.f32 %v4017_v59, %v5464_v52 }
 0x2bb   : > { %v5523_v56 = vpop.eup %3919  ;;  %3929 = vrcp.f32 %v1931_v26  ;;  %v1924_v34 = vrot.slane %v1923_v60, 1  ;;  %v1935_v62 = vadd.f32 %v1934_v16, %v1933_v43  ;;  %v2052_v29 = vrot.slane %v5515_v14, 4 }
 0x2bc   : > { %6070 = vst [vmem:[#allocation55_spill] sm:$0xff] %v5523_v56  ;;  %v2088_v4 = vrot.slane %v5523_v56, 4  ;;  %v2249_v36 = vmul.f32 %v4018_v53, %v2137_v8  ;;  %v2354_v3 = vsel %vm244_vm0, %v5093_v27, 0.0  ;;  %v2361_v21 = vsel %vm244_vm0, %v5014_v48, 0.0 }
 0x2bd   : > { %v1925_v40 = vadd.f32 %v1924_v34, %v1923_v60  ;;  %v1936_v57 = vrot.slane %v1935_v62, 1  ;;  %v5533_v52 = vadd.f32 %v5515_v14, %v2052_v29  ;;  %v2355_v55 = vrot.slane %v2354_v3, 4 }
 0x2be   : > { %v2089_v23 = vadd.f32 %v5523_v56, %v2088_v4  ;;  %v2362_v63 = vrot.slane %v2361_v21, 4  ;;  %v2368_v0 = vsel %vm244_vm0, %v5476_v11, 0.0  ;;  %v2375_v43 = vsel %vm244_vm0, %v2245_v18, 0.0 }
 0x2bf   : > { %3931 = vrcp.f32 %v1925_v40  ;;  %v1937_v47 = vadd.f32 %v1936_v57, %v1935_v62  ;;  %v2356_v8 = vadd.f32 %v2355_v55, %v2354_v3  ;;  %v2369_v60 = vrot.slane %v2368_v0, 4 }
 0x2c0   : > { %v5540_v48 = vpop.eup %3921  ;;  %v2090_v45 = vrot.slane %v2089_v23, 2  ;;  %v2363_v26 = vadd.f32 %v2362_v63, %v2361_v21  ;;  %v2376_v16 = vrot.slane %v2375_v43, 4  ;;  %v2382_v34 = vsel %vm244_vm0, %v2246_v30, 0.0 }
 0x2c1   : > { %6071 = vst [vmem:[#allocation56_spill] sm:$0xff] %v5540_v48  ;;  %3933 = vrcp.f32 %v1937_v47  ;;  %v2100_v19 = vrot.slane %v5540_v48, 4  ;;  %v2357_v59 = vrot.slane %v2356_v8, 2  ;;  %v2370_v29 = vadd.f32 %v2369_v60, %v2368_v0 }
 0x2c2   : > { %v5544_v11 = vpop.eup %3923  ;;  %v5546_v18 = vadd.f32 %v2090_v45, %v2089_v23  ;;  %v2364_v62 = vrot.slane %v2363_v26, 2  ;;  %v2377_v4 = vadd.f32 %v2376_v16, %v2375_v43  ;;  %v2383_v40 = vrot.slane %v2382_v34, 4 }
 0x2c3   : > { %v3926_v53 = vpop.eup %3925  ;;  %v5549_v3 = vadd.f32 %v5540_v48, %v2100_v19  ;;  %v2358_v21 = vadd.f32 %v2357_v59, %v2356_v8  ;;  %v2389_v57 = vsel %vm244_vm0, %v2247_v39, 0.0  ;;  %v2371_v47 = vrot.slane %v2370_v29, 2 }
 0x2c4   : > { %v5552_v55 = vpop.eup %3927  ;;  %v5555_v63 = vmul.f32 %v3926_v53, %v5469_v54  ;;  %v2365_v23 = vadd.f32 %v2364_v62, %v2363_v26  ;;  %v2378_v8 = vrot.slane %v2377_v4, 2  ;;  %v2384_v39 = vadd.f32 %v2383_v40, %v2382_v34 }
 0x2c5   : > { %v5558_v45 = vpop.eup %3929  ;;  %v2094_v43 = vrot.slane %v5552_v55, 4  ;;  %v2359_v60 = vrot.slane %v2358_v21, 1  ;;  %v2372_v19 = vadd.f32 %v2371_v47, %v2370_v29  ;;  %v2390_v59 = vrot.slane %v2389_v57, 4 }
 0x2c6   : > { %v2366_v16 = vrot.slane %v2365_v23, 1  ;;  %v2379_v53 = vadd.f32 %v2378_v8, %v2377_v4  ;;  %v2396_v30 = vsel %vm244_vm0, %v2248_v61, 0.0  ;;  %v2385_v49 = vrot.slane %v2384_v39, 2 }
 0x2c7   : > { %v2095_v27 = vadd.f32 %v5552_v55, %v2094_v43  ;;  %v2360_v54 = vadd.f32 %v2359_v60, %v2358_v21  ;;  %v2373_v62 = vrot.slane %v2372_v19, 1  ;;  %v2391_v17 = vadd.f32 %v2390_v59, %v2389_v57 }
 0x2c8   : > { %v2367_v26 = vadd.f32 %v2366_v16, %v2365_v23  ;;  %v2380_v56 = vrot.slane %v2379_v53, 1  ;;  %v2397_v44 = vrot.slane %v2396_v30, 4  ;;  %v2403_v38 = vsel %vm244_vm0, %v2249_v36, 0.0 }
 0x2c9   : > { %v3932_v48 = vpop.eup %3931  ;;  %v2096_v0 = vrot.slane %v2095_v27, 2  ;;  %v2374_v34 = vadd.f32 %v2373_v62, %v2372_v19  ;;  %v2386_v40 = vadd.f32 %v2385_v49, %v2384_v39  ;;  %v2392_v47 = vrot.slane %v2391_v17, 2 }
 0x2ca   : > { %v5566_v29 = vmul.f32 %v3932_v48, %v5495_v41  ;;  %v2381_v61 = vadd.f32 %v2380_v56, %v2379_v53  ;;  %v2398_v23 = vadd.f32 %v2397_v44, %v2396_v30  ;;  %v2404_v43 = vrot.slane %v2403_v38, 4 }
 0x2cb   : > { %v5568_v21 = vpop.eup %3933  ;;  %v5570_v4 = vadd.f32 %v2096_v0, %v2095_v27  ;;  %v2387_v57 = vrot.slane %v2386_v40, 1  ;;  %v2393_v60 = vadd.f32 %v2392_v47, %v2391_v17  ;;  %v2828_v8 = vsel %vm2814_vm1, %v2367_v26, %v2360_v54  ;;  %v6074_v26 = vld [vmem:[#allocation37_spill] sm:$0xff]  ;;  %v6075_v47 = vld [vmem:[#allocation40_spill] sm:$0xff] }
 0x2cc   : > { %v6072_v36 = vrot.slane %v5221_v42, 1  ;;  %v2399_v41 = vrot.slane %v2398_v23, 2  ;;  %v2405_v48 = vadd.f32 %v2404_v43, %v2403_v38  ;;  %v2829_v49 = vsel %vm2816_vm2, %v2374_v34, %v2828_v8  ;;  %v4021_v8 = vld [vmem:[%s4292_s6 + $0x90] sm:$0xff] }
 0x2cd   : > { %v1858_v19 = vrot.slane %v5331_v5, 1  ;;  %v2388_v39 = vadd.f32 %v2387_v57, %v2386_v40  ;;  %v2394_v27 = vrot.slane %v2393_v60, 1  ;;  %v2830_v56 = vsel %vm2818_vm3, %v2381_v61, %v2829_v49  ;;  %v4020_v57 = vld [vmem:[%s4292_s6 + $0x88] sm:$0xff] }
 0x2ce   : > { %v1853_v16 = vadd.f32 %v6072_v36, %v5221_v42  ;;  %v6073_v44 = vrot.slane %v5240_v2, 2  ;;  %v2400_v30 = vadd.f32 %v2399_v41, %v2398_v23  ;;  %v2406_v0 = vrot.slane %v2405_v48, 2  ;;  %v4022_v41 = vld [vmem:[%s4292_s6 + $0x98] sm:$0xff] }
 0x2cf   : > { %v1859_v59 = vadd.f32 %v1858_v19, %v5331_v5  ;;  %v2143_v42 = vmul.f32 %v5257_v12, %v5171_v9  ;;  %v2395_v38 = vadd.f32 %v2394_v27, %v2393_v60  ;;  %v2831_v54 = vsel %vm2820_vm4, %v2388_v39, %v2830_v56  ;;  %v4019_v12 = vld [vmem:[%s4292_s6 + $0x80] sm:$0xff]  ;;  %v6076_v60 = vld [vmem:[#allocation45_spill] sm:$0xff] }
 0x2d0   : > { %v1863_v17 = vadd.f32 %v6073_v44, %v5240_v2  ;;  %v2145_v62 = vmul.f32 %v5266_v10, %v6074_v26  ;;  %v2401_v34 = vrot.slane %v2400_v30, 1  ;;  %v2407_v2 = vadd.f32 %v2406_v0, %v2405_v48 }
 0x2d1   : > { %v2147_v40 = vmul.f32 %v5309_v22, %v5234_v31  ;;  %3935 = vrcp.f32 %v1853_v16  ;;  %v2832_v5 = vsel %vm2822_vm5, %v2395_v38, %v2831_v54  ;;  %v2250_v61 = vmul.f32 %v4019_v12, %v6075_v47  ;;  %v4023_v31 = vld [vmem:[%s4292_s6 + $0xa0] sm:$0xff] }
 0x2d2   : > { %v1864_v53 = vrot.slane %v1863_v17, 1  ;;  %3937 = vrcp.f32 %v1859_v59  ;;  %v2402_v23 = vadd.f32 %v2401_v34, %v2400_v30  ;;  %v2408_v43 = vrot.slane %v2407_v2, 1 }
 0x2d3   : > { %v2251_v10 = vmul.f32 %v4020_v57, %v6076_v60  ;;  %v2252_v36 = vmul.f32 %v4021_v8, %v2143_v42  ;;  %v2253_v48 = vmul.f32 %v4022_v41, %v2145_v62  ;;  %v2254_v22 = vmul.f32 %v4023_v31, %v2147_v40  ;;  %v6079_v41 = vld [vmem:[#allocation39_spill] sm:$0xff] }
 0x2d4   : > { %v1865_v9 = vadd.f32 %v1864_v53, %v1863_v17  ;;  %v2410_v16 = vsel %vm244_vm0, %v2250_v61, 0.0  ;;  %v2409_v49 = vadd.f32 %v2408_v43, %v2407_v2  ;;  %v2833_v19 = vsel %vm2824_vm6, %v2402_v23, %v2832_v5 }
 0x2d5   : > { %v2411_v39 = vrot.slane %v2410_v16, 4  ;;  %v2417_v27 = vsel %vm244_vm0, %v2251_v10, 0.0  ;;  %v2424_v44 = vsel %vm244_vm0, %v2252_v36, 0.0  ;;  %v2431_v17 = vsel %vm244_vm0, %v2253_v48, 0.0 }
 0x2d6   : > { %3939 = vrcp.f32 %v1865_v9  ;;  %v2418_v56 = vrot.slane %v2417_v27, 4  ;;  %v2438_v30 = vsel %vm244_vm0, %v2254_v22, 0.0  ;;  %v5605_v0 = vsel %vm2826_vm7, %v2409_v49, %v2833_v19 }
 0x2d7   : > { %v2412_v59 = vadd.f32 %v2411_v39, %v2410_v16  ;;  %v2425_v42 = vrot.slane %v2424_v44, 4  ;;  %v2432_v38 = vrot.slane %v2431_v17, 4  ;;  %3636 = vmatmul.mubr.msk.f32.vlgmr.msra.gmra.mrb[28].mxu1 %vm244_vm0, %v5605_v0  ;;  %v2439_v53 = vrot.slane %v2438_v30, 4  ;;  %v6080_v16 = vld [vmem:[#allocation46_spill] sm:$0xff]  ;;  %v4024_v39 = vld [vmem:[%s4292_s6 + $0xa8] sm:$0xff] }
 0x2d8   : > { %v2419_v54 = vadd.f32 %v2418_v56, %v2417_v27  ;;  %v6077_v26 = vrot.slane %v5364_v28, 1  ;;  %v1906_v34 = vrot.slane %v5492_v7, 1  ;;  %v6078_v9 = vrot.slane %v5490_v51, 2 }
 0x2d9   : > { %v2413_v2 = vrot.slane %v2412_v59, 2  ;;  %v2426_v40 = vadd.f32 %v2425_v42, %v2424_v44  ;;  %v2433_v5 = vadd.f32 %v2432_v38, %v2431_v17  ;;  %v2440_v61 = vadd.f32 %v2439_v53, %v2438_v30  ;;  %v6081_v30 = vld [vmem:[#allocation43_spill] sm:$0xff]  ;;  %v4025_v42 = vld [vmem:[%s4292_s6 + $0xb0] sm:$0xff] }
 0x2da   : > { %v1901_v62 = vadd.f32 %v6077_v26, %v5364_v28  ;;  %v1911_v12 = vadd.f32 %v6078_v9, %v5490_v51  ;;  %v2420_v47 = vrot.slane %v2419_v54, 2  ;;  %v1907_v23 = vadd.f32 %v1906_v34, %v5492_v7 }
 0x2db   : > { %v2159_v43 = vmul.f32 %v5396_v35, %v5336_v1  ;;  %v3936_v57 = vpop.eup %3935  ;;  %v2414_v60 = vadd.f32 %v2413_v2, %v2412_v59  ;;  %v2427_v28 = vrot.slane %v2426_v40, 2  ;;  %v2434_v10 = vrot.slane %v2433_v5, 2  ;;  %v4026_v2 = vld [vmem:[%s4292_s6 + $0xb8] sm:$0xff] }
 0x2dc   : > { %v1912_v8 = vrot.slane %v1911_v12, 1  ;;  %v3938_v36 = vpop.eup %3937  ;;  %v2149_v48 = vmul.f32 %v3936_v57, %v6079_v41  ;;  %v2421_v31 = vadd.f32 %v2420_v47, %v2419_v54  ;;  %v2441_v22 = vrot.slane %v2440_v61, 2 }
 0x2dd   : > { %v2161_v51 = vmul.f32 %v5394_v15, %v5334_v6  ;;  %v2151_v7 = vmul.f32 %v3938_v36, %v6080_v16  ;;  %v2415_v49 = vrot.slane %v2414_v60, 1  ;;  %v2428_v19 = vadd.f32 %v2427_v28, %v2426_v40 }
 0x2de   : > { %v2435_v1 = vadd.f32 %v2434_v10, %v2433_v5  ;;  %v2255_v27 = vmul.f32 %v4024_v39, %v2149_v48  ;;  %v2422_v56 = vrot.slane %v2421_v31, 1  ;;  %v2442_v44 = vadd.f32 %v2441_v22, %v2440_v61  ;;  %v4029_v39 = vld [vmem:[%s4292_s6 + $0xd0] sm:$0xff] }
 0x2df   : > { %v1913_v17 = vadd.f32 %v1912_v8, %v1911_v12  ;;  %v2256_v38 = vmul.f32 %v4025_v42, %v2151_v7  ;;  %v2416_v54 = vadd.f32 %v2415_v49, %v2414_v60  ;;  %v2429_v53 = vrot.slane %v2428_v19, 1  ;;  %v4027_v7 = vld [vmem:[%s4292_s6 + $0xc0] sm:$0xff] }
 0x2e0   : > { %v3940_v35 = vpop.eup %3939  ;;  %v2423_v26 = vadd.f32 %v2422_v56, %v2421_v31  ;;  %v2436_v6 = vrot.slane %v2435_v1, 1  ;;  %v2443_v15 = vrot.slane %v2442_v44, 1  ;;  %v2445_v34 = vsel %vm244_vm0, %v2255_v27, 0.0  ;;  %v4030_v56 = vld [vmem:[%s4292_s6 + $0xd8] sm:$0xff] }
 0x2e1   : > { %v2153_v59 = vmul.f32 %v3940_v35, %v6081_v30  ;;  %v2430_v5 = vadd.f32 %v2429_v53, %v2428_v19  ;;  %v2446_v9 = vrot.slane %v2445_v34, 4  ;;  %v2452_v47 = vsel %vm244_vm0, %v2256_v38, 0.0  ;;  %v4028_v35 = vld [vmem:[%s4292_s6 + $0xc8] sm:$0xff] }
 0x2e2   : > { %v2437_v61 = vadd.f32 %v2436_v6, %v2435_v1  ;;  %v2444_v12 = vadd.f32 %v2443_v15, %v2442_v44  ;;  %v2453_v57 = vrot.slane %v2452_v47, 4  ;;  %v2835_v28 = vsel %vm2814_vm1, %v2423_v26, %v2416_v54 }
 0x2e3   : > { %v2257_v40 = vmul.f32 %v4026_v2, %v2153_v59  ;;  %v2447_v10 = vadd.f32 %v2446_v9, %v2445_v34  ;;  %v2836_v8 = vsel %vm2816_vm2, %v2430_v5, %v2835_v28  ;;  %v2163_v36 = vmul.f32 %v5544_v11, %v5466_v58 }
 0x2e4   : > { %v2454_v41 = vadd.f32 %v2453_v57, %v2452_v47  ;;  %v2837_v31 = vsel %vm2818_vm3, %v2437_v61, %v2836_v8  ;;  %3941 = vrcp.f32 %v1901_v62  ;;  %v2258_v49 = vmul.f32 %v4027_v7, %v5352_v33  ;;  %v4031_v62 = vld [vmem:[%s4292_s6 + $0xe0] sm:$0xff] }
 0x2e5   : > { %v2459_v60 = vsel %vm244_vm0, %v2257_v40, 0.0  ;;  %v2448_v22 = vrot.slane %v2447_v10, 2  ;;  %v2838_v16 = vsel %vm2820_vm4, %v2444_v12, %v2837_v31  ;;  %3943 = vrcp.f32 %v1907_v23 }
 0x2e6   : > { %v2460_v48 = vrot.slane %v2459_v60, 4  ;;  %v2455_v19 = vrot.slane %v2454_v41, 2  ;;  %3945 = vrcp.f32 %v1913_v17  ;;  %v2259_v58 = vmul.f32 %v4028_v35, %v5390_v32 }
 0x2e7   : > { %v2449_v11 = vadd.f32 %v2448_v22, %v2447_v10  ;;  %v2260_v27 = vmul.f32 %v4029_v39, %v2159_v43  ;;  %v2261_v44 = vmul.f32 %v4030_v56, %v2161_v51  ;;  %v2262_v30 = vmul.f32 %v4031_v62, %v2163_v36  ;;  %v4032_v39 = vld [vmem:[%s4292_s6 + $0xe8] sm:$0xff] }
 0x2e8   : > { %v2461_v1 = vadd.f32 %v2460_v48, %v2459_v60  ;;  %v2456_v59 = vadd.f32 %v2455_v19, %v2454_v41  ;;  %v2466_v23 = vsel %vm244_vm0, %v2258_v49, 0.0  ;;  %v2473_v38 = vsel %vm244_vm0, %v2259_v58, 0.0 }
 0x2e9   : > { %v2450_v33 = vrot.slane %v2449_v11, 1  ;;  %v2467_v54 = vrot.slane %v2466_v23, 4  ;;  %v2474_v53 = vrot.slane %v2473_v38, 4  ;;  %v2480_v17 = vsel %vm244_vm0, %v2260_v27, 0.0 }
 0x2ea   : > { %v2462_v42 = vrot.slane %v2461_v1, 2  ;;  %v2457_v26 = vrot.slane %v2456_v59, 1  ;;  %v2481_v6 = vrot.slane %v2480_v17, 4  ;;  %v2487_v43 = vsel %vm244_vm0, %v2261_v44, 0.0  ;;  %v4033_v44 = vld [vmem:[%s4292_s6 + $0xf0] sm:$0xff] }
 0x2eb   : > { %v2451_v15 = vadd.f32 %v2450_v33, %v2449_v11  ;;  %v2468_v51 = vadd.f32 %v2467_v54, %v2466_v23  ;;  %v2475_v34 = vadd.f32 %v2474_v53, %v2473_v38  ;;  %v2488_v2 = vrot.slane %v2487_v43, 4  ;;  %v4034_v23 = vld [vmem:[%s4292_s6 + $0xf8] sm:$0xff] }
 0x2ec   : > { %v2463_v32 = vadd.f32 %v2462_v42, %v2461_v1  ;;  %v2458_v40 = vadd.f32 %v2457_v26, %v2456_v59  ;;  %v2482_v9 = vadd.f32 %v2481_v6, %v2480_v17  ;;  %v2494_v47 = vsel %vm244_vm0, %v2262_v30, 0.0 }
 0x2ed   : > { %v2839_v61 = vsel %vm2822_vm5, %v2451_v15, %v2838_v16  ;;  %v2469_v12 = vrot.slane %v2468_v51, 2  ;;  %v2476_v57 = vrot.slane %v2475_v34, 2  ;;  %v2489_v28 = vadd.f32 %v2488_v2, %v2487_v43  ;;  %v6082_v15 = vld [vmem:[#allocation11_spill] sm:$0xff] }
 0x2ee   : > { %v2464_v5 = vrot.slane %v2463_v32, 1  ;;  %v3942_v10 = vpop.eup %3941  ;;  %v2840_v8 = vsel %vm2824_vm6, %v2458_v40, %v2839_v61  ;;  %v2483_v36 = vrot.slane %v2482_v9, 2  ;;  %v2495_v41 = vrot.slane %v2494_v47, 4 }
 0x2ef   : > { %v3944_v48 = vpop.eup %3943  ;;  %v2165_v31 = vmul.f32 %v3942_v10, %v5341_v46  ;;  %v2470_v22 = vadd.f32 %v2469_v12, %v2468_v51  ;;  %v2477_v7 = vadd.f32 %v2476_v57, %v2475_v34  ;;  %v2490_v49 = vrot.slane %v2489_v28, 2  ;;  %v6084_v12 = vld [vmem:[#allocation15_spill] sm:$0xff] }
 0x2f0   : > { %v2465_v60 = vadd.f32 %v2464_v5, %v2463_v32  ;;  %v3946_v19 = vpop.eup %3945  ;;  %v2167_v1 = vmul.f32 %v3944_v48, %v5456_v13  ;;  %v2484_v35 = vadd.f32 %v2483_v36, %v2482_v9  ;;  %v2496_v58 = vadd.f32 %v2495_v41, %v2494_v47 }
 0x2f1   : > { %v2169_v11 = vmul.f32 %v3946_v19, %v5478_v37  ;;  %v2263_v27 = vmul.f32 %v4032_v39, %v2165_v31  ;;  %v2471_v46 = vrot.slane %v2470_v22, 1  ;;  %v2478_v56 = vrot.slane %v2477_v7, 1 }
 0x2f2   : > { %v5652_v16 = vsel %vm2826_vm7, %v2465_v60, %v2840_v8  ;;  %v2264_v62 = vmul.f32 %v4033_v44, %v2167_v1  ;;  %v2485_v30 = vrot.slane %v2484_v35, 1  ;;  %v2491_v59 = vadd.f32 %v2490_v49, %v2489_v28  ;;  %v6085_v28 = vld [vmem:[#allocation13_spill] sm:$0xff] }
 0x2f3   : > { %3638 = vmatprep.mubr.msk.f32.mxu1 %vm244_vm0, %v5652_v16  ;;  %v2497_v42 = vrot.slane %v2496_v58, 2  ;;  %v2265_v38 = vmul.f32 %v4034_v23, %v2169_v11  ;;  %v2472_v33 = vadd.f32 %v2471_v46, %v2470_v22  ;;  %v2479_v13 = vadd.f32 %v2478_v56, %v2477_v7  ;;  %v6088_v46 = vld [vmem:[#allocation16_spill] sm:$0xff] }
 0x2f4   : > { %v2501_v54 = vsel %vm244_vm0, %v2263_v27, 0.0  ;;  %v2486_v53 = vadd.f32 %v2485_v30, %v2484_v35  ;;  %v2492_v17 = vrot.slane %v2491_v59, 1  ;;  %v2508_v37 = vsel %vm244_vm0, %v2264_v62, 0.0  ;;  %v6087_v27 = vld [vmem:[#allocation9_spill] sm:$0xff] }
 0x2f5   : > { %v2498_v26 = vadd.f32 %v2497_v42, %v2496_v58  ;;  %v2502_v32 = vrot.slane %v2501_v54, 4  ;;  %v2515_v6 = vsel %vm244_vm0, %v2265_v38, 0.0  ;;  %v2842_v43 = vsel %vm2814_vm1, %v2479_v13, %v2472_v33  ;;  %v4038_v33 = vld [vmem:[%s4292_s6 + $0x118] sm:$0xff] }
 0x2f6   : > { %v6083_v51 = vrot.slane %v6082_v15, 1  ;;  %v2493_v2 = vadd.f32 %v2492_v17, %v2491_v59  ;;  %v2509_v9 = vrot.slane %v2508_v37, 4  ;;  %v2516_v47 = vrot.slane %v2515_v6, 4  ;;  %v4036_v59 = vld [vmem:[%s4292_s6 + $0x108] sm:$0xff] }
 0x2f7   : > { %v2499_v40 = vrot.slane %v2498_v26, 1  ;;  %v2503_v5 = vadd.f32 %v2502_v32, %v2501_v54  ;;  %v2843_v61 = vsel %vm2816_vm2, %v2486_v53, %v2842_v43  ;;  %v1954_v57 = vrot.slane %v6084_v12, 1  ;;  %v4039_v54 = vld [vmem:[%s4292_s6 + $0x120] sm:$0xff] }
 0x2f8   : > { %v1949_v34 = vadd.f32 %v6083_v51, %v6082_v15  ;;  %v6086_v10 = vrot.slane %v6085_v28, 2  ;;  %v2510_v41 = vadd.f32 %v2509_v9, %v2508_v37  ;;  %v2844_v48 = vsel %vm2818_vm3, %v2493_v2, %v2843_v61 }
 0x2f9   : > { %v2500_v8 = vadd.f32 %v2499_v40, %v2498_v26  ;;  %v2504_v36 = vrot.slane %v2503_v5, 2  ;;  %v2517_v31 = vadd.f32 %v2516_v47, %v2515_v6  ;;  %v1955_v22 = vadd.f32 %v1954_v57, %v6084_v12 }
 0x2fa   : > { %v1959_v60 = vadd.f32 %v6086_v10, %v6085_v28  ;;  %v2175_v49 = vmul.f32 %v5558_v45, %v5483_v50  ;;  %v2511_v1 = vrot.slane %v2510_v41, 2  ;;  %v2177_v58 = vmul.f32 %v5568_v21, %v5504_v24  ;;  %v4035_v50 = vld [vmem:[%s4292_s6 + $0x100] sm:$0xff]  ;;  %v4037_v24 = vld [vmem:[%s4292_s6 + $0x110] sm:$0xff] }
 0x2fb   : > { %v2505_v19 = vadd.f32 %v2504_v36, %v2503_v5  ;;  %v2845_v35 = vsel %vm2820_vm4, %v2500_v8, %v2844_v48  ;;  %v2518_v11 = vrot.slane %v2517_v31, 2  ;;  %v2179_v56 = vmul.f32 %v6088_v46, %v6087_v27  ;;  %v6089_v28 = vld [vmem:[#allocation22_spill] sm:$0xff]  ;;  %v6091_v48 = vld [vmem:[#allocation29_spill] sm:$0xff]  ;;  %v6096_v46 = vld [vmem:[#allocation8_spill] sm:$0xff] }
 0x2fc   : > { %v1960_v7 = vrot.slane %v1959_v60, 1  ;;  %3947 = vrcp.f32 %v1949_v34  ;;  %v2512_v62 = vadd.f32 %v2511_v1, %v2510_v41  ;;  %v2266_v45 = vmul.f32 %v4035_v50, %v5555_v63 }
 0x2fd   : > { %v2506_v44 = vrot.slane %v2505_v19, 1  ;;  %3949 = vrcp.f32 %v1955_v22  ;;  %v2519_v30 = vadd.f32 %v2518_v11, %v2517_v31  ;;  %v2267_v42 = vmul.f32 %v4036_v59, %v5566_v29  ;;  %v6095_v11 = vld [vmem:[#allocation28_spill] sm:$0xff] }
 0x2fe   : > { %v1961_v39 = vadd.f32 %v1960_v7, %v1959_v60  ;;  %v2268_v21 = vmul.f32 %v4037_v24, %v2175_v49  ;;  %v2513_v38 = vrot.slane %v2512_v62, 1  ;;  %v2269_v13 = vmul.f32 %v4038_v33, %v2177_v58  ;;  %v6094_v58 = vld [vmem:[#allocation20_spill] sm:$0xff]  ;;  %v4040_v33 = vld [vmem:[%s4292_s6 + $0x128] sm:$0xff] }
 0x2ff   : > { %v2507_v23 = vadd.f32 %v2506_v44, %v2505_v19  ;;  %v2270_v53 = vmul.f32 %v4039_v54, %v2179_v56  ;;  %v2520_v17 = vrot.slane %v2519_v30, 1  ;;  %v2522_v26 = vsel %vm244_vm0, %v2266_v45, 0.0  ;;  %v6092_v19 = vld [vmem:[#allocation26_spill] sm:$0xff] }
 0x300   : > { %3951 = vrcp.f32 %v1961_v39  ;;  %v2529_v32 = vsel %vm244_vm0, %v2267_v42, 0.0  ;;  %v2536_v63 = vsel %vm244_vm0, %v2268_v21, 0.0  ;;  %v2514_v37 = vadd.f32 %v2513_v38, %v2512_v62 }
 0x301   : > { %v2846_v6 = vsel %vm2822_vm5, %v2507_v23, %v2845_v35  ;;  %v2523_v43 = vrot.slane %v2522_v26, 4  ;;  %v2530_v29 = vrot.slane %v2529_v32, 4  ;;  %v2521_v15 = vadd.f32 %v2520_v17, %v2519_v30  ;;  %v6097_v30 = vld [vmem:[#allocation12_spill] sm:$0xff]  ;;  %v6098_v23 = vld [vmem:[#allocation10_spill] sm:$0xff] }
 0x302   : > { %v2537_v51 = vrot.slane %v2536_v63, 4  ;;  %v2543_v34 = vsel %vm244_vm0, %v2269_v13, 0.0  ;;  %v2550_v2 = vsel %vm244_vm0, %v2270_v53, 0.0  ;;  %v2847_v40 = vsel %vm2824_vm6, %v2514_v37, %v2846_v6  ;;  %v4041_v17 = vld [vmem:[%s4292_s6 + $0x130] sm:$0xff]  ;;  %v4042_v6 = vld [vmem:[%s4292_s6 + $0x138] sm:$0xff] }
 0x303   : > { %v2524_v5 = vadd.f32 %v2523_v43, %v2522_v26  ;;  %v2531_v9 = vadd.f32 %v2530_v29, %v2529_v32  ;;  %v2544_v47 = vrot.slane %v2543_v34, 4  ;;  %v5697_v61 = vsel %vm2826_vm7, %v2521_v15, %v2847_v40 }
 0x304   : > { %v2538_v12 = vadd.f32 %v2537_v51, %v2536_v63  ;;  %v2551_v57 = vrot.slane %v2550_v2, 4  ;;  %v6090_v10 = vrot.slane %v6089_v28, 1  ;;  %3639 = vmatmul.mubr.msk.f32.gmra.mrb[30].mxu1 %vm244_vm0, %v5697_v61  ;;  %v2002_v31 = vrot.slane %v6091_v48, 1 }
 0x305   : > { %v2525_v8 = vrot.slane %v2524_v5, 2  ;;  %v2532_v36 = vrot.slane %v2531_v9, 2  ;;  %v2545_v41 = vadd.f32 %v2544_v47, %v2543_v34  ;;  %v6093_v1 = vrot.slane %v6092_v19, 2 }
 0x306   : > { %v1997_v60 = vadd.f32 %v6090_v10, %v6089_v28  ;;  %v3948_v22 = vpop.eup %3947  ;;  %v2539_v7 = vrot.slane %v2538_v12, 2  ;;  %v2552_v49 = vadd.f32 %v2551_v57, %v2550_v2  ;;  %v2191_v39 = vmul.f32 %v6095_v11, %v6094_v58  ;;  %v6101_v11 = vld [vmem:[#allocation19_spill] sm:$0xff] }
 0x307   : > { %v2007_v35 = vadd.f32 %v6093_v1, %v6092_v19  ;;  %v3950_v27 = vpop.eup %3949  ;;  %v2181_v56 = vmul.f32 %v3948_v22, %v6096_v46  ;;  %v2526_v44 = vadd.f32 %v2525_v8, %v2524_v5  ;;  %v2533_v62 = vadd.f32 %v2532_v36, %v2531_v9  ;;  %v6099_v22 = vld [vmem:[#allocation14_spill] sm:$0xff] }
 0x308   : > { %v2546_v50 = vrot.slane %v2545_v41, 2  ;;  %v2183_v59 = vmul.f32 %v3950_v27, %v6097_v30  ;;  %v2540_v42 = vadd.f32 %v2539_v7, %v2538_v12  ;;  %v2553_v24 = vrot.slane %v2552_v49, 2  ;;  %v6100_v7 = vld [vmem:[#allocation21_spill] sm:$0xff]  ;;  %v6102_v27 = vld [vmem:[#allocation27_spill] sm:$0xff] }
 0x309   : > { %v2003_v21 = vadd.f32 %v2002_v31, %v6091_v48  ;;  %v2271_v13 = vmul.f32 %v4040_v33, %v2181_v56  ;;  %v2527_v54 = vrot.slane %v2526_v44, 1  ;;  %v2534_v53 = vrot.slane %v2533_v62, 1 }
 0x30a   : > { %v3952_v45 = vpop.eup %3951  ;;  %v2272_v26 = vmul.f32 %v4041_v17, %v2183_v59  ;;  %v2541_v32 = vrot.slane %v2540_v42, 1  ;;  %v2547_v63 = vadd.f32 %v2546_v50, %v2545_v41  ;;  %v2554_v37 = vadd.f32 %v2553_v24, %v2552_v49  ;;  %v6103_v50 = vld [vmem:[#allocation17_spill] sm:$0xff]  ;;  %v4044_v59 = vld [vmem:[%s4292_s6 + $0x148] sm:$0xff] }
 0x30b   : > { %v2185_v38 = vmul.f32 %v3952_v45, %v6098_v23  ;;  %v2528_v29 = vadd.f32 %v2527_v54, %v2526_v44  ;;  %v2535_v15 = vadd.f32 %v2534_v53, %v2533_v62  ;;  %v2557_v51 = vsel %vm244_vm0, %v2271_v13, 0.0  ;;  %v4043_v62 = vld [vmem:[%s4292_s6 + $0x140] sm:$0xff]  ;;  %v4046_v13 = vld [vmem:[%s4292_s6 + $0x158] sm:$0xff] }
 0x30c   : > { %v2542_v34 = vadd.f32 %v2541_v32, %v2540_v42  ;;  %v2548_v2 = vrot.slane %v2547_v63, 1  ;;  %v2555_v40 = vrot.slane %v2554_v37, 1  ;;  %v2558_v5 = vrot.slane %v2557_v51, 4  ;;  %v6104_v42 = vld [vmem:[#allocation23_spill] sm:$0xff] }
 0x30d   : > { %v2273_v43 = vmul.f32 %v4042_v6, %v2185_v38  ;;  %v2564_v9 = vsel %vm244_vm0, %v2272_v26, 0.0  ;;  %v2849_v12 = vsel %vm2814_vm1, %v2535_v15, %v2528_v29  ;;  %v2008_v57 = vrot.slane %v2007_v35, 1  ;;  %v4045_v38 = vld [vmem:[%s4292_s6 + $0x150] sm:$0xff]  ;;  %v4047_v26 = vld [vmem:[%s4292_s6 + $0x160] sm:$0xff] }
 0x30e   : > { %v2549_v28 = vadd.f32 %v2548_v2, %v2547_v63  ;;  %v2556_v10 = vadd.f32 %v2555_v40, %v2554_v37  ;;  %v2559_v8 = vadd.f32 %v2558_v5, %v2557_v51  ;;  %v2565_v36 = vrot.slane %v2564_v9, 4 }
 0x30f   : > { %v2571_v47 = vsel %vm244_vm0, %v2273_v43, 0.0  ;;  %v2850_v48 = vsel %vm2816_vm2, %v2542_v34, %v2849_v12  ;;  %v2009_v31 = vadd.f32 %v2008_v57, %v2007_v35  ;;  %v2193_v49 = vmul.f32 %v6100_v7, %v6099_v22 }
 0x310   : > { %v2572_v41 = vrot.slane %v2571_v47, 4  ;;  %v2560_v19 = vrot.slane %v2559_v8, 2  ;;  %v2566_v1 = vadd.f32 %v2565_v36, %v2564_v9  ;;  %v2851_v58 = vsel %vm2818_vm3, %v2549_v28, %v2850_v48 }
 0x311   : > { %v2195_v46 = vmul.f32 %v6102_v27, %v6101_v11  ;;  %v2852_v44 = vsel %vm2820_vm4, %v2556_v10, %v2851_v58  ;;  %3953 = vrcp.f32 %v1997_v60  ;;  %v2274_v35 = vmul.f32 %v4043_v62, %v6103_v50 }
 0x312   : > { %v2573_v56 = vadd.f32 %v2572_v41, %v2571_v47  ;;  %v2561_v45 = vadd.f32 %v2560_v19, %v2559_v8  ;;  %v2567_v30 = vrot.slane %v2566_v1, 2  ;;  %3955 = vrcp.f32 %v2003_v21 }
 0x313   : > { %v2275_v24 = vmul.f32 %v4044_v59, %v6104_v42  ;;  %3957 = vrcp.f32 %v2009_v31  ;;  %v2276_v33 = vmul.f32 %v4045_v38, %v2191_v39  ;;  %v2277_v54 = vmul.f32 %v4046_v13, %v2193_v49  ;;  %v6105_v31 = vld [vmem:[#allocation33_spill] sm:$0xff] }
 0x314   : > { %v2574_v23 = vrot.slane %v2573_v56, 2  ;;  %v2562_v53 = vrot.slane %v2561_v45, 1  ;;  %v2568_v17 = vadd.f32 %v2567_v30, %v2566_v1  ;;  %v2278_v60 = vmul.f32 %v4047_v26, %v2195_v46  ;;  %v6107_v46 = vld [vmem:[#allocation18_spill] sm:$0xff] }
 0x315   : > { %v2578_v32 = vsel %vm244_vm0, %v2274_v35, 0.0  ;;  %v2585_v6 = vsel %vm244_vm0, %v2275_v24, 0.0  ;;  %v2592_v21 = vsel %vm244_vm0, %v2276_v33, 0.0  ;;  %v2599_v2 = vsel %vm244_vm0, %v2277_v54, 0.0  ;;  %v4048_v33 = vld [vmem:[%s4292_s6 + $0x168] sm:$0xff] }
 0x316   : > { %v2575_v63 = vadd.f32 %v2574_v23, %v2573_v56  ;;  %v2579_v37 = vrot.slane %v2578_v32, 4  ;;  %v2563_v43 = vadd.f32 %v2562_v53, %v2561_v45  ;;  %v2569_v29 = vrot.slane %v2568_v17, 1  ;;  %v6108_v45 = vld [vmem:[#allocation25_spill] sm:$0xff]  ;;  %v6109_v23 = vld [vmem:[#allocation24_spill] sm:$0xff] }
 0x317   : > { %v2586_v15 = vrot.slane %v2585_v6, 4  ;;  %v2593_v51 = vrot.slane %v2592_v21, 4  ;;  %v2606_v40 = vsel %vm244_vm0, %v2278_v60, 0.0  ;;  %v2600_v10 = vrot.slane %v2599_v2, 4 }
 0x318   : > { %v2576_v34 = vrot.slane %v2575_v63, 1  ;;  %v2580_v39 = vadd.f32 %v2579_v37, %v2578_v32  ;;  %v2570_v5 = vadd.f32 %v2569_v29, %v2568_v17  ;;  %v2853_v9 = vsel %vm2822_vm5, %v2563_v43, %v2852_v44  ;;  %v4049_v17 = vld [vmem:[%s4292_s6 + $0x170] sm:$0xff]  ;;  %v4050_v37 = vld [vmem:[%s4292_s6 + $0x178] sm:$0xff] }
 0x319   : > { %v2587_v47 = vadd.f32 %v2586_v15, %v2585_v6  ;;  %v2594_v12 = vadd.f32 %v2593_v51, %v2592_v21  ;;  %v2607_v8 = vrot.slane %v2606_v40, 4  ;;  %v6106_v22 = vrot.slane %v6105_v31, 1 }
 0x31a   : > { %v2577_v57 = vadd.f32 %v2576_v34, %v2575_v63  ;;  %v2581_v28 = vrot.slane %v2580_v39, 2  ;;  %v2854_v36 = vsel %vm2824_vm6, %v2570_v5, %v2853_v9  ;;  %v2601_v58 = vadd.f32 %v2600_v10, %v2599_v2 }
 0x31b   : > { %v2588_v41 = vrot.slane %v2587_v47, 2  ;;  %v2595_v48 = vrot.slane %v2594_v12, 2  ;;  %v2045_v7 = vadd.f32 %v6106_v22, %v6105_v31  ;;  %v3954_v49 = vpop.eup %3953  ;;  %v2608_v11 = vadd.f32 %v2607_v8, %v2606_v40  ;;  %v6112_v31 = vld [vmem:[#allocation36_spill] sm:$0xff] }
 0x31c   : > { %v5746_v19 = vsel %vm2826_vm7, %v2577_v57, %v2854_v36  ;;  %v2582_v1 = vadd.f32 %v2581_v28, %v2580_v39  ;;  %v3956_v27 = vpop.eup %3955  ;;  %v2197_v56 = vmul.f32 %v3954_v49, %v6107_v46  ;;  %v2050_v50 = vrot.slane %v5517_v20, 1 }
 0x31d   : > { %3641 = vmatprep.mubr.msk.f32.mxu1 %vm244_vm0, %v5746_v19  ;;  %v2589_v44 = vadd.f32 %v2588_v41, %v2587_v47  ;;  %v2596_v62 = vadd.f32 %v2595_v48, %v2594_v12  ;;  %v3958_v35 = vpop.eup %3957  ;;  %v2199_v30 = vmul.f32 %v3956_v27, %v6108_v45  ;;  %v2602_v42 = vrot.slane %v2601_v58, 2  ;;  %v6111_v48 = vld [vmem:[#allocation30_spill] sm:$0xff] }
 0x31e   : > { %v2583_v59 = vrot.slane %v2582_v1, 1  ;;  %v2609_v24 = vrot.slane %v2608_v11, 2  ;;  %v2201_v38 = vmul.f32 %v3958_v35, %v6109_v23  ;;  %v2279_v13 = vmul.f32 %v4048_v33, %v2197_v56  ;;  %v6118_v33 = vld [vmem:[#allocation38_spill] sm:$0xff] }
 0x31f   : > { %v2590_v54 = vrot.slane %v2589_v44, 1  ;;  %v2597_v53 = vrot.slane %v2596_v62, 1  ;;  %v2280_v26 = vmul.f32 %v4049_v17, %v2199_v30  ;;  %v2603_v32 = vadd.f32 %v2602_v42, %v2601_v58  ;;  %v6113_v58 = vld [vmem:[#allocation34_spill] sm:$0xff]  ;;  %v4053_v17 = vld [vmem:[%s4292_s6 + $0x190] sm:$0xff] }
 0x320   : > { %v2584_v60 = vadd.f32 %v2583_v59, %v2582_v1  ;;  %v2610_v63 = vadd.f32 %v2609_v24, %v2608_v11  ;;  %v2281_v6 = vmul.f32 %v4050_v37, %v2201_v38  ;;  %v2613_v29 = vsel %vm244_vm0, %v2279_v13, 0.0  ;;  %v6114_v11 = vld [vmem:[#allocation41_spill] sm:$0xff]  ;;  %v4051_v30 = vld [vmem:[%s4292_s6 + $0x180] sm:$0xff]  ;;  %v6117_v59 = vld [vmem:[#allocation32_spill] sm:$0xff] }
 0x321   : > { %v2591_v21 = vadd.f32 %v2590_v54, %v2589_v44  ;;  %v2598_v43 = vadd.f32 %v2597_v53, %v2596_v62  ;;  %v2604_v15 = vrot.slane %v2603_v32, 1  ;;  %v2614_v34 = vrot.slane %v2613_v29, 4  ;;  %v6115_v62 = vld [vmem:[#allocation35_spill] sm:$0xff]  ;;  %v4055_v37 = vld [vmem:[%s4292_s6 + $0x1a0] sm:$0xff] }
 0x322   : > { %v2611_v51 = vrot.slane %v2610_v63, 1  ;;  %v2620_v39 = vsel %vm244_vm0, %v2280_v26, 0.0  ;;  %v2627_v40 = vsel %vm244_vm0, %v2281_v6, 0.0  ;;  %v2051_v9 = vadd.f32 %v2050_v50, %v5517_v20  ;;  %v6116_v50 = vld [vmem:[#allocation42_spill] sm:$0xff]  ;;  %v4052_v38 = vld [vmem:[%s4292_s6 + $0x188] sm:$0xff] }
 0x323   : > { %v2621_v2 = vrot.slane %v2620_v39, 4  ;;  %v2856_v5 = vsel %vm2814_vm1, %v2591_v21, %v2584_v60  ;;  %v2605_v47 = vadd.f32 %v2604_v15, %v2603_v32  ;;  %v2615_v57 = vadd.f32 %v2614_v34, %v2613_v29  ;;  %v4054_v60 = vld [vmem:[%s4292_s6 + $0x198] sm:$0xff] }
 0x324   : > { %v2612_v12 = vadd.f32 %v2611_v51, %v2610_v63  ;;  %v2628_v28 = vrot.slane %v2627_v40, 4  ;;  %v2857_v8 = vsel %vm2816_vm2, %v2598_v43, %v2856_v5  ;;  %v6110_v36 = vrot.slane %v5533_v52, 2 }
 0x325   : > { %v2622_v10 = vadd.f32 %v2621_v2, %v2620_v39  ;;  %v2207_v22 = vmul.f32 %v6112_v31, %v6111_v48  ;;  %v2616_v49 = vrot.slane %v2615_v57, 2  ;;  %v2858_v20 = vsel %vm2818_vm3, %v2605_v47, %v2857_v8 }
 0x326   : > { %v2055_v41 = vadd.f32 %v6110_v36, %v5533_v52  ;;  %v2629_v1 = vadd.f32 %v2628_v28, %v2627_v40  ;;  %v2209_v27 = vmul.f32 %v6114_v11, %v6113_v58  ;;  %v2859_v56 = vsel %vm2820_vm4, %v2612_v12, %v2858_v20 }
 0x327   : > { %v2623_v46 = vrot.slane %v2622_v10, 2  ;;  %v2211_v52 = vmul.f32 %v6116_v50, %v6115_v62  ;;  %v2617_v35 = vadd.f32 %v2616_v49, %v2615_v57  ;;  %3959 = vrcp.f32 %v2045_v7  ;;  %v6121_v50 = vld [vmem:[#allocation31_spill] sm:$0xff] }
 0x328   : > { %v2056_v44 = vrot.slane %v2055_v41, 1  ;;  %v2630_v45 = vrot.slane %v2629_v1, 2  ;;  %v2282_v42 = vmul.f32 %v4051_v30, %v6117_v59  ;;  %3961 = vrcp.f32 %v2051_v9 }
 0x329   : > { %v2624_v24 = vadd.f32 %v2623_v46, %v2622_v10  ;;  %v2283_v13 = vmul.f32 %v4052_v38, %v6118_v33  ;;  %v2618_v54 = vrot.slane %v2617_v35, 1  ;;  %v2284_v26 = vmul.f32 %v4053_v17, %v2207_v22  ;;  %v4056_v38 = vld [vmem:[%s4292_s6 + $0x1a8] sm:$0xff]  ;;  %v4057_v17 = vld [vmem:[%s4292_s6 + $0x1b0] sm:$0xff] }
 0x32a   : > { %v2057_v23 = vadd.f32 %v2056_v44, %v2055_v41  ;;  %v2631_v53 = vadd.f32 %v2630_v45, %v2629_v1  ;;  %v2285_v32 = vmul.f32 %v4054_v60, %v2209_v27  ;;  %v2286_v7 = vmul.f32 %v4055_v37, %v2211_v52 }
 0x32b   : > { %v2625_v63 = vrot.slane %v2624_v24, 1  ;;  %v2634_v6 = vsel %vm244_vm0, %v2282_v42, 0.0  ;;  %v2619_v21 = vadd.f32 %v2618_v54, %v2617_v35  ;;  %v2641_v15 = vsel %vm244_vm0, %v2283_v13, 0.0 }
 0x32c   : > { %3963 = vrcp.f32 %v2057_v23  ;;  %v2632_v43 = vrot.slane %v2631_v53, 1  ;;  %v2635_v29 = vrot.slane %v2634_v6, 4  ;;  %v2642_v34 = vrot.slane %v2641_v15, 4 }
 0x32d   : > { %v2626_v51 = vadd.f32 %v2625_v63, %v2624_v24  ;;  %v2648_v39 = vsel %vm244_vm0, %v2284_v26, 0.0  ;;  %v2655_v2 = vsel %vm244_vm0, %v2285_v32, 0.0  ;;  %v2860_v5 = vsel %vm2822_vm5, %v2619_v21, %v2859_v56 }
 0x32e   : > { %v2633_v40 = vadd.f32 %v2632_v43, %v2631_v53  ;;  %v2636_v9 = vadd.f32 %v2635_v29, %v2634_v6  ;;  %v2649_v47 = vrot.slane %v2648_v39, 4  ;;  %v2643_v57 = vadd.f32 %v2642_v34, %v2641_v15 }
 0x32f   : > { %v2861_v12 = vsel %vm2824_vm6, %v2626_v51, %v2860_v5  ;;  %v2656_v28 = vrot.slane %v2655_v2, 4  ;;  %v2662_v10 = vsel %vm244_vm0, %v2286_v7, 0.0  ;;  %v6119_v49 = vrot.slane %v5546_v18, 1  ;;  %v4058_v7 = vld [vmem:[%s4292_s6 + $0x1b8] sm:$0xff] }
 0x330   : > { %v5789_v8 = vsel %vm2826_vm7, %v2633_v40, %v2861_v12  ;;  %v2637_v36 = vrot.slane %v2636_v9, 2  ;;  %v2650_v41 = vadd.f32 %v2649_v47, %v2648_v39  ;;  %v2663_v48 = vrot.slane %v2662_v10, 4 }
 0x331   : > { %3642 = vmatmul.mubr.msk.f32.gmra.mrb[32].mxu1 %vm244_vm0, %v5789_v8  ;;  %v2644_v31 = vrot.slane %v2643_v57, 2  ;;  %v2657_v22 = vadd.f32 %v2656_v28, %v2655_v2  ;;  %v2093_v1 = vadd.f32 %v6119_v49, %v5546_v18  ;;  %v2098_v20 = vrot.slane %v5570_v4, 1  ;;  %v3960_v58 = vpop.eup %3959  ;;  %v6126_v49 = vld [vmem:[#allocation48_spill] sm:$0xff] }
 0x332   : > { %v2638_v11 = vadd.f32 %v2637_v36, %v2636_v9  ;;  %v2651_v27 = vrot.slane %v2650_v41, 2  ;;  %v2664_v46 = vadd.f32 %v2663_v48, %v2662_v10  ;;  %v6120_v56 = vrot.slane %v5549_v3, 2  ;;  %v3962_v62 = vpop.eup %3961  ;;  %v6122_v10 = vld [vmem:[#allocation47_spill] sm:$0xff]  ;;  %v6123_v36 = vld [vmem:[#allocation52_spill] sm:$0xff] }
 0x333   : > { %v2213_v52 = vmul.f32 %v3960_v58, %v6121_v50  ;;  %v2645_v35 = vadd.f32 %v2644_v31, %v2643_v57  ;;  %v2658_v45 = vrot.slane %v2657_v22, 2  ;;  %v2099_v30 = vadd.f32 %v2098_v20, %v5570_v4  ;;  %v6124_v48 = vld [vmem:[#allocation44_spill] sm:$0xff]  ;;  %v6125_v31 = vld [vmem:[#allocation50_spill] sm:$0xff]  ;;  %v6127_v20 = vld [vmem:[#allocation53_spill] sm:$0xff] }
 0x334   : > { %v2103_v44 = vadd.f32 %v6120_v56, %v5549_v3  ;;  %v2215_v18 = vmul.f32 %v3962_v62, %v5499_v25  ;;  %v2639_v59 = vrot.slane %v2638_v11, 1  ;;  %v2652_v42 = vadd.f32 %v2651_v27, %v2650_v41  ;;  %v6128_v62 = vld [vmem:[#allocation49_spill] sm:$0xff] }
 0x335   : > { %v2665_v24 = vrot.slane %v2664_v46, 2  ;;  %v2287_v33 = vmul.f32 %v4056_v38, %v2213_v52  ;;  %v2646_v13 = vrot.slane %v2645_v35, 1  ;;  %v2659_v54 = vadd.f32 %v2658_v45, %v2657_v22  ;;  %v4060_v52 = vld [vmem:[%s4292_s6 + $0x1c8] sm:$0xff]  ;;  %v4062_v38 = vld [vmem:[%s4292_s6 + $0x1d8] sm:$0xff] }
 0x336   : > { %v3964_v23 = vpop.eup %3963  ;;  %v2104_v3 = vrot.slane %v2103_v44, 1  ;;  %v2288_v26 = vmul.f32 %v4057_v17, %v2215_v18  ;;  %v2640_v60 = vadd.f32 %v2639_v59, %v2638_v11  ;;  %v2653_v32 = vrot.slane %v2652_v42, 1 }
 0x337   : > { %v2217_v53 = vmul.f32 %v3964_v23, %v5515_v14  ;;  %v2647_v63 = vadd.f32 %v2646_v13, %v2645_v35  ;;  %v2660_v4 = vrot.slane %v2659_v54, 1  ;;  %v2666_v37 = vadd.f32 %v2665_v24, %v2664_v46  ;;  %v6129_v35 = vld [vmem:[#allocation51_spill] sm:$0xff]  ;;  %v4063_v13 = vld [vmem:[%s4292_s6 + $0x1e0] sm:$0xff] }
 0x338   : > { %v2669_v25 = vsel %vm244_vm0, %v2287_v33, 0.0  ;;  %v2654_v21 = vadd.f32 %v2653_v32, %v2652_v42  ;;  %v2676_v29 = vsel %vm244_vm0, %v2288_v26, 0.0  ;;  %v2105_v5 = vadd.f32 %v2104_v3, %v2103_v44  ;;  %v4059_v44 = vld [vmem:[%s4292_s6 + $0x1c0] sm:$0xff]  ;;  %v4061_v42 = vld [vmem:[%s4292_s6 + $0x1d0] sm:$0xff] }
 0x339   : > { %v2289_v6 = vmul.f32 %v4058_v7, %v2217_v53  ;;  %v2670_v43 = vrot.slane %v2669_v25, 4  ;;  %v2661_v15 = vadd.f32 %v2660_v4, %v2659_v54  ;;  %v2667_v51 = vrot.slane %v2666_v37, 1 }
 0x33a   : > { %v2677_v34 = vrot.slane %v2676_v29, 4  ;;  %v2863_v14 = vsel %vm2814_vm1, %v2647_v63, %v2640_v60  ;;  %v2223_v41 = vmul.f32 %v6123_v36, %v6122_v10  ;;  %v2225_v22 = vmul.f32 %v6125_v31, %v6124_v48 }
 0x33b   : > { %v2671_v39 = vadd.f32 %v2670_v43, %v2669_v25  ;;  %v2683_v2 = vsel %vm244_vm0, %v2289_v6, 0.0  ;;  %v2864_v40 = vsel %vm2816_vm2, %v2654_v21, %v2863_v14  ;;  %v2668_v9 = vadd.f32 %v2667_v51, %v2666_v37 }
 0x33c   : > { %v2678_v47 = vadd.f32 %v2677_v34, %v2676_v29  ;;  %v2684_v12 = vrot.slane %v2683_v2, 4  ;;  %v2865_v57 = vsel %vm2818_vm3, %v2661_v15, %v2864_v40  ;;  %v2227_v58 = vmul.f32 %v6127_v20, %v6126_v49  ;;  %v6131_v20 = vld [vmem:[#allocation56_spill] sm:$0xff] }
 0x33d   : > { %v2672_v28 = vrot.slane %v2671_v39, 2  ;;  %v2866_v46 = vsel %vm2820_vm4, %v2668_v9, %v2865_v57  ;;  %3965 = vrcp.f32 %v2093_v1  ;;  %v2290_v50 = vmul.f32 %v4059_v44, %v6128_v62  ;;  %v4065_v44 = vld [vmem:[%s4292_s6 + $0x1f0] sm:$0xff] }
 0x33e   : > { %v2679_v11 = vrot.slane %v2678_v47, 2  ;;  %v2685_v27 = vadd.f32 %v2684_v12, %v2683_v2  ;;  %3967 = vrcp.f32 %v2099_v30  ;;  %v2291_v45 = vmul.f32 %v4060_v52, %v6129_v35 }
 0x33f   : > { %v2673_v56 = vadd.f32 %v2672_v28, %v2671_v39  ;;  %3969 = vrcp.f32 %v2105_v5  ;;  %v2292_v24 = vmul.f32 %v4061_v42, %v2223_v41  ;;  %v2293_v33 = vmul.f32 %v4062_v38, %v2225_v22  ;;  %v6130_v28 = vld [vmem:[#allocation55_spill] sm:$0xff] }
 0x340   : > { %v2680_v18 = vadd.f32 %v2679_v11, %v2678_v47  ;;  %v2686_v59 = vrot.slane %v2685_v27, 2  ;;  %v2294_v54 = vmul.f32 %v4063_v13, %v2227_v58  ;;  %v2690_v1 = vsel %vm244_vm0, %v2290_v50, 0.0  ;;  %v4064_v11 = vld [vmem:[%s4292_s6 + $0x1e8] sm:$0xff] }
 0x341   : > { %v2674_v23 = vrot.slane %v2673_v56, 1  ;;  %v2691_v53 = vrot.slane %v2690_v1, 4  ;;  %v2697_v17 = vsel %vm244_vm0, %v2291_v45, 0.0  ;;  %v2704_v32 = vsel %vm244_vm0, %v2292_v24, 0.0  ;;  %v4066_v45 = vld [vmem:[%s4292_s6 + $0x1f8] sm:$0xff] }
 0x342   : > { %v2681_v3 = vrot.slane %v2680_v18, 1  ;;  %v2687_v30 = vadd.f32 %v2686_v59, %v2685_v27  ;;  %v2698_v60 = vrot.slane %v2697_v17, 4  ;;  %v2711_v63 = vsel %vm244_vm0, %v2293_v33, 0.0 }
 0x343   : > { %v2675_v26 = vadd.f32 %v2674_v23, %v2673_v56  ;;  %v2692_v25 = vadd.f32 %v2691_v53, %v2690_v1  ;;  %v2705_v7 = vrot.slane %v2704_v32, 4  ;;  %v2712_v43 = vrot.slane %v2711_v63, 4 }
 0x344   : > { %v2682_v4 = vadd.f32 %v2681_v3, %v2680_v18  ;;  %v2688_v37 = vrot.slane %v2687_v30, 1  ;;  %v2699_v21 = vadd.f32 %v2698_v60, %v2697_v17  ;;  %v2718_v29 = vsel %vm244_vm0, %v2294_v54, 0.0 }
 0x345   : > { %v2867_v6 = vsel %vm2822_vm5, %v2675_v26, %v2866_v46  ;;  %v2693_v51 = vrot.slane %v2692_v25, 2  ;;  %v2706_v34 = vadd.f32 %v2705_v7, %v2704_v32  ;;  %v2713_v2 = vadd.f32 %v2712_v43, %v2711_v63 }
 0x346   : > { %v2689_v15 = vadd.f32 %v2688_v37, %v2687_v30  ;;  %v2868_v14 = vsel %vm2824_vm6, %v2682_v4, %v2867_v6  ;;  %v2700_v39 = vrot.slane %v2699_v21, 2  ;;  %v2719_v40 = vrot.slane %v2718_v29, 4 }
 0x347   : > { %v3966_v5 = vpop.eup %3965  ;;  %v2694_v47 = vadd.f32 %v2693_v51, %v2692_v25  ;;  %v2707_v12 = vrot.slane %v2706_v34, 2  ;;  %v2714_v41 = vrot.slane %v2713_v2, 2 }
 0x348   : > { %v5835_v9 = vsel %vm2826_vm7, %v2689_v15, %v2868_v14  ;;  %v3968_v57 = vpop.eup %3967  ;;  %v2229_v10 = vmul.f32 %v3966_v5, %v6130_v28  ;;  %v2701_v36 = vadd.f32 %v2700_v39, %v2699_v21  ;;  %v2720_v48 = vadd.f32 %v2719_v40, %v2718_v29 }
 0x349   : > { %3644 = vmatprep.mubr.msk.f32.mxu1 %vm244_vm0, %v5835_v9  ;;  %v3970_v31 = vpop.eup %3969  ;;  %v2231_v22 = vmul.f32 %v3968_v57, %v5552_v55  ;;  %v2708_v49 = vadd.f32 %v2707_v12, %v2706_v34  ;;  %v2695_v46 = vrot.slane %v2694_v47, 1  ;;  %v2715_v52 = vadd.f32 %v2714_v41, %v2713_v2  ;;  %v3427_v57 = vld [vmem:[%s5977_s1 + $0x41] ss:$0 sm:$0xff] }
 0x34a   : > { %v2233_v58 = vmul.f32 %v3970_v31, %v6131_v20  ;;  %v2295_v27 = vmul.f32 %v4064_v11, %v2229_v10  ;;  %v2702_v56 = vrot.slane %v2701_v36, 1  ;;  %v2721_v35 = vrot.slane %v2720_v48, 2 }
 0x34b   : > { %v2296_v62 = vmul.f32 %v4065_v44, %v2231_v22  ;;  %v2709_v50 = vrot.slane %v2708_v49, 1  ;;  %v2696_v54 = vadd.f32 %v2695_v46, %v2694_v47  ;;  %v2716_v1 = vrot.slane %v2715_v52, 1 }
 0x34c   : > { %v2297_v18 = vmul.f32 %v4066_v45, %v2233_v58  ;;  %v2725_v59 = vsel %vm244_vm0, %v2295_v27, 0.0  ;;  %v2703_v42 = vadd.f32 %v2702_v56, %v2701_v36  ;;  %v2722_v38 = vadd.f32 %v2721_v35, %v2720_v48  ;;  %v3436_v48 = vld [vmem:[%s5977_s1 + $0x43] ss:$0 sm:$0xff] }
 0x34d   : > { %v2726_v24 = vrot.slane %v2725_v59, 4  ;;  %v2732_v55 = vsel %vm244_vm0, %v2296_v62, 0.0  ;;  %v2710_v23 = vadd.f32 %v2709_v50, %v2708_v49  ;;  %v2717_v37 = vadd.f32 %v2716_v1, %v2715_v52 }
 0x34e   : > { %v2733_v33 = vrot.slane %v2732_v55, 4  ;;  %v2739_v13 = vsel %vm244_vm0, %v2297_v18, 0.0  ;;  %v2870_v60 = vsel %vm2814_vm1, %v2703_v42, %v2696_v54  ;;  %v2723_v32 = vrot.slane %v2722_v38, 1 }
 0x34f   : > { %v2727_v3 = vadd.f32 %v2726_v24, %v2725_v59  ;;  %v2740_v30 = vrot.slane %v2739_v13, 4  ;;  %v2871_v4 = vsel %vm2816_vm2, %v2710_v23, %v2870_v60 }
 0x350   : > { %v2734_v53 = vadd.f32 %v2733_v33, %v2732_v55  ;;  %v2872_v29 = vsel %vm2818_vm3, %v2717_v37, %v2871_v4  ;;  %v2724_v15 = vadd.f32 %v2723_v32, %v2722_v38 }
 0x351   : > { %v2728_v17 = vrot.slane %v2727_v3, 2  ;;  %v2741_v26 = vadd.f32 %v2740_v30, %v2739_v13 }
 0x352   : > { %v2735_v63 = vrot.slane %v2734_v53, 2  ;;  %v2873_v2 = vsel %vm2820_vm4, %v2724_v15, %v2872_v29 }
 0x353   : > { %v2729_v25 = vadd.f32 %v2728_v17, %v2727_v3  ;;  %v2742_v7 = vrot.slane %v2741_v26, 2 }
 0x354   : > { %v2736_v6 = vadd.f32 %v2735_v63, %v2734_v53 }
 0x355   : > { %v2730_v21 = vrot.slane %v2729_v25, 1  ;;  %v2743_v43 = vadd.f32 %v2742_v7, %v2741_v26 }
 0x356   : > { %v2737_v51 = vrot.slane %v2736_v6, 1 }
 0x357   : > { %v2731_v34 = vadd.f32 %v2730_v21, %v2729_v25  ;;  %v2744_v14 = vrot.slane %v2743_v43, 1 }
 0x358   : > { %v2738_v39 = vadd.f32 %v2737_v51, %v2736_v6 }
 0x359   : > { %v2745_v40 = vadd.f32 %v2744_v14, %v2743_v43  ;;  %v2874_v5 = vsel %vm2822_vm5, %v2731_v34, %v2873_v2 }
 0x35a   : > { %v2875_v47 = vsel %vm2824_vm6, %v2738_v39, %v2874_v5 }
 0x35b   : > { %v5855_v12 = vsel %vm2826_vm7, %v2745_v40, %v2875_v47 }
 0x35c   : > { %3645 = vmatmul.mubr.msk.f32.gmra.mrb[34].mxu1 %vm244_vm0, %v5855_v12 }
 0x3aa   : > { %v3637_v28 = vpop.f32.mrb[28].mxu1 }
 0x3ab   : > { %v2965_v10 = vadd.f32 %v3637_v28, %v3427_v57  ;;  %v2959_v36 = vpop.f32.mrb[29].mxu1 }
 0x3ac   : > { %v2960_v41 = vadd.f32 %v3427_v57, %v2959_v36 }
 0x3ad   : > { %v2999_v31 = vmax.f32 %v2965_v10, 0.0 }
 0x3ae   : > { %v2998_v22 = vmax.f32 %v2960_v41, 0.0 }
 0x3af   : > { %v3011_v49 = vmul.f32 %v3436_v48, %v2999_v31 }
 0x3b0   : > { %v3010_v20 = vmul.f32 %v3436_v48, %v2998_v22 }
 0x3b1   : > { %v3021_v58 = vsel %vm244_vm0, %v3011_v49, 0.0 }
 0x3b2   : > { %3022 = vadd.xlane.f32.xlu1 %v3021_v58  ;;  %v3018_v11 = vsel %vm244_vm0, %v3010_v20, 0.0 }
 0x3b3   : > { %3019 = vadd.xlane.f32.xlu0 %v3018_v11 }
 0x3d7   : > { %v3640_v27 = vpop.f32.mrb[30].mxu1 }
 0x3d8   : > { %v2975_v46 = vadd.f32 %v3640_v27, %v3427_v57  ;;  %v2969_v56 = vpop.f32.mrb[31].mxu1 }
 0x3d9   : > { %v2970_v44 = vadd.f32 %v3427_v57, %v2969_v56 }
 0x3da   : > { %v3001_v62 = vmax.f32 %v2975_v46, 0.0 }
 0x3db   : > { %v3000_v50 = vmax.f32 %v2970_v44, 0.0 }
 0x3dc   : > { %v3013_v52 = vmul.f32 %v3436_v48, %v3001_v62 }
 0x3dd   : > { %v3012_v35 = vmul.f32 %v3436_v48, %v3000_v50 }
 0x3de   : > { %v3027_v45 = vsel %vm244_vm0, %v3013_v52, 0.0 }
 0x3df   : > { %3028 = vadd.xlane.f32.xlu1 %v3027_v45  ;;  %v3024_v18 = vsel %vm244_vm0, %v3012_v35, 0.0 }
 0x3e0   : > { %3025 = vadd.xlane.f32.xlu0 %v3024_v18 }
 0x404   : > { %v3643_v59 = vpop.f32.mrb[32].mxu1 }
 0x405   : > { %v2985_v42 = vadd.f32 %v3643_v59, %v3427_v57  ;;  %v2979_v24 = vpop.f32.mrb[33].mxu1 }
 0x406   : > { %v2980_v55 = vadd.f32 %v3427_v57, %v2979_v24 }
 0x407   : > { %v3003_v23 = vmax.f32 %v2985_v42, 0.0 }
 0x408   : > { %v3002_v38 = vmax.f32 %v2980_v55, 0.0 }
 0x409   : > { %v3015_v33 = vmul.f32 %v3436_v48, %v3003_v23 }
 0x40a   : > { %v3014_v13 = vmul.f32 %v3436_v48, %v3002_v38 }
 0x40b   : > { %v3033_v54 = vsel %vm244_vm0, %v3015_v33, 0.0 }
 0x40c   : > { %3034 = vadd.xlane.f32.xlu1 %v3033_v54  ;;  %v3030_v1 = vsel %vm244_vm0, %v3014_v13, 0.0 }
 0x40d   : > { %3031 = vadd.xlane.f32.xlu0 %v3030_v1 }
 0x42f   : > { %v3646_v3 = vpop.f32.mrb[34].mxu1 }
 0x430   : > { %v2995_v30 = vadd.f32 %v3646_v3, %v3427_v57  ;;  %v2989_v53 = vpop.f32.mrb[35].mxu1 }
 0x431   : > { %v2990_v17 = vadd.f32 %v3427_v57, %v2989_v53 }
 0x432   : > { %v3005_v26 = vmax.f32 %v2995_v30, 0.0 }
 0x433   : > { %v3004_v60 = vmax.f32 %v2990_v17, 0.0 }
 0x434   : > { %v3017_v32 = vmul.f32 %v3436_v48, %v3005_v26 }
 0x435   : > { %v3016_v63 = vmul.f32 %v3436_v48, %v3004_v60 }
 0x436   : > { %v3039_v4 = vsel %vm244_vm0, %v3017_v32, 0.0 }
 0x437   : > { %3040 = vadd.xlane.f32.xlu1 %v3039_v4  ;;  %v3036_v37 = vsel %vm244_vm0, %v3016_v63, 0.0 }
 0x438   : > { %3037 = vadd.xlane.f32.xlu0 %v3036_v37 }
 0x43f   : > { %v3023_v7 = vpop.xlane.xlu1 %3022 }
 0x440   : > { %v3020_v25 = vpop.xlane.xlu0 %3019  ;;  %v3048_v21 = vrot.slane %v3023_v7, 4 }
 0x441   : > { %v3042_v43 = vrot.slane %v3020_v25, 4 }
 0x442   : > { %v3049_v51 = vmax.f32 %v3023_v7, %v3048_v21 }
 0x443   : > { %v3043_v14 = vmax.f32 %v3020_v25, %v3042_v43 }
 0x444   : > { %v3050_v2 = vrot.slane %v3049_v51, 2 }
 0x445   : > { %v3044_v5 = vrot.slane %v3043_v14, 2 }
 0x446   : > { %v3051_v57 = vmax.f32 %v3049_v51, %v3050_v2 }
 0x447   : > { %v3045_v10 = vmax.f32 %v3043_v14, %v3044_v5 }
 0x448   : > { %v3052_v48 = vrot.slane %v3051_v57, 1 }
 0x449   : > { %v3046_v20 = vrot.slane %v3045_v10, 1 }
 0x44a   : > { %v3053_v56 = vmax.f32 %v3051_v57, %v3052_v48 }
 0x44b   : > { %v3047_v50 = vmax.f32 %v3045_v10, %v3046_v20 }
 0x44c   : > { %v3091_v59 = vsub.f32 %v3023_v7, %v3053_v56 }
 0x44d   : > { %v3090_v24 = vsub.f32 %v3020_v25, %v3047_v50 }
 0x44e   : > { %v3100_v13 = vmul.f32 1.442695, %v3091_v59 }
 0x44f   : > { %v3098_v1 = vmul.f32 1.442695, %v3090_v24 }
 0x450   : > { %3971 = vpow2.f32 %v3100_v13 }
 0x451   : > { %3973 = vpow2.f32 %v3098_v1 }
 0x45a   : > { %v5873_v63 = vpop.eup %3971 }
 0x45b   : > { %v5875_v4 = vpop.eup %3973  ;;  %v3120_v25 = vrot.slane %v5873_v63, 4 }
 0x46c   : > { %v3029_v29 = vpop.xlane.xlu1 %3028 }
 0x46d   : > { %v3026_v6 = vpop.xlane.xlu0 %3025  ;;  %v3060_v34 = vrot.slane %v3029_v29, 4 }
 0x46e   : > { %v3054_v15 = vrot.slane %v3026_v6, 4 }
 0x46f   : > { %v3061_v40 = vmax.f32 %v3029_v29, %v3060_v34 }
 0x470   : > { %v3055_v39 = vmax.f32 %v3026_v6, %v3054_v15 }
 0x471   : > { %v3062_v28 = vrot.slane %v3061_v40, 2 }
 0x472   : > { %v3056_v47 = vrot.slane %v3055_v39, 2 }
 0x473   : > { %v3063_v31 = vmax.f32 %v3061_v40, %v3062_v28 }
 0x474   : > { %v3057_v36 = vmax.f32 %v3055_v39, %v3056_v47 }
 0x475   : > { %v3064_v44 = vrot.slane %v3063_v31, 1 }
 0x476   : > { %v3058_v11 = vrot.slane %v3057_v36, 1 }
 0x477   : > { %v3065_v42 = vmax.f32 %v3063_v31, %v3064_v44 }
 0x478   : > { %v3059_v35 = vmax.f32 %v3057_v36, %v3058_v11 }
 0x479   : > { %v3093_v54 = vsub.f32 %v3029_v29, %v3065_v42  ;;  %v3121_v29 = vadd.f32 %v5873_v63, %v3120_v25 }
 0x47a   : > { %v3092_v23 = vsub.f32 %v3026_v6, %v3059_v35  ;;  %v3114_v6 = vrot.slane %v5875_v4, 4 }
 0x47b   : > { %v3104_v17 = vmul.f32 1.442695, %v3093_v54  ;;  %v3122_v2 = vrot.slane %v3121_v29, 2 }
 0x47c   : > { %v3102_v30 = vmul.f32 1.442695, %v3092_v23  ;;  %v3115_v51 = vadd.f32 %v5875_v4, %v3114_v6 }
 0x47d   : > { %v3123_v10 = vadd.f32 %v3122_v2, %v3121_v29 }
 0x47e   : > { %3975 = vpow2.f32 %v3102_v30  ;;  %v3116_v5 = vrot.slane %v3115_v51, 2 }
 0x47f   : > { %3977 = vpow2.f32 %v3104_v17 }
 0x488   : > { %v5877_v37 = vpop.eup %3975 }
 0x489   : > { %v5880_v7 = vpop.eup %3977  ;;  %v3126_v43 = vrot.slane %v5877_v37, 4 }
 0x48a   : > { %v3132_v15 = vrot.slane %v5880_v7, 4 }
 0x48b   : > { %v3127_v14 = vadd.f32 %v5877_v37, %v3126_v43 }
 0x48c   : > { %v3133_v40 = vadd.f32 %v5880_v7, %v3132_v15 }
 0x48d   : > { %v3128_v57 = vrot.slane %v3127_v14, 2 }
 0x48e   : > { %v3134_v36 = vrot.slane %v3133_v40, 2 }
 0x499   : > { %v3035_v41 = vpop.xlane.xlu1 %3034 }
 0x49a   : > { %v3072_v22 = vrot.slane %v3035_v41, 4  ;;  %v3032_v49 = vpop.xlane.xlu0 %3031 }
 0x49b   : > { %v3066_v58 = vrot.slane %v3032_v49, 4 }
 0x49c   : > { %v3073_v27 = vmax.f32 %v3035_v41, %v3072_v22  ;;  %v3129_v22 = vadd.f32 %v3128_v57, %v3127_v14 }
 0x49d   : > { %v3067_v46 = vmax.f32 %v3032_v49, %v3066_v58 }
 0x49e   : > { %v3074_v62 = vrot.slane %v3073_v27, 2 }
 0x49f   : > { %v3068_v52 = vrot.slane %v3067_v46, 2 }
 0x4a0   : > { %v3075_v45 = vmax.f32 %v3073_v27, %v3074_v62  ;;  %v3124_v27 = vrot.slane %v3123_v10, 1 }
 0x4a1   : > { %v3069_v18 = vmax.f32 %v3067_v46, %v3068_v52  ;;  %v3135_v46 = vadd.f32 %v3134_v36, %v3133_v40  ;;  %v3130_v52 = vrot.slane %v3129_v22, 1  ;;  %v6132_v36 = vld [vmem:[#allocation54_spill] sm:$0xff] }
 0x4a2   : > { %v3076_v38 = vrot.slane %v3075_v45, 1  ;;  %v3125_v59 = vadd.f32 %v3124_v27, %v3123_v10 }
 0x4a3   : > { %v3070_v55 = vrot.slane %v3069_v18, 1  ;;  %v3136_v42 = vrot.slane %v3135_v46, 1 }
 0x4a4   : > { %v3077_v53 = vmax.f32 %v3075_v45, %v3076_v38 }
 0x4a5   : > { %v3071_v33 = vmax.f32 %v3069_v18, %v3070_v55 }
 0x4a6   : > { %v3095_v60 = vsub.f32 %v3035_v41, %v3077_v53  ;;  %v3117_v41 = vadd.f32 %v3116_v5, %v3115_v51 }
 0x4a7   : > { %v3094_v3 = vsub.f32 %v3032_v49, %v3071_v33  ;;  %v3131_v33 = vadd.f32 %v3130_v52, %v3129_v22 }
 0x4a8   : > { %v3108_v32 = vmul.f32 1.442695, %v3095_v60  ;;  %v3118_v44 = vrot.slane %v3117_v41, 1 }
 0x4a9   : > { %v3106_v26 = vmul.f32 1.442695, %v3094_v3  ;;  %v3137_v3 = vadd.f32 %v3136_v42, %v3135_v46 }
 0x4aa   : > { %v3119_v55 = vadd.f32 %v3118_v44, %v3117_v41 }
 0x4ab   : > { %3979 = vpow2.f32 %v3106_v26 }
 0x4ac   : > { %3981 = vpow2.f32 %v3108_v32 }
 0x4ad   : > { %3983 = vrcp.f32 %v3125_v59 }
 0x4ae   : > { %3985 = vrcp.f32 %v3119_v55 }
 0x4af   : > { %3987 = vrcp.f32 %v3131_v33 }
 0x4b0   : > { %3989 = vrcp.f32 %v3137_v3 }
 0x4b5   : > { %v5883_v21 = vpop.eup %3979 }
 0x4b6   : > { %v3138_v34 = vrot.slane %v5883_v21, 4  ;;  %v5891_v39 = vpop.eup %3981 }
 0x4b7   : > { %v3144_v28 = vrot.slane %v5891_v39, 4  ;;  %v3984_v29 = vpop.eup %3983 }
 0x4b8   : > { %v3139_v47 = vadd.f32 %v5883_v21, %v3138_v34  ;;  %v3986_v15 = vpop.eup %3985  ;;  %v3165_v14 = vmul.f32 %v3984_v29, %v5873_v63 }
 0x4b9   : > { %v3145_v58 = vadd.f32 %v5891_v39, %v3144_v28  ;;  %v3988_v51 = vpop.eup %3987  ;;  %v3163_v2 = vmul.f32 %v3986_v15, %v5875_v4 }
 0x4ba   : > { %v3140_v48 = vrot.slane %v3139_v47, 2  ;;  %v3990_v34 = vpop.eup %3989  ;;  %v3167_v5 = vmul.f32 %v3988_v51, %v5877_v37  ;;  %v3187_v10 = vmul.f32 %v3165_v14, %v5605_v0 }
 0x4bb   : > { %v3146_v45 = vrot.slane %v3145_v58, 2  ;;  %v3186_v41 = vmul.f32 %v3163_v2, %v6132_v36  ;;  %v3169_v63 = vmul.f32 %v3990_v34, %v5880_v7 }
 0x4bc   : > { %v3141_v62 = vadd.f32 %v3140_v48, %v3139_v47  ;;  %v3201_v27 = vsel %vm244_vm0, %v3187_v10, 0.0 }
 0x4bd   : > { %v3147_v54 = vadd.f32 %v3146_v45, %v3145_v58  ;;  %v3194_v37 = vsel %vm244_vm0, %v3186_v41, 0.0 }
 0x4be   : > { %v3142_v23 = vrot.slane %v3141_v62, 1  ;;  %v3195_v7 = vrot.slane %v3194_v37, 4 }
 0x4bf   : > { %v3148_v60 = vrot.slane %v3147_v54, 1 }
 0x4c0   : > { %v3143_v53 = vadd.f32 %v3142_v23, %v3141_v62 }
 0x4c1   : > { %v3149_v43 = vadd.f32 %v3148_v60, %v3147_v54 }
 0x4c2   : > { %3991 = vrcp.f32 %v3143_v53 }
 0x4c4   : > { %v3041_v31 = vpop.xlane.xlu1 %3040 }
 0x4c5   : > { %v3084_v49 = vrot.slane %v3041_v31, 4  ;;  %v3038_v20 = vpop.xlane.xlu0 %3037 }
 0x4c6   : > { %v3078_v11 = vrot.slane %v3038_v20, 4 }
 0x4c7   : > { %v3085_v56 = vmax.f32 %v3041_v31, %v3084_v49 }
 0x4c8   : > { %v3079_v50 = vmax.f32 %v3038_v20, %v3078_v11 }
 0x4c9   : > { %v3086_v35 = vrot.slane %v3085_v56, 2 }
 0x4ca   : > { %v3080_v18 = vrot.slane %v3079_v50, 2 }
 0x4cb   : > { %v3087_v24 = vmax.f32 %v3085_v56, %v3086_v35 }
 0x4cc   : > { %v3081_v38 = vmax.f32 %v3079_v50, %v3080_v18  ;;  %v3992_v40 = vpop.eup %3991  ;;  %v3202_v50 = vrot.slane %v3201_v27, 4 }
 0x4cd   : > { %v3088_v13 = vrot.slane %v3087_v24, 1  ;;  %v3171_v22 = vmul.f32 %v3992_v40, %v5883_v21  ;;  %v3189_v21 = vmul.f32 %v3169_v63, %v5697_v61 }
 0x4ce   : > { %v3082_v1 = vrot.slane %v3081_v38, 1  ;;  %v3203_v55 = vadd.f32 %v3202_v50, %v3201_v27 }
 0x4cf   : > { %v3089_v30 = vmax.f32 %v3087_v24, %v3088_v13  ;;  %v3190_v0 = vmul.f32 %v3171_v22, %v5746_v19  ;;  %v3215_v19 = vsel %vm244_vm0, %v3189_v21, 0.0  ;;  %v3196_v24 = vadd.f32 %v3195_v7, %v3194_v37 }
 0x4d0   : > { %v3083_v17 = vmax.f32 %v3081_v38, %v3082_v1  ;;  %v3216_v61 = vrot.slane %v3215_v19, 4  ;;  %v3204_v13 = vrot.slane %v3203_v55, 2 }
 0x4d1   : > { %v3097_v26 = vsub.f32 %v3041_v31, %v3089_v30  ;;  %v3188_v31 = vmul.f32 %v3167_v5, %v5652_v16  ;;  %v3222_v18 = vsel %vm244_vm0, %v3190_v0, 0.0  ;;  %v3197_v33 = vrot.slane %v3196_v24, 2 }
 0x4d2   : > { %v3096_v32 = vsub.f32 %v3038_v20, %v3083_v17  ;;  %v3223_v23 = vrot.slane %v3222_v18, 4  ;;  %v3217_v3 = vadd.f32 %v3216_v61, %v3215_v19  ;;  %v3205_v17 = vadd.f32 %v3204_v13, %v3203_v55 }
 0x4d3   : > { %v3112_v25 = vmul.f32 1.442695, %v3097_v26  ;;  %v3208_v56 = vsel %vm244_vm0, %v3188_v31, 0.0  ;;  %v3198_v53 = vadd.f32 %v3197_v33, %v3196_v24 }
 0x4d4   : > { %v3110_v6 = vmul.f32 1.442695, %v3096_v32  ;;  %v3209_v35 = vrot.slane %v3208_v56, 4  ;;  %v3224_v1 = vadd.f32 %v3223_v23, %v3222_v18  ;;  %v3218_v32 = vrot.slane %v3217_v3, 2 }
 0x4d5   : > { %3993 = vpow2.f32 %v3112_v25  ;;  %v3199_v15 = vrot.slane %v3198_v53, 1  ;;  %v3206_v51 = vrot.slane %v3205_v17, 1 }
 0x4d6   : > { %3995 = vpow2.f32 %v3110_v6  ;;  %v3225_v26 = vrot.slane %v3224_v1, 2  ;;  %v3219_v5 = vadd.f32 %v3218_v32, %v3217_v3 }
 0x4d7   : > { %3997 = vrcp.f32 %v3149_v43  ;;  %v3200_v36 = vadd.f32 %v3199_v15, %v3198_v53  ;;  %v3207_v41 = vadd.f32 %v3206_v51, %v3205_v17 }
 0x4d8   : > { %v3226_v2 = vadd.f32 %v3225_v26, %v3224_v1 }
 0x4df   : > { %v3994_v47 = vpop.eup %3993 }
 0x4e0   : > { %v3996_v57 = vpop.eup %3995  ;;  %v3156_v28 = vrot.slane %v3994_v47, 4 }
 0x4e1   : > { %v3150_v48 = vrot.slane %v3996_v57, 4  ;;  %v3998_v4 = vpop.eup %3997 }
 0x4e2   : > { %v3157_v49 = vadd.f32 %v3994_v47, %v3156_v28  ;;  %v3173_v16 = vmul.f32 %v3998_v4, %v5891_v39  ;;  %v3210_v39 = vadd.f32 %v3209_v35, %v3208_v56 }
 0x4e3   : > { %v3151_v20 = vadd.f32 %v3996_v57, %v3150_v48 }
 0x4e4   : > { %v3158_v58 = vrot.slane %v3157_v49, 2  ;;  %v3191_v42 = vmul.f32 %v3173_v16, %v5789_v8  ;;  %v3211_v54 = vrot.slane %v3210_v39, 2 }
 0x4e5   : > { %v3152_v11 = vrot.slane %v3151_v20, 2 }
 0x4e6   : > { %v3159_v46 = vadd.f32 %v3158_v58, %v3157_v49  ;;  %v3229_v38 = vsel %vm244_vm0, %v3191_v42, 0.0  ;;  %v3212_v8 = vadd.f32 %v3211_v54, %v3210_v39  ;;  %v3220_v49 = vrot.slane %v3219_v5, 1 }
 0x4e7   : > { %v3153_v44 = vadd.f32 %v3152_v11, %v3151_v20  ;;  %v3230_v30 = vrot.slane %v3229_v38, 4 }
 0x4e8   : > { %v3160_v62 = vrot.slane %v3159_v46, 1  ;;  %v3213_v14 = vrot.slane %v3212_v8, 1  ;;  %v3221_v27 = vadd.f32 %v3220_v49, %v3219_v5 }
 0x4e9   : > { %v3154_v52 = vrot.slane %v3153_v44, 1  ;;  %v3231_v25 = vadd.f32 %v3230_v30, %v3229_v38 }
 0x4ea   : > { %v3161_v45 = vadd.f32 %v3160_v62, %v3159_v46 }
 0x4eb   : > { %v3155_v59 = vadd.f32 %v3154_v52, %v3153_v44  ;;  %v3232_v28 = vrot.slane %v3231_v25, 2 }
 0x4ec   : > { %3999 = vrcp.f32 %v3161_v45 }
 0x4ed   : > { %4001 = vrcp.f32 %v3155_v59  ;;  %v3233_v63 = vadd.f32 %v3232_v28, %v3231_v25 }
 0x4ef   : > { %v3234_v46 = vrot.slane %v3233_v63, 1 }
 0x4f1   : > { %v3235_v7 = vadd.f32 %v3234_v46, %v3233_v63 }
 0x4f6   : > { %v4000_v60 = vpop.eup %3999 }
 0x4f7   : > { %v4002_v6 = vpop.eup %4001  ;;  %v3177_v43 = vmul.f32 %v4000_v60, %v3994_v47  ;;  %v3214_v47 = vadd.f32 %v3213_v14, %v3212_v8 }
 0x4f8   : > { %v3175_v29 = vmul.f32 %v4002_v6, %v3996_v57  ;;  %v3227_v57 = vrot.slane %v3226_v2, 1 }
 0x4f9   : > { %v3193_v34 = vmul.f32 %v3177_v43, %v5855_v12 }
 0x4fa   : > { %v3192_v40 = vmul.f32 %v3175_v29, %v5835_v9  ;;  %v3258_v9 = vsel %vm2814_vm1, %v3207_v41, %v3200_v36  ;;  %v3228_v58 = vadd.f32 %v3227_v57, %v3226_v2 }
 0x4fb   : > { %v3243_v10 = vsel %vm244_vm0, %v3193_v34, 0.0  ;;  %v3259_v37 = vsel %vm2816_vm2, %v3214_v47, %v3258_v9 }
 0x4fc   : > { %v3236_v48 = vsel %vm244_vm0, %v3192_v40, 0.0  ;;  %v3244_v31 = vrot.slane %v3243_v10, 4  ;;  %v3260_v16 = vsel %vm2818_vm3, %v3221_v27, %v3259_v37 }
 0x4fd   : > { %v3237_v22 = vrot.slane %v3236_v48, 4  ;;  %v3261_v62 = vsel %vm2820_vm4, %v3228_v58, %v3260_v16 }
 0x4fe   : > { %v3245_v12 = vadd.f32 %v3244_v31, %v3243_v10  ;;  %v3262_v35 = vsel %vm2822_vm5, %v3235_v7, %v3261_v62 }
 0x4ff   : > { %v3238_v20 = vadd.f32 %v3237_v22, %v3236_v48 }
 0x500   : > { %v3246_v4 = vrot.slane %v3245_v12, 2 }
 0x501   : > { %v3239_v11 = vrot.slane %v3238_v20, 2 }
 0x502   : > { %v3247_v0 = vadd.f32 %v3246_v4, %v3245_v12 }
 0x503   : > { %v3240_v56 = vadd.f32 %v3239_v11, %v3238_v20 }
 0x504   : > { %v3248_v44 = vrot.slane %v3247_v0, 1 }
 0x505   : > { %v3241_v21 = vrot.slane %v3240_v56, 1 }
 0x506   : > { %v3249_v52 = vadd.f32 %v3248_v44, %v3247_v0 }
 0x507   : > { %v3242_v50 = vadd.f32 %v3241_v21, %v3240_v56 }
 0x509   : > { %v3263_v45 = vsel %vm2824_vm6, %v3242_v50, %v3262_v35 }
 0x50a   : > { %v3264_v18 = vsel %vm2826_vm7, %v3249_v52, %v3263_v45 }
 0x50b   : > { %3266 = vst.msk [vmem:[%s162_s16] sm:$0xff] %vm244_vm0, %v3264_v18 }
 0x50c   : > { %4110 = shalt.err (!%p4107_p2)
}
 0x50d   : > { %s4111_s27 = scalar_lea.hbm %s5930_s24, 128  ;;  %s4115_s3 = scalar_lea.hbm %s5978_s2, 256 }
 0x50e   : > { %p4112_p4 = scmp.ne.s32.totalorder %s5930_s24, %s4111_s27  ;;  %p4116_p9 = scmp.lt.u32.totalorder %s5930_s24, %s5978_s2 }
 0x50f   : > { %p4117_p1 = scmp.lt.u32.totalorder %s4115_s3, %s4111_s27  ;;  %p4119_p6 = scmp.lt.u32.totalorder %s4111_s27, %s5930_s24 }
 0x510   : > { %p4113_p5 = pnand %p4112_p4, %p6133_p11 }
 0x511   : > { %p4118_p3 = por %p4117_p1, %p4116_p9 }
 0x512   : > { %p4114_p7 = pneg %p4113_p5 }
 0x513   : > { %p4120_p12 = por %p4119_p6, %p4118_p3 }
 0x515   : > { %p4121_p13 = pnand %p4120_p12, %p4114_p7 }
 0x517   : > { %4124 = shalt.err (!%p4121_p13)
}
 0x518   : > { %3669 = dma.vmem_to_hbm [thread:$0]  (%p6133_p11), %s5932_s17, 128, %s5930_s24, %s3268_s13  }
 0x519 PF: > { %s3293_s7 = sand.u32 1, %s4151_s9   ;;  %p6134_p8 = scmp.ne.s32.totalorder %s6019_s22, 0 }
 0x51a   : > { %p6135_p10 = scmp.ge.s32.totalorder %s4163_s12, 2  ;;  %s3294_s8 = scalar_lea.sflag [#allocation4], %s3293_s7 }
 0x51c   : > { %p3676_p0 = pnand %p6135_p10, %p6134_p8 }
 0x51e   : > { %4146 = dma.done.wait (!%p3676_p0), %s3294_s8, 128  }
 0x51f   : > { %4148 = vsyncadd (!%p3676_p0), %s3294_s8, 4294967168  ;;  %p15_p2 = scmp.ge.s32.totalorder %s4209_s15, 4   ;;  %s6136_s9 = smov %s4155_s10 }
 0x520   : > { %s6137_s10 = smov %s4159_s11  ;;  %s6138_s11 = smov %s4221_s18 }
 0x521   : > { %s6139_s12 = smov %s4209_s15  ;;  %17 = sbr.rel (!%p15_p2) target bundleno = 5 (0x5), region = 73 }
 0x528   :  { %3299 = vsyncpa [#allocation3], 1 }
 0x529   :  { %3301 = vsyncpa [#allocation3 + $0x1], 1 }
 0x52a   :  { %3302 = vsyncpa [#allocation4], 1 }
 0x52b   :  { %3304 = vsyncpa [#allocation4 + $0x1], 1 }

</bundles_post_ra>
